<compile_context>
chip_gen: v7x
topology: tpu7x:2x2x1
jax: 0.10.0
libtpu: 0.0.40
codegen_flags: <defaults>
</compile_context>

<pallas_src>
import functools
import math

import jax
import jax.numpy as jnp
import numpy as np
from jax import lax
from jax.experimental import pallas as pl
from jax.experimental.pallas import tpu as pltpu

# ----------------------------- model hyper-params (small) -----------------------------
BATCH = 2
SEQ = 8            # num tokens fed to the decoder
DIM = 32           # in_chans / embedding dim
DEPTH = 4          # number of Blocks
NUM_HEADS = 4      # must divide DIM
MLP_RATIO = 4.0
NUM_CLASSES = 16
RETURN_TOKEN_NUM = 4
LN_EPS = 1e-5      # nn.LayerNorm default eps

HEAD_DIM = DIM // NUM_HEADS
HIDDEN = int(DIM * MLP_RATIO)
ATTN_SCALE = HEAD_DIM ** -0.5   # qk_scale=None -> head_dim ** -0.5
KPAD = 128                      # lane-dense head / output padding


# ----------------------------- LayerNorm helpers -----------------------------
def _layernorm_fused(x, w, b, eps=LN_EPS):
    """One-pass moments: var = E[x^2] - E[x]^2 (clamped). Used inside the kernel."""
    mu = jnp.mean(x, axis=-1, keepdims=True)
    m2 = jnp.mean(x * x, axis=-1, keepdims=True)
    var = jnp.maximum(m2 - mu * mu, 0.0)
    return (x - mu) * lax.rsqrt(var + eps) * w + b


def _layernorm_ref(x, w, b, eps=LN_EPS):
    """PyTorch-faithful two-pass LayerNorm. Used by the pure-JAX reference."""
    mu = jnp.mean(x, axis=-1, keepdims=True)
    var = jnp.mean((x - mu) ** 2, axis=-1, keepdims=True)
    return (x - mu) * lax.rsqrt(var + eps) * w + b


# ----------------------------- fused Pallas kernel -----------------------------
def _decoder_kernel(x_ref,
                    ln1w, ln1b, qkvw, projw, projb,
                    ln2w, ln2b, fc1w, fc1b, fc2w, fc2b,
                    normw, normb, headw, headb,
                    o_ref,
                    ctx_ref,
                    *, depth, batch, seq, num_heads, head_dim, scale):
    """Whole decoder for the whole batch: DEPTH x (LN->MHSA->res, LN->MLP->res), then
    final LN + head on ALL rows (tail-token slicing happens in the wrapper).
    drop / attn_drop / drop_path = 0, init_values=None, qkv_bias=False."""
    C = num_heads * head_dim
    bf16 = jnp.bfloat16
    xf = x_ref[...]                                       # (B*N, C) f32, batch-major rows

    for d in range(depth):                                # static depth loop (DEPTH=4)
        # ---------------- attention branch ----------------
        h = _layernorm_fused(xf, ln1w[d], ln1b[d])
        qkv = jnp.dot(h.astype(bf16), qkvw[d],            # bf16 x bf16 -> f32 accumulate
                      preferred_element_type=jnp.float32)  # (B*N, 3C)
        q = qkv[:, :C].reshape(batch, seq, C)              # (B, N, C)
        k = qkv[:, C:2 * C].reshape(batch, seq, C)
        v = qkv[:, 2 * C:].reshape(batch, seq, C)

        # Per-head attention, batched over B via 3-D einsums; each head's context is
        # written into the VMEM scratch accumulator at a static lane offset.
        for hi in range(num_heads):                        # static head loop (4 iters)
            lo = hi * head_dim
            qh = q[:, :, lo:lo + head_dim]                 # (B, N, hd)
            kh = k[:, :, lo:lo + head_dim]
            vh = v[:, :, lo:lo + head_dim]
            s = jnp.einsum('bqd,bkd->bqk', qh, kh,
                           preferred_element_type=jnp.float32) * scale   # (B, N, N)
            s = s - jnp.max(s, axis=-1, keepdims=True)
            p = jnp.exp(s)
            # Intentional approximation (review item): EUP reciprocal for softmax denom.
            p = p * pl.reciprocal(jnp.sum(p, axis=-1, keepdims=True), approx=True)
            ctx_h = jnp.einsum('bqk,bkd->bqd', p, vh,
                               preferred_element_type=jnp.float32)       # (B, N, hd)
            ctx_ref[:, :, lo:lo + head_dim] = ctx_h

        # single shared output projection on all rows
        ctx = ctx_ref[...].reshape(batch * seq, C)                        # (B*N, C)
        attn = jnp.dot(ctx.astype(bf16), projw[d],
                       preferred_element_type=jnp.float32) + projb[d]
        xf = xf + attn

        # ---------------- MLP branch ----------------
        h2 = _layernorm_fused(xf, ln2w[d], ln2b[d])
        m = jnp.dot(h2.astype(bf16), fc1w[d],
                    preferred_element_type=jnp.float32) + fc1b[d]
        # Numerics-policy (explicit, per review): tanh GELU runs on the EUP slot;
        # |delta| vs exact erf GELU is ~1e-3, validated against the f32 reference.
        m = jax.nn.gelu(m, approximate=True)
        m = jnp.dot(m.astype(bf16), fc2w[d],
                    preferred_element_type=jnp.float32) + fc2b[d]
        xf = xf + m

    # ---------------- final norm + head on ALL rows (lane-padded output) ----------------
    ht = _layernorm_fused(xf, normw[...], normb[...])
    o_ref[...] = jnp.dot(ht.astype(bf16), headw[...],
                         preferred_element_type=jnp.float32) + headb[...]


# ----------------------------- pallas_call wrapper -----------------------------
def _full_spec(shape):
    nd = len(shape)
    return pl.BlockSpec(shape, lambda i, _nd=nd: (0,) * _nd)


def decoder_forward(x, params, return_token_num):
    B, N, C = x.shape
    K = params["head_w"].shape[-1]

    x_flat = x.reshape(B * N, C)                          # wrapper-side layout plumbing

    def b16(a):
        return a.astype(jnp.bfloat16)

    # lane-dense (128-wide) head weight / bias; pad lanes are zero and sliced off below
    head_w_p = jnp.zeros((C, KPAD), jnp.float32).at[:, :K].set(params["head_w"])
    head_b_p = jnp.zeros((1, KPAD), jnp.float32).at[:, :K].set(params["head_b"])

    inputs = [x_flat,
              params["ln1_w"], params["ln1_b"], b16(params["qkv_w"]),
              b16(params["proj_w"]), params["proj_b"],
              params["ln2_w"], params["ln2_b"],
              b16(params["fc1_w"]), params["fc1_b"],
              b16(params["fc2_w"]), params["fc2_b"],
              params["norm_w"], params["norm_b"], b16(head_w_p), head_b_p]

    kernel = functools.partial(
        _decoder_kernel, depth=DEPTH, batch=B, seq=N,
        num_heads=NUM_HEADS, head_dim=HEAD_DIM, scale=ATTN_SCALE)

    out_flat = pl.pallas_call(
        kernel,
        out_shape=jax.ShapeDtypeStruct((B * N, KPAD), jnp.float32),
        grid=(1,),                                        # single fused launch (toy size)
        in_specs=[_full_spec(a.shape) for a in inputs],
        out_specs=_full_spec((B * N, KPAD)),
        scratch_shapes=[pltpu.VMEM((B, N, C), jnp.float32)],   # per-layer attn context
        compiler_params=pltpu.CompilerParams(
            dimension_semantics=("arbitrary",),
            vmem_limit_bytes=32 * 1024 * 1024),
    )(*inputs)

    out = out_flat.reshape(B, N, KPAD)[..., :K]           # drop lane padding
    if return_token_num > 0:                              # tail-token slice in the wrapper
        out = out[:, -return_token_num:, :]
    return out


# ----------------------------- pure-JAX reference (exact numerics) -----------------------------
def _ref_forward(x, p, return_token_num):
    for d in range(DEPTH):
        h = _layernorm_ref(x, p["ln1_w"][d], p["ln1_b"][d])
        qkv = h @ p["qkv_w"][d]
        q, k, v = qkv[..., :DIM], qkv[..., DIM:2 * DIM], qkv[..., 2 * DIM:]

        def split(t):  # (B,N,C) -> (B,H,N,hd)
            B, N, _ = t.shape
            return t.reshape(B, N, NUM_HEADS, HEAD_DIM).transpose(0, 2, 1, 3)

        qh, kh, vh = split(q), split(k), split(v)
        s = jnp.einsum("bhnd,bhmd->bhnm", qh, kh) * ATTN_SCALE
        pm = jax.nn.softmax(s, axis=-1)
        o = jnp.einsum("bhnm,bhmd->bhnd", pm, vh).transpose(0, 2, 1, 3).reshape(x.shape)
        x = x + (o @ p["proj_w"][d] + p["proj_b"][d])
        h2 = _layernorm_ref(x, p["ln2_w"][d], p["ln2_b"][d])
        m = jax.nn.gelu(h2 @ p["fc1_w"][d] + p["fc1_b"][d], approximate=False)
        x = x + (m @ p["fc2_w"][d] + p["fc2_b"][d])
    if return_token_num > 0:
        x = x[:, -return_token_num:, :]
    h = _layernorm_ref(x, p["norm_w"], p["norm_b"])
    return h @ p["head_w"] + p["head_b"]


# ----------------------------- deterministic parameter init -----------------------------
def _xavier(key, shape):
    fan_in, fan_out = shape
    limit = math.sqrt(6.0 / (fan_in + fan_out))
    return jax.random.uniform(key, shape, jnp.float32, -limit, limit)


def init_params(key):
    qkv_ws, proj_ws, fc1_ws, fc2_ws = [], [], [], []
    for d in range(DEPTH):
        k = jax.random.fold_in(key, d)
        k_qkv, k_proj, k_fc1, k_fc2 = jax.random.split(k, 4)
        qkv_ws.append(_xavier(k_qkv, (DIM, 3 * DIM)))   # qkv_bias=False
        proj_ws.append(_xavier(k_proj, (DIM, DIM)))
        fc1_ws.append(_xavier(k_fc1, (DIM, HIDDEN)))
        fc2_ws.append(_xavier(k_fc2, (HIDDEN, DIM)))
    k_head = jax.random.fold_in(key, 10_000)
    return dict(
        ln1_w=jnp.ones((DEPTH, 1, DIM), jnp.float32),
        ln1_b=jnp.zeros((DEPTH, 1, DIM), jnp.float32),
        qkv_w=jnp.stack(qkv_ws),                        # (DEPTH, C, 3C)
        proj_w=jnp.stack(proj_ws),                      # (DEPTH, C, C)
        proj_b=jnp.zeros((DEPTH, 1, DIM), jnp.float32),
        ln2_w=jnp.ones((DEPTH, 1, DIM), jnp.float32),
        ln2_b=jnp.zeros((DEPTH, 1, DIM), jnp.float32),
        fc1_w=jnp.stack(fc1_ws),                        # (DEPTH, C, HIDDEN)
        fc1_b=jnp.zeros((DEPTH, 1, HIDDEN), jnp.float32),
        fc2_w=jnp.stack(fc2_ws),                        # (DEPTH, HIDDEN, C)
        fc2_b=jnp.zeros((DEPTH, 1, DIM), jnp.float32),
        norm_w=jnp.ones((1, DIM), jnp.float32),
        norm_b=jnp.zeros((1, DIM), jnp.float32),
        head_w=_xavier(k_head, (DIM, NUM_CLASSES)),
        head_b=jnp.zeros((1, NUM_CLASSES), jnp.float32),
    )


# ----------------------------- main -----------------------------
if __name__ == "__main__":
    key = jax.random.PRNGKey(0)
    x = jax.random.normal(key, (BATCH, SEQ, DIM), jnp.float32)
    params = init_params(jax.random.PRNGKey(1))

    out = decoder_forward(x, params, RETURN_TOKEN_NUM)
    out = jax.block_until_ready(out)

    assert out.shape == (BATCH, RETURN_TOKEN_NUM, NUM_CLASSES), out.shape
    assert bool(jnp.all(jnp.isfinite(out)))

    ref = _ref_forward(x, params, RETURN_TOKEN_NUM)
    np.testing.assert_allclose(np.asarray(out), np.asarray(ref), rtol=5e-2, atol=5e-2)

    print("KERNEL_OK")
</pallas_src>

<mosaic_0001>
module attributes {stable_mosaic.version = 11 : i64} {
  func.func @_decoder_kernel(%arg0: i32, %arg1: memref<16x32xf32, #tpu.memory_space<vmem>>, %arg2: memref<4x1x32xf32, #tpu.memory_space<vmem>>, %arg3: memref<4x1x32xf32, #tpu.memory_space<vmem>>, %arg4: memref<4x32x96xbf16, #tpu.memory_space<vmem>>, %arg5: memref<4x32x32xbf16, #tpu.memory_space<vmem>>, %arg6: memref<4x1x32xf32, #tpu.memory_space<vmem>>, %arg7: memref<4x1x32xf32, #tpu.memory_space<vmem>>, %arg8: memref<4x1x32xf32, #tpu.memory_space<vmem>>, %arg9: memref<4x32x128xbf16, #tpu.memory_space<vmem>>, %arg10: memref<4x1x128xf32, #tpu.memory_space<vmem>>, %arg11: memref<4x128x32xbf16, #tpu.memory_space<vmem>>, %arg12: memref<4x1x32xf32, #tpu.memory_space<vmem>>, %arg13: memref<1x32xf32, #tpu.memory_space<vmem>>, %arg14: memref<1x32xf32, #tpu.memory_space<vmem>>, %arg15: memref<32x128xbf16, #tpu.memory_space<vmem>>, %arg16: memref<1x128xf32, #tpu.memory_space<vmem>>, %arg17: memref<16x128xf32, #tpu.memory_space<vmem>>, %arg18: memref<2x8x32xf32, #tpu.memory_space<vmem>>) attributes {dimension_semantics = [#tpu.dimension_semantics<arbitrary>], iteration_bounds = array<i64: 1>, scalar_prefetch = 0 : i64, scratch_operands = 1 : i64, tpu.core_type = #tpu.core_type<tc>, window_params = [{pipeline_mode = #tpu.pipeline_mode<synchronous>, transform_indices = @transform_0, window_bounds = array<i64: 16, 32>}, {pipeline_mode = #tpu.pipeline_mode<synchronous>, transform_indices = @transform_1, window_bounds = array<i64: 4, 1, 32>}, {pipeline_mode = #tpu.pipeline_mode<synchronous>, transform_indices = @transform_2, window_bounds = array<i64: 4, 1, 32>}, {pipeline_mode = #tpu.pipeline_mode<synchronous>, transform_indices = @transform_3, window_bounds = array<i64: 4, 32, 96>}, {pipeline_mode = #tpu.pipeline_mode<synchronous>, transform_indices = @transform_4, window_bounds = array<i64: 4, 32, 32>}, {pipeline_mode = #tpu.pipeline_mode<synchronous>, transform_indices = @transform_5, window_bounds = array<i64: 4, 1, 32>}, {pipeline_mode = #tpu.pipeline_mode<synchronous>, transform_indices = @transform_6, window_bounds = array<i64: 4, 1, 32>}, {pipeline_mode = #tpu.pipeline_mode<synchronous>, transform_indices = @transform_7, window_bounds = array<i64: 4, 1, 32>}, {pipeline_mode = #tpu.pipeline_mode<synchronous>, transform_indices = @transform_8, window_bounds = array<i64: 4, 32, 128>}, {pipeline_mode = #tpu.pipeline_mode<synchronous>, transform_indices = @transform_9, window_bounds = array<i64: 4, 1, 128>}, {pipeline_mode = #tpu.pipeline_mode<synchronous>, transform_indices = @transform_10, window_bounds = array<i64: 4, 128, 32>}, {pipeline_mode = #tpu.pipeline_mode<synchronous>, transform_indices = @transform_11, window_bounds = array<i64: 4, 1, 32>}, {pipeline_mode = #tpu.pipeline_mode<synchronous>, transform_indices = @transform_12, window_bounds = array<i64: 1, 32>}, {pipeline_mode = #tpu.pipeline_mode<synchronous>, transform_indices = @transform_13, window_bounds = array<i64: 1, 32>}, {pipeline_mode = #tpu.pipeline_mode<synchronous>, transform_indices = @transform_14, window_bounds = array<i64: 32, 128>}, {pipeline_mode = #tpu.pipeline_mode<synchronous>, transform_indices = @transform_15, window_bounds = array<i64: 1, 128>}, {pipeline_mode = #tpu.pipeline_mode<synchronous>, transform_indices = @transform_16, window_bounds = array<i64: 16, 128>}]} {
    %c0 = arith.constant 0 : index
    %c0_0 = arith.constant 0 : index
    %0 = vector.load %arg1[%c0, %c0_0] : memref<16x32xf32, #tpu.memory_space<vmem>>, vector<16x32xf32>
    %c0_1 = arith.constant 0 : index
    %c0_2 = arith.constant 0 : index
    %c0_3 = arith.constant 0 : index
    %1 = vector.load %arg2[%c0_1, %c0_2, %c0_3] : memref<4x1x32xf32, #tpu.memory_space<vmem>>, vector<1x1x32xf32>
    %2 = vector.shape_cast %1 : vector<1x1x32xf32> to vector<1x32xf32>
    %c0_4 = arith.constant 0 : index
    %c0_5 = arith.constant 0 : index
    %c0_6 = arith.constant 0 : index
    %3 = vector.load %arg3[%c0_4, %c0_5, %c0_6] : memref<4x1x32xf32, #tpu.memory_space<vmem>>, vector<1x1x32xf32>
    %4 = vector.shape_cast %3 : vector<1x1x32xf32> to vector<1x32xf32>
    %cst = arith.constant dense<0.000000e+00> : vector<16xf32>
    %5 = vector.multi_reduction <add>, %0, %cst [1] : vector<16x32xf32> to vector<16xf32>
    %6 = vector.shape_cast %5 : vector<16xf32> to vector<16x1xf32>
    %cst_7 = arith.constant 3.200000e+01 : f32
    %7 = vector.broadcast %cst_7 : f32 to vector<16x1xf32>
    %8 = arith.divf %6, %7 : vector<16x1xf32>
    %9 = arith.mulf %0, %0 : vector<16x32xf32>
    %cst_8 = arith.constant dense<0.000000e+00> : vector<16xf32>
    %10 = vector.multi_reduction <add>, %9, %cst_8 [1] : vector<16x32xf32> to vector<16xf32>
    %11 = vector.shape_cast %10 : vector<16xf32> to vector<16x1xf32>
    %cst_9 = arith.constant 3.200000e+01 : f32
    %12 = vector.broadcast %cst_9 : f32 to vector<16x1xf32>
    %13 = arith.divf %11, %12 : vector<16x1xf32>
    %14 = arith.mulf %8, %8 : vector<16x1xf32>
    %15 = arith.subf %13, %14 : vector<16x1xf32>
    %cst_10 = arith.constant 0.000000e+00 : f32
    %16 = vector.broadcast %cst_10 : f32 to vector<16x1xf32>
    %17 = arith.maximumf %15, %16 : vector<16x1xf32>
    %18 = vector.broadcast %8 : vector<16x1xf32> to vector<16x32xf32>
    %19 = arith.subf %0, %18 : vector<16x32xf32>
    %cst_11 = arith.constant 9.99999974E-6 : f32
    %20 = vector.broadcast %cst_11 : f32 to vector<16x1xf32>
    %21 = arith.addf %17, %20 : vector<16x1xf32>
    %22 = math.rsqrt %21 : vector<16x1xf32>
    %23 = vector.broadcast %22 : vector<16x1xf32> to vector<16x32xf32>
    %24 = arith.mulf %19, %23 : vector<16x32xf32>
    %25 = vector.broadcast %2 : vector<1x32xf32> to vector<16x32xf32>
    %26 = arith.mulf %24, %25 : vector<16x32xf32>
    %27 = vector.broadcast %4 : vector<1x32xf32> to vector<16x32xf32>
    %28 = arith.addf %26, %27 : vector<16x32xf32>
    %29 = arith.truncf %28 : vector<16x32xf32> to vector<16x32xbf16>
    %c0_12 = arith.constant 0 : index
    %c0_13 = arith.constant 0 : index
    %c0_14 = arith.constant 0 : index
    %30 = vector.load %arg4[%c0_12, %c0_13, %c0_14] : memref<4x32x96xbf16, #tpu.memory_space<vmem>>, vector<1x32x96xbf16>
    %31 = vector.shape_cast %30 : vector<1x32x96xbf16> to vector<32x96xbf16>
    %cst_15 = arith.constant dense<0.000000e+00> : vector<16x96xf32>
    %32 = tpu.matmul %29, %31, %cst_15 {dimension_numbers = #tpu.dot_dimension_numbers<[1], [0], [0], [1], [0, 0, 1, 1], [], []>} : vector<16x32xbf16>, vector<32x96xbf16>, vector<16x96xf32> -> vector<16x96xf32>
    %33 = vector.extract_strided_slice %32 {offsets = [0, 0], sizes = [16, 32], strides = [1, 1]} : vector<16x96xf32> to vector<16x32xf32>
    %34 = vector.shape_cast %33 : vector<16x32xf32> to vector<2x8x32xf32>
    %35 = vector.extract_strided_slice %32 {offsets = [0, 32], sizes = [16, 32], strides = [1, 1]} : vector<16x96xf32> to vector<16x32xf32>
    %36 = vector.shape_cast %35 : vector<16x32xf32> to vector<2x8x32xf32>
    %37 = vector.extract_strided_slice %32 {offsets = [0, 64], sizes = [16, 32], strides = [1, 1]} : vector<16x96xf32> to vector<16x32xf32>
    %38 = vector.shape_cast %37 : vector<16x32xf32> to vector<2x8x32xf32>
    %39 = vector.extract_strided_slice %34 {offsets = [0, 0, 0], sizes = [2, 8, 8], strides = [1, 1, 1]} : vector<2x8x32xf32> to vector<2x8x8xf32>
    %40 = vector.extract_strided_slice %36 {offsets = [0, 0, 0], sizes = [2, 8, 8], strides = [1, 1, 1]} : vector<2x8x32xf32> to vector<2x8x8xf32>
    %41 = vector.extract_strided_slice %38 {offsets = [0, 0, 0], sizes = [2, 8, 8], strides = [1, 1, 1]} : vector<2x8x32xf32> to vector<2x8x8xf32>
    "tpu.trace_start"() <{level = 10 : i32, message = "bqd,bkd->bqk"}> : () -> ()
    %cst_16 = arith.constant dense<0.000000e+00> : vector<2x8x8xf32>
    %42 = tpu.matmul %39, %40, %cst_16 {dimension_numbers = #tpu.dot_dimension_numbers<[2], [2], [1], [1], [0, 0, 0, 1, 1, 1], [0], [0]>} : vector<2x8x8xf32>, vector<2x8x8xf32>, vector<2x8x8xf32> -> vector<2x8x8xf32>
    "tpu.trace_stop"() : () -> ()
    %cst_17 = arith.constant 0.353553385 : f32
    %43 = vector.broadcast %cst_17 : f32 to vector<2x8x8xf32>
    %44 = arith.mulf %42, %43 : vector<2x8x8xf32>
    %cst_18 = arith.constant dense<0xFF800000> : vector<2x8xf32>
    %45 = vector.multi_reduction <maximumf>, %44, %cst_18 [2] : vector<2x8x8xf32> to vector<2x8xf32>
    %46 = vector.shape_cast %45 : vector<2x8xf32> to vector<2x8x1xf32>
    %47 = vector.broadcast %46 : vector<2x8x1xf32> to vector<2x8x8xf32>
    %48 = arith.subf %44, %47 : vector<2x8x8xf32>
    %49 = math.exp %48 : vector<2x8x8xf32>
    %cst_19 = arith.constant dense<0.000000e+00> : vector<2x8xf32>
    %50 = vector.multi_reduction <add>, %49, %cst_19 [2] : vector<2x8x8xf32> to vector<2x8xf32>
    %51 = vector.shape_cast %50 : vector<2x8xf32> to vector<2x8x1xf32>
    %52 = tpu.reciprocal %51 {approx = true} : vector<2x8x1xf32> -> vector<2x8x1xf32>
    %53 = vector.broadcast %52 : vector<2x8x1xf32> to vector<2x8x8xf32>
    %54 = arith.mulf %49, %53 : vector<2x8x8xf32>
    "tpu.trace_start"() <{level = 10 : i32, message = "bqk,bkd->bqd"}> : () -> ()
    %cst_20 = arith.constant dense<0.000000e+00> : vector<2x8x8xf32>
    %55 = tpu.matmul %54, %41, %cst_20 {dimension_numbers = #tpu.dot_dimension_numbers<[2], [1], [1], [2], [0, 0, 0, 1, 1, 2], [0], [0]>} : vector<2x8x8xf32>, vector<2x8x8xf32>, vector<2x8x8xf32> -> vector<2x8x8xf32>
    "tpu.trace_stop"() : () -> ()
    %c0_21 = arith.constant 0 : index
    %c0_22 = arith.constant 0 : index
    %c0_23 = arith.constant 0 : index
    %56 = vector.load %arg18[%c0_21, %c0_22, %c0_23] : memref<2x8x32xf32, #tpu.memory_space<vmem>>, vector<2x8x8xf32>
    tpu.vector_store %arg18[%c0_21, %c0_22, %c0_23], %55 {strides = array<i32>} : memref<2x8x32xf32, #tpu.memory_space<vmem>>, vector<2x8x8xf32>,
    %57 = vector.extract_strided_slice %34 {offsets = [0, 0, 8], sizes = [2, 8, 8], strides = [1, 1, 1]} : vector<2x8x32xf32> to vector<2x8x8xf32>
    %58 = vector.extract_strided_slice %36 {offsets = [0, 0, 8], sizes = [2, 8, 8], strides = [1, 1, 1]} : vector<2x8x32xf32> to vector<2x8x8xf32>
    %59 = vector.extract_strided_slice %38 {offsets = [0, 0, 8], sizes = [2, 8, 8], strides = [1, 1, 1]} : vector<2x8x32xf32> to vector<2x8x8xf32>
    "tpu.trace_start"() <{level = 10 : i32, message = "bqd,bkd->bqk"}> : () -> ()
    %cst_24 = arith.constant dense<0.000000e+00> : vector<2x8x8xf32>
    %60 = tpu.matmul %57, %58, %cst_24 {dimension_numbers = #tpu.dot_dimension_numbers<[2], [2], [1], [1], [0, 0, 0, 1, 1, 1], [0], [0]>} : vector<2x8x8xf32>, vector<2x8x8xf32>, vector<2x8x8xf32> -> vector<2x8x8xf32>
    "tpu.trace_stop"() : () -> ()
    %cst_25 = arith.constant 0.353553385 : f32
    %61 = vector.broadcast %cst_25 : f32 to vector<2x8x8xf32>
    %62 = arith.mulf %60, %61 : vector<2x8x8xf32>
    %cst_26 = arith.constant dense<0xFF800000> : vector<2x8xf32>
    %63 = vector.multi_reduction <maximumf>, %62, %cst_26 [2] : vector<2x8x8xf32> to vector<2x8xf32>
    %64 = vector.shape_cast %63 : vector<2x8xf32> to vector<2x8x1xf32>
    %65 = vector.broadcast %64 : vector<2x8x1xf32> to vector<2x8x8xf32>
    %66 = arith.subf %62, %65 : vector<2x8x8xf32>
    %67 = math.exp %66 : vector<2x8x8xf32>
    %cst_27 = arith.constant dense<0.000000e+00> : vector<2x8xf32>
    %68 = vector.multi_reduction <add>, %67, %cst_27 [2] : vector<2x8x8xf32> to vector<2x8xf32>
    %69 = vector.shape_cast %68 : vector<2x8xf32> to vector<2x8x1xf32>
    %70 = tpu.reciprocal %69 {approx = true} : vector<2x8x1xf32> -> vector<2x8x1xf32>
    %71 = vector.broadcast %70 : vector<2x8x1xf32> to vector<2x8x8xf32>
    %72 = arith.mulf %67, %71 : vector<2x8x8xf32>
    "tpu.trace_start"() <{level = 10 : i32, message = "bqk,bkd->bqd"}> : () -> ()
    %cst_28 = arith.constant dense<0.000000e+00> : vector<2x8x8xf32>
    %73 = tpu.matmul %72, %59, %cst_28 {dimension_numbers = #tpu.dot_dimension_numbers<[2], [1], [1], [2], [0, 0, 0, 1, 1, 2], [0], [0]>} : vector<2x8x8xf32>, vector<2x8x8xf32>, vector<2x8x8xf32> -> vector<2x8x8xf32>
    "tpu.trace_stop"() : () -> ()
    %c0_29 = arith.constant 0 : index
    %c0_30 = arith.constant 0 : index
    %c8 = arith.constant 8 : index
    %74 = vector.load %arg18[%c0_29, %c0_30, %c8] : memref<2x8x32xf32, #tpu.memory_space<vmem>>, vector<2x8x8xf32>
    tpu.vector_store %arg18[%c0_29, %c0_30, %c8], %73 {strides = array<i32>} : memref<2x8x32xf32, #tpu.memory_space<vmem>>, vector<2x8x8xf32>,
    %75 = vector.extract_strided_slice %34 {offsets = [0, 0, 16], sizes = [2, 8, 8], strides = [1, 1, 1]} : vector<2x8x32xf32> to vector<2x8x8xf32>
    %76 = vector.extract_strided_slice %36 {offsets = [0, 0, 16], sizes = [2, 8, 8], strides = [1, 1, 1]} : vector<2x8x32xf32> to vector<2x8x8xf32>
    %77 = vector.extract_strided_slice %38 {offsets = [0, 0, 16], sizes = [2, 8, 8], strides = [1, 1, 1]} : vector<2x8x32xf32> to vector<2x8x8xf32>
    "tpu.trace_start"() <{level = 10 : i32, message = "bqd,bkd->bqk"}> : () -> ()
    %cst_31 = arith.constant dense<0.000000e+00> : vector<2x8x8xf32>
    %78 = tpu.matmul %75, %76, %cst_31 {dimension_numbers = #tpu.dot_dimension_numbers<[2], [2], [1], [1], [0, 0, 0, 1, 1, 1], [0], [0]>} : vector<2x8x8xf32>, vector<2x8x8xf32>, vector<2x8x8xf32> -> vector<2x8x8xf32>
    "tpu.trace_stop"() : () -> ()
    %cst_32 = arith.constant 0.353553385 : f32
    %79 = vector.broadcast %cst_32 : f32 to vector<2x8x8xf32>
    %80 = arith.mulf %78, %79 : vector<2x8x8xf32>
    %cst_33 = arith.constant dense<0xFF800000> : vector<2x8xf32>
    %81 = vector.multi_reduction <maximumf>, %80, %cst_33 [2] : vector<2x8x8xf32> to vector<2x8xf32>
    %82 = vector.shape_cast %81 : vector<2x8xf32> to vector<2x8x1xf32>
    %83 = vector.broadcast %82 : vector<2x8x1xf32> to vector<2x8x8xf32>
    %84 = arith.subf %80, %83 : vector<2x8x8xf32>
    %85 = math.exp %84 : vector<2x8x8xf32>
    %cst_34 = arith.constant dense<0.000000e+00> : vector<2x8xf32>
    %86 = vector.multi_reduction <add>, %85, %cst_34 [2] : vector<2x8x8xf32> to vector<2x8xf32>
    %87 = vector.shape_cast %86 : vector<2x8xf32> to vector<2x8x1xf32>
    %88 = tpu.reciprocal %87 {approx = true} : vector<2x8x1xf32> -> vector<2x8x1xf32>
    %89 = vector.broadcast %88 : vector<2x8x1xf32> to vector<2x8x8xf32>
    %90 = arith.mulf %85, %89 : vector<2x8x8xf32>
    "tpu.trace_start"() <{level = 10 : i32, message = "bqk,bkd->bqd"}> : () -> ()
    %cst_35 = arith.constant dense<0.000000e+00> : vector<2x8x8xf32>
    %91 = tpu.matmul %90, %77, %cst_35 {dimension_numbers = #tpu.dot_dimension_numbers<[2], [1], [1], [2], [0, 0, 0, 1, 1, 2], [0], [0]>} : vector<2x8x8xf32>, vector<2x8x8xf32>, vector<2x8x8xf32> -> vector<2x8x8xf32>
    "tpu.trace_stop"() : () -> ()
    %c0_36 = arith.constant 0 : index
    %c0_37 = arith.constant 0 : index
    %c16 = arith.constant 16 : index
    %92 = vector.load %arg18[%c0_36, %c0_37, %c16] : memref<2x8x32xf32, #tpu.memory_space<vmem>>, vector<2x8x8xf32>
    tpu.vector_store %arg18[%c0_36, %c0_37, %c16], %91 {strides = array<i32>} : memref<2x8x32xf32, #tpu.memory_space<vmem>>, vector<2x8x8xf32>,
    %93 = vector.extract_strided_slice %34 {offsets = [0, 0, 24], sizes = [2, 8, 8], strides = [1, 1, 1]} : vector<2x8x32xf32> to vector<2x8x8xf32>
    %94 = vector.extract_strided_slice %36 {offsets = [0, 0, 24], sizes = [2, 8, 8], strides = [1, 1, 1]} : vector<2x8x32xf32> to vector<2x8x8xf32>
    %95 = vector.extract_strided_slice %38 {offsets = [0, 0, 24], sizes = [2, 8, 8], strides = [1, 1, 1]} : vector<2x8x32xf32> to vector<2x8x8xf32>
    "tpu.trace_start"() <{level = 10 : i32, message = "bqd,bkd->bqk"}> : () -> ()
    %cst_38 = arith.constant dense<0.000000e+00> : vector<2x8x8xf32>
    %96 = tpu.matmul %93, %94, %cst_38 {dimension_numbers = #tpu.dot_dimension_numbers<[2], [2], [1], [1], [0, 0, 0, 1, 1, 1], [0], [0]>} : vector<2x8x8xf32>, vector<2x8x8xf32>, vector<2x8x8xf32> -> vector<2x8x8xf32>
    "tpu.trace_stop"() : () -> ()
    %cst_39 = arith.constant 0.353553385 : f32
    %97 = vector.broadcast %cst_39 : f32 to vector<2x8x8xf32>
    %98 = arith.mulf %96, %97 : vector<2x8x8xf32>
    %cst_40 = arith.constant dense<0xFF800000> : vector<2x8xf32>
    %99 = vector.multi_reduction <maximumf>, %98, %cst_40 [2] : vector<2x8x8xf32> to vector<2x8xf32>
    %100 = vector.shape_cast %99 : vector<2x8xf32> to vector<2x8x1xf32>
    %101 = vector.broadcast %100 : vector<2x8x1xf32> to vector<2x8x8xf32>
    %102 = arith.subf %98, %101 : vector<2x8x8xf32>
    %103 = math.exp %102 : vector<2x8x8xf32>
    %cst_41 = arith.constant dense<0.000000e+00> : vector<2x8xf32>
    %104 = vector.multi_reduction <add>, %103, %cst_41 [2] : vector<2x8x8xf32> to vector<2x8xf32>
    %105 = vector.shape_cast %104 : vector<2x8xf32> to vector<2x8x1xf32>
    %106 = tpu.reciprocal %105 {approx = true} : vector<2x8x1xf32> -> vector<2x8x1xf32>
    %107 = vector.broadcast %106 : vector<2x8x1xf32> to vector<2x8x8xf32>
    %108 = arith.mulf %103, %107 : vector<2x8x8xf32>
    "tpu.trace_start"() <{level = 10 : i32, message = "bqk,bkd->bqd"}> : () -> ()
    %cst_42 = arith.constant dense<0.000000e+00> : vector<2x8x8xf32>
    %109 = tpu.matmul %108, %95, %cst_42 {dimension_numbers = #tpu.dot_dimension_numbers<[2], [1], [1], [2], [0, 0, 0, 1, 1, 2], [0], [0]>} : vector<2x8x8xf32>, vector<2x8x8xf32>, vector<2x8x8xf32> -> vector<2x8x8xf32>
    "tpu.trace_stop"() : () -> ()
    %c0_43 = arith.constant 0 : index
    %c0_44 = arith.constant 0 : index
    %c24 = arith.constant 24 : index
    %110 = vector.load %arg18[%c0_43, %c0_44, %c24] : memref<2x8x32xf32, #tpu.memory_space<vmem>>, vector<2x8x8xf32>
    tpu.vector_store %arg18[%c0_43, %c0_44, %c24], %109 {strides = array<i32>} : memref<2x8x32xf32, #tpu.memory_space<vmem>>, vector<2x8x8xf32>,
    %c0_45 = arith.constant 0 : index
    %c0_46 = arith.constant 0 : index
    %c0_47 = arith.constant 0 : index
    %111 = vector.load %arg18[%c0_45, %c0_46, %c0_47] : memref<2x8x32xf32, #tpu.memory_space<vmem>>, vector<2x8x32xf32>
    %112 = vector.shape_cast %111 : vector<2x8x32xf32> to vector<16x32xf32>
    %113 = arith.truncf %112 : vector<16x32xf32> to vector<16x32xbf16>
    %c0_48 = arith.constant 0 : index
    %c0_49 = arith.constant 0 : index
    %c0_50 = arith.constant 0 : index
    %114 = vector.load %arg5[%c0_48, %c0_49, %c0_50] : memref<4x32x32xbf16, #tpu.memory_space<vmem>>, vector<1x32x32xbf16>
    %115 = vector.shape_cast %114 : vector<1x32x32xbf16> to vector<32x32xbf16>
    %cst_51 = arith.constant dense<0.000000e+00> : vector<16x32xf32>
    %116 = tpu.matmul %113, %115, %cst_51 {dimension_numbers = #tpu.dot_dimension_numbers<[1], [0], [0], [1], [0, 0, 1, 1], [], []>} : vector<16x32xbf16>, vector<32x32xbf16>, vector<16x32xf32> -> vector<16x32xf32>
    %c0_52 = arith.constant 0 : index
    %c0_53 = arith.constant 0 : index
    %c0_54 = arith.constant 0 : index
    %117 = vector.load %arg6[%c0_52, %c0_53, %c0_54] : memref<4x1x32xf32, #tpu.memory_space<vmem>>, vector<1x1x32xf32>
    %118 = vector.shape_cast %117 : vector<1x1x32xf32> to vector<1x32xf32>
    %119 = vector.broadcast %118 : vector<1x32xf32> to vector<16x32xf32>
    %120 = arith.addf %116, %119 : vector<16x32xf32>
    %121 = arith.addf %0, %120 : vector<16x32xf32>
    %c0_55 = arith.constant 0 : index
    %c0_56 = arith.constant 0 : index
    %c0_57 = arith.constant 0 : index
    %122 = vector.load %arg7[%c0_55, %c0_56, %c0_57] : memref<4x1x32xf32, #tpu.memory_space<vmem>>, vector<1x1x32xf32>
    %123 = vector.shape_cast %122 : vector<1x1x32xf32> to vector<1x32xf32>
    %c0_58 = arith.constant 0 : index
    %c0_59 = arith.constant 0 : index
    %c0_60 = arith.constant 0 : index
    %124 = vector.load %arg8[%c0_58, %c0_59, %c0_60] : memref<4x1x32xf32, #tpu.memory_space<vmem>>, vector<1x1x32xf32>
    %125 = vector.shape_cast %124 : vector<1x1x32xf32> to vector<1x32xf32>
    %cst_61 = arith.constant dense<0.000000e+00> : vector<16xf32>
    %126 = vector.multi_reduction <add>, %121, %cst_61 [1] : vector<16x32xf32> to vector<16xf32>
    %127 = vector.shape_cast %126 : vector<16xf32> to vector<16x1xf32>
    %cst_62 = arith.constant 3.200000e+01 : f32
    %128 = vector.broadcast %cst_62 : f32 to vector<16x1xf32>
    %129 = arith.divf %127, %128 : vector<16x1xf32>
    %130 = arith.mulf %121, %121 : vector<16x32xf32>
    %cst_63 = arith.constant dense<0.000000e+00> : vector<16xf32>
    %131 = vector.multi_reduction <add>, %130, %cst_63 [1] : vector<16x32xf32> to vector<16xf32>
    %132 = vector.shape_cast %131 : vector<16xf32> to vector<16x1xf32>
    %cst_64 = arith.constant 3.200000e+01 : f32
    %133 = vector.broadcast %cst_64 : f32 to vector<16x1xf32>
    %134 = arith.divf %132, %133 : vector<16x1xf32>
    %135 = arith.mulf %129, %129 : vector<16x1xf32>
    %136 = arith.subf %134, %135 : vector<16x1xf32>
    %cst_65 = arith.constant 0.000000e+00 : f32
    %137 = vector.broadcast %cst_65 : f32 to vector<16x1xf32>
    %138 = arith.maximumf %136, %137 : vector<16x1xf32>
    %139 = vector.broadcast %129 : vector<16x1xf32> to vector<16x32xf32>
    %140 = arith.subf %121, %139 : vector<16x32xf32>
    %cst_66 = arith.constant 9.99999974E-6 : f32
    %141 = vector.broadcast %cst_66 : f32 to vector<16x1xf32>
    %142 = arith.addf %138, %141 : vector<16x1xf32>
    %143 = math.rsqrt %142 : vector<16x1xf32>
    %144 = vector.broadcast %143 : vector<16x1xf32> to vector<16x32xf32>
    %145 = arith.mulf %140, %144 : vector<16x32xf32>
    %146 = vector.broadcast %123 : vector<1x32xf32> to vector<16x32xf32>
    %147 = arith.mulf %145, %146 : vector<16x32xf32>
    %148 = vector.broadcast %125 : vector<1x32xf32> to vector<16x32xf32>
    %149 = arith.addf %147, %148 : vector<16x32xf32>
    %150 = arith.truncf %149 : vector<16x32xf32> to vector<16x32xbf16>
    %c0_67 = arith.constant 0 : index
    %c0_68 = arith.constant 0 : index
    %c0_69 = arith.constant 0 : index
    %151 = vector.load %arg9[%c0_67, %c0_68, %c0_69] : memref<4x32x128xbf16, #tpu.memory_space<vmem>>, vector<1x32x128xbf16>
    %152 = vector.shape_cast %151 : vector<1x32x128xbf16> to vector<32x128xbf16>
    %cst_70 = arith.constant dense<0.000000e+00> : vector<16x128xf32>
    %153 = tpu.matmul %150, %152, %cst_70 {dimension_numbers = #tpu.dot_dimension_numbers<[1], [0], [0], [1], [0, 0, 1, 1], [], []>} : vector<16x32xbf16>, vector<32x128xbf16>, vector<16x128xf32> -> vector<16x128xf32>
    %c0_71 = arith.constant 0 : index
    %c0_72 = arith.constant 0 : index
    %c0_73 = arith.constant 0 : index
    %154 = vector.load %arg10[%c0_71, %c0_72, %c0_73] : memref<4x1x128xf32, #tpu.memory_space<vmem>>, vector<1x1x128xf32>
    %155 = vector.shape_cast %154 : vector<1x1x128xf32> to vector<1x128xf32>
    %156 = vector.broadcast %155 : vector<1x128xf32> to vector<16x128xf32>
    %157 = arith.addf %153, %156 : vector<16x128xf32>
    %158 = arith.mulf %157, %157 : vector<16x128xf32>
    %159 = arith.mulf %157, %158 : vector<16x128xf32>
    %cst_74 = arith.constant 4.471500e-02 : f32
    %160 = vector.broadcast %cst_74 : f32 to vector<16x128xf32>
    %161 = arith.mulf %160, %159 : vector<16x128xf32>
    %162 = arith.addf %157, %161 : vector<16x128xf32>
    %cst_75 = arith.constant 0.797884583 : f32
    %163 = vector.broadcast %cst_75 : f32 to vector<16x128xf32>
    %164 = arith.mulf %163, %162 : vector<16x128xf32>
    %165 = math.tanh %164 : vector<16x128xf32>
    %cst_76 = arith.constant 1.000000e+00 : f32
    %166 = vector.broadcast %cst_76 : f32 to vector<16x128xf32>
    %167 = arith.addf %166, %165 : vector<16x128xf32>
    %cst_77 = arith.constant 5.000000e-01 : f32
    %168 = vector.broadcast %cst_77 : f32 to vector<16x128xf32>
    %169 = arith.mulf %168, %167 : vector<16x128xf32>
    %170 = arith.mulf %157, %169 : vector<16x128xf32>
    %171 = arith.truncf %170 : vector<16x128xf32> to vector<16x128xbf16>
    %c0_78 = arith.constant 0 : index
    %c0_79 = arith.constant 0 : index
    %c0_80 = arith.constant 0 : index
    %172 = vector.load %arg11[%c0_78, %c0_79, %c0_80] : memref<4x128x32xbf16, #tpu.memory_space<vmem>>, vector<1x128x32xbf16>
    %173 = vector.shape_cast %172 : vector<1x128x32xbf16> to vector<128x32xbf16>
    %cst_81 = arith.constant dense<0.000000e+00> : vector<16x32xf32>
    %174 = tpu.matmul %171, %173, %cst_81 {dimension_numbers = #tpu.dot_dimension_numbers<[1], [0], [0], [1], [0, 0, 1, 1], [], []>} : vector<16x128xbf16>, vector<128x32xbf16>, vector<16x32xf32> -> vector<16x32xf32>
    %c0_82 = arith.constant 0 : index
    %c0_83 = arith.constant 0 : index
    %c0_84 = arith.constant 0 : index
    %175 = vector.load %arg12[%c0_82, %c0_83, %c0_84] : memref<4x1x32xf32, #tpu.memory_space<vmem>>, vector<1x1x32xf32>
    %176 = vector.shape_cast %175 : vector<1x1x32xf32> to vector<1x32xf32>
    %177 = vector.broadcast %176 : vector<1x32xf32> to vector<16x32xf32>
    %178 = arith.addf %174, %177 : vector<16x32xf32>
    %179 = arith.addf %121, %178 : vector<16x32xf32>
    %c1 = arith.constant 1 : index
    %c0_85 = arith.constant 0 : index
    %c0_86 = arith.constant 0 : index
    %180 = vector.load %arg2[%c1, %c0_85, %c0_86] : memref<4x1x32xf32, #tpu.memory_space<vmem>>, vector<1x1x32xf32>
    %181 = vector.shape_cast %180 : vector<1x1x32xf32> to vector<1x32xf32>
    %c1_87 = arith.constant 1 : index
    %c0_88 = arith.constant 0 : index
    %c0_89 = arith.constant 0 : index
    %182 = vector.load %arg3[%c1_87, %c0_88, %c0_89] : memref<4x1x32xf32, #tpu.memory_space<vmem>>, vector<1x1x32xf32>
    %183 = vector.shape_cast %182 : vector<1x1x32xf32> to vector<1x32xf32>
    %cst_90 = arith.constant dense<0.000000e+00> : vector<16xf32>
    %184 = vector.multi_reduction <add>, %179, %cst_90 [1] : vector<16x32xf32> to vector<16xf32>
    %185 = vector.shape_cast %184 : vector<16xf32> to vector<16x1xf32>
    %cst_91 = arith.constant 3.200000e+01 : f32
    %186 = vector.broadcast %cst_91 : f32 to vector<16x1xf32>
    %187 = arith.divf %185, %186 : vector<16x1xf32>
    %188 = arith.mulf %179, %179 : vector<16x32xf32>
    %cst_92 = arith.constant dense<0.000000e+00> : vector<16xf32>
    %189 = vector.multi_reduction <add>, %188, %cst_92 [1] : vector<16x32xf32> to vector<16xf32>
    %190 = vector.shape_cast %189 : vector<16xf32> to vector<16x1xf32>
    %cst_93 = arith.constant 3.200000e+01 : f32
    %191 = vector.broadcast %cst_93 : f32 to vector<16x1xf32>
    %192 = arith.divf %190, %191 : vector<16x1xf32>
    %193 = arith.mulf %187, %187 : vector<16x1xf32>
    %194 = arith.subf %192, %193 : vector<16x1xf32>
    %cst_94 = arith.constant 0.000000e+00 : f32
    %195 = vector.broadcast %cst_94 : f32 to vector<16x1xf32>
    %196 = arith.maximumf %194, %195 : vector<16x1xf32>
    %197 = vector.broadcast %187 : vector<16x1xf32> to vector<16x32xf32>
    %198 = arith.subf %179, %197 : vector<16x32xf32>
    %cst_95 = arith.constant 9.99999974E-6 : f32
    %199 = vector.broadcast %cst_95 : f32 to vector<16x1xf32>
    %200 = arith.addf %196, %199 : vector<16x1xf32>
    %201 = math.rsqrt %200 : vector<16x1xf32>
    %202 = vector.broadcast %201 : vector<16x1xf32> to vector<16x32xf32>
    %203 = arith.mulf %198, %202 : vector<16x32xf32>
    %204 = vector.broadcast %181 : vector<1x32xf32> to vector<16x32xf32>
    %205 = arith.mulf %203, %204 : vector<16x32xf32>
    %206 = vector.broadcast %183 : vector<1x32xf32> to vector<16x32xf32>
    %207 = arith.addf %205, %206 : vector<16x32xf32>
    %208 = arith.truncf %207 : vector<16x32xf32> to vector<16x32xbf16>
    %c1_96 = arith.constant 1 : index
    %c0_97 = arith.constant 0 : index
    %c0_98 = arith.constant 0 : index
    %209 = vector.load %arg4[%c1_96, %c0_97, %c0_98] : memref<4x32x96xbf16, #tpu.memory_space<vmem>>, vector<1x32x96xbf16>
    %210 = vector.shape_cast %209 : vector<1x32x96xbf16> to vector<32x96xbf16>
    %cst_99 = arith.constant dense<0.000000e+00> : vector<16x96xf32>
    %211 = tpu.matmul %208, %210, %cst_99 {dimension_numbers = #tpu.dot_dimension_numbers<[1], [0], [0], [1], [0, 0, 1, 1], [], []>} : vector<16x32xbf16>, vector<32x96xbf16>, vector<16x96xf32> -> vector<16x96xf32>
    %212 = vector.extract_strided_slice %211 {offsets = [0, 0], sizes = [16, 32], strides = [1, 1]} : vector<16x96xf32> to vector<16x32xf32>
    %213 = vector.shape_cast %212 : vector<16x32xf32> to vector<2x8x32xf32>
    %214 = vector.extract_strided_slice %211 {offsets = [0, 32], sizes = [16, 32], strides = [1, 1]} : vector<16x96xf32> to vector<16x32xf32>
    %215 = vector.shape_cast %214 : vector<16x32xf32> to vector<2x8x32xf32>
    %216 = vector.extract_strided_slice %211 {offsets = [0, 64], sizes = [16, 32], strides = [1, 1]} : vector<16x96xf32> to vector<16x32xf32>
    %217 = vector.shape_cast %216 : vector<16x32xf32> to vector<2x8x32xf32>
    %218 = vector.extract_strided_slice %213 {offsets = [0, 0, 0], sizes = [2, 8, 8], strides = [1, 1, 1]} : vector<2x8x32xf32> to vector<2x8x8xf32>
    %219 = vector.extract_strided_slice %215 {offsets = [0, 0, 0], sizes = [2, 8, 8], strides = [1, 1, 1]} : vector<2x8x32xf32> to vector<2x8x8xf32>
    %220 = vector.extract_strided_slice %217 {offsets = [0, 0, 0], sizes = [2, 8, 8], strides = [1, 1, 1]} : vector<2x8x32xf32> to vector<2x8x8xf32>
    "tpu.trace_start"() <{level = 10 : i32, message = "bqd,bkd->bqk"}> : () -> ()
    %cst_100 = arith.constant dense<0.000000e+00> : vector<2x8x8xf32>
    %221 = tpu.matmul %218, %219, %cst_100 {dimension_numbers = #tpu.dot_dimension_numbers<[2], [2], [1], [1], [0, 0, 0, 1, 1, 1], [0], [0]>} : vector<2x8x8xf32>, vector<2x8x8xf32>, vector<2x8x8xf32> -> vector<2x8x8xf32>
    "tpu.trace_stop"() : () -> ()
    %cst_101 = arith.constant 0.353553385 : f32
    %222 = vector.broadcast %cst_101 : f32 to vector<2x8x8xf32>
    %223 = arith.mulf %221, %222 : vector<2x8x8xf32>
    %cst_102 = arith.constant dense<0xFF800000> : vector<2x8xf32>
    %224 = vector.multi_reduction <maximumf>, %223, %cst_102 [2] : vector<2x8x8xf32> to vector<2x8xf32>
    %225 = vector.shape_cast %224 : vector<2x8xf32> to vector<2x8x1xf32>
    %226 = vector.broadcast %225 : vector<2x8x1xf32> to vector<2x8x8xf32>
    %227 = arith.subf %223, %226 : vector<2x8x8xf32>
    %228 = math.exp %227 : vector<2x8x8xf32>
    %cst_103 = arith.constant dense<0.000000e+00> : vector<2x8xf32>
    %229 = vector.multi_reduction <add>, %228, %cst_103 [2] : vector<2x8x8xf32> to vector<2x8xf32>
    %230 = vector.shape_cast %229 : vector<2x8xf32> to vector<2x8x1xf32>
    %231 = tpu.reciprocal %230 {approx = true} : vector<2x8x1xf32> -> vector<2x8x1xf32>
    %232 = vector.broadcast %231 : vector<2x8x1xf32> to vector<2x8x8xf32>
    %233 = arith.mulf %228, %232 : vector<2x8x8xf32>
    "tpu.trace_start"() <{level = 10 : i32, message = "bqk,bkd->bqd"}> : () -> ()
    %cst_104 = arith.constant dense<0.000000e+00> : vector<2x8x8xf32>
    %234 = tpu.matmul %233, %220, %cst_104 {dimension_numbers = #tpu.dot_dimension_numbers<[2], [1], [1], [2], [0, 0, 0, 1, 1, 2], [0], [0]>} : vector<2x8x8xf32>, vector<2x8x8xf32>, vector<2x8x8xf32> -> vector<2x8x8xf32>
    "tpu.trace_stop"() : () -> ()
    %c0_105 = arith.constant 0 : index
    %c0_106 = arith.constant 0 : index
    %c0_107 = arith.constant 0 : index
    %235 = vector.load %arg18[%c0_105, %c0_106, %c0_107] : memref<2x8x32xf32, #tpu.memory_space<vmem>>, vector<2x8x8xf32>
    tpu.vector_store %arg18[%c0_105, %c0_106, %c0_107], %234 {strides = array<i32>} : memref<2x8x32xf32, #tpu.memory_space<vmem>>, vector<2x8x8xf32>,
    %236 = vector.extract_strided_slice %213 {offsets = [0, 0, 8], sizes = [2, 8, 8], strides = [1, 1, 1]} : vector<2x8x32xf32> to vector<2x8x8xf32>
    %237 = vector.extract_strided_slice %215 {offsets = [0, 0, 8], sizes = [2, 8, 8], strides = [1, 1, 1]} : vector<2x8x32xf32> to vector<2x8x8xf32>
    %238 = vector.extract_strided_slice %217 {offsets = [0, 0, 8], sizes = [2, 8, 8], strides = [1, 1, 1]} : vector<2x8x32xf32> to vector<2x8x8xf32>
    "tpu.trace_start"() <{level = 10 : i32, message = "bqd,bkd->bqk"}> : () -> ()
    %cst_108 = arith.constant dense<0.000000e+00> : vector<2x8x8xf32>
    %239 = tpu.matmul %236, %237, %cst_108 {dimension_numbers = #tpu.dot_dimension_numbers<[2], [2], [1], [1], [0, 0, 0, 1, 1, 1], [0], [0]>} : vector<2x8x8xf32>, vector<2x8x8xf32>, vector<2x8x8xf32> -> vector<2x8x8xf32>
    "tpu.trace_stop"() : () -> ()
    %cst_109 = arith.constant 0.353553385 : f32
    %240 = vector.broadcast %cst_109 : f32 to vector<2x8x8xf32>
    %241 = arith.mulf %239, %240 : vector<2x8x8xf32>
    %cst_110 = arith.constant dense<0xFF800000> : vector<2x8xf32>
    %242 = vector.multi_reduction <maximumf>, %241, %cst_110 [2] : vector<2x8x8xf32> to vector<2x8xf32>
    %243 = vector.shape_cast %242 : vector<2x8xf32> to vector<2x8x1xf32>
    %244 = vector.broadcast %243 : vector<2x8x1xf32> to vector<2x8x8xf32>
    %245 = arith.subf %241, %244 : vector<2x8x8xf32>
    %246 = math.exp %245 : vector<2x8x8xf32>
    %cst_111 = arith.constant dense<0.000000e+00> : vector<2x8xf32>
    %247 = vector.multi_reduction <add>, %246, %cst_111 [2] : vector<2x8x8xf32> to vector<2x8xf32>
    %248 = vector.shape_cast %247 : vector<2x8xf32> to vector<2x8x1xf32>
    %249 = tpu.reciprocal %248 {approx = true} : vector<2x8x1xf32> -> vector<2x8x1xf32>
    %250 = vector.broadcast %249 : vector<2x8x1xf32> to vector<2x8x8xf32>
    %251 = arith.mulf %246, %250 : vector<2x8x8xf32>
    "tpu.trace_start"() <{level = 10 : i32, message = "bqk,bkd->bqd"}> : () -> ()
    %cst_112 = arith.constant dense<0.000000e+00> : vector<2x8x8xf32>
    %252 = tpu.matmul %251, %238, %cst_112 {dimension_numbers = #tpu.dot_dimension_numbers<[2], [1], [1], [2], [0, 0, 0, 1, 1, 2], [0], [0]>} : vector<2x8x8xf32>, vector<2x8x8xf32>, vector<2x8x8xf32> -> vector<2x8x8xf32>
    "tpu.trace_stop"() : () -> ()
    %c0_113 = arith.constant 0 : index
    %c0_114 = arith.constant 0 : index
    %c8_115 = arith.constant 8 : index
    %253 = vector.load %arg18[%c0_113, %c0_114, %c8_115] : memref<2x8x32xf32, #tpu.memory_space<vmem>>, vector<2x8x8xf32>
    tpu.vector_store %arg18[%c0_113, %c0_114, %c8_115], %252 {strides = array<i32>} : memref<2x8x32xf32, #tpu.memory_space<vmem>>, vector<2x8x8xf32>,
    %254 = vector.extract_strided_slice %213 {offsets = [0, 0, 16], sizes = [2, 8, 8], strides = [1, 1, 1]} : vector<2x8x32xf32> to vector<2x8x8xf32>
    %255 = vector.extract_strided_slice %215 {offsets = [0, 0, 16], sizes = [2, 8, 8], strides = [1, 1, 1]} : vector<2x8x32xf32> to vector<2x8x8xf32>
    %256 = vector.extract_strided_slice %217 {offsets = [0, 0, 16], sizes = [2, 8, 8], strides = [1, 1, 1]} : vector<2x8x32xf32> to vector<2x8x8xf32>
    "tpu.trace_start"() <{level = 10 : i32, message = "bqd,bkd->bqk"}> : () -> ()
    %cst_116 = arith.constant dense<0.000000e+00> : vector<2x8x8xf32>
    %257 = tpu.matmul %254, %255, %cst_116 {dimension_numbers = #tpu.dot_dimension_numbers<[2], [2], [1], [1], [0, 0, 0, 1, 1, 1], [0], [0]>} : vector<2x8x8xf32>, vector<2x8x8xf32>, vector<2x8x8xf32> -> vector<2x8x8xf32>
    "tpu.trace_stop"() : () -> ()
    %cst_117 = arith.constant 0.353553385 : f32
    %258 = vector.broadcast %cst_117 : f32 to vector<2x8x8xf32>
    %259 = arith.mulf %257, %258 : vector<2x8x8xf32>
    %cst_118 = arith.constant dense<0xFF800000> : vector<2x8xf32>
    %260 = vector.multi_reduction <maximumf>, %259, %cst_118 [2] : vector<2x8x8xf32> to vector<2x8xf32>
    %261 = vector.shape_cast %260 : vector<2x8xf32> to vector<2x8x1xf32>
    %262 = vector.broadcast %261 : vector<2x8x1xf32> to vector<2x8x8xf32>
    %263 = arith.subf %259, %262 : vector<2x8x8xf32>
    %264 = math.exp %263 : vector<2x8x8xf32>
    %cst_119 = arith.constant dense<0.000000e+00> : vector<2x8xf32>
    %265 = vector.multi_reduction <add>, %264, %cst_119 [2] : vector<2x8x8xf32> to vector<2x8xf32>
    %266 = vector.shape_cast %265 : vector<2x8xf32> to vector<2x8x1xf32>
    %267 = tpu.reciprocal %266 {approx = true} : vector<2x8x1xf32> -> vector<2x8x1xf32>
    %268 = vector.broadcast %267 : vector<2x8x1xf32> to vector<2x8x8xf32>
    %269 = arith.mulf %264, %268 : vector<2x8x8xf32>
    "tpu.trace_start"() <{level = 10 : i32, message = "bqk,bkd->bqd"}> : () -> ()
    %cst_120 = arith.constant dense<0.000000e+00> : vector<2x8x8xf32>
    %270 = tpu.matmul %269, %256, %cst_120 {dimension_numbers = #tpu.dot_dimension_numbers<[2], [1], [1], [2], [0, 0, 0, 1, 1, 2], [0], [0]>} : vector<2x8x8xf32>, vector<2x8x8xf32>, vector<2x8x8xf32> -> vector<2x8x8xf32>
    "tpu.trace_stop"() : () -> ()
    %c0_121 = arith.constant 0 : index
    %c0_122 = arith.constant 0 : index
    %c16_123 = arith.constant 16 : index
    %271 = vector.load %arg18[%c0_121, %c0_122, %c16_123] : memref<2x8x32xf32, #tpu.memory_space<vmem>>, vector<2x8x8xf32>
    tpu.vector_store %arg18[%c0_121, %c0_122, %c16_123], %270 {strides = array<i32>} : memref<2x8x32xf32, #tpu.memory_space<vmem>>, vector<2x8x8xf32>,
    %272 = vector.extract_strided_slice %213 {offsets = [0, 0, 24], sizes = [2, 8, 8], strides = [1, 1, 1]} : vector<2x8x32xf32> to vector<2x8x8xf32>
    %273 = vector.extract_strided_slice %215 {offsets = [0, 0, 24], sizes = [2, 8, 8], strides = [1, 1, 1]} : vector<2x8x32xf32> to vector<2x8x8xf32>
    %274 = vector.extract_strided_slice %217 {offsets = [0, 0, 24], sizes = [2, 8, 8], strides = [1, 1, 1]} : vector<2x8x32xf32> to vector<2x8x8xf32>
    "tpu.trace_start"() <{level = 10 : i32, message = "bqd,bkd->bqk"}> : () -> ()
    %cst_124 = arith.constant dense<0.000000e+00> : vector<2x8x8xf32>
    %275 = tpu.matmul %272, %273, %cst_124 {dimension_numbers = #tpu.dot_dimension_numbers<[2], [2], [1], [1], [0, 0, 0, 1, 1, 1], [0], [0]>} : vector<2x8x8xf32>, vector<2x8x8xf32>, vector<2x8x8xf32> -> vector<2x8x8xf32>
    "tpu.trace_stop"() : () -> ()
    %cst_125 = arith.constant 0.353553385 : f32
    %276 = vector.broadcast %cst_125 : f32 to vector<2x8x8xf32>
    %277 = arith.mulf %275, %276 : vector<2x8x8xf32>
    %cst_126 = arith.constant dense<0xFF800000> : vector<2x8xf32>
    %278 = vector.multi_reduction <maximumf>, %277, %cst_126 [2] : vector<2x8x8xf32> to vector<2x8xf32>
    %279 = vector.shape_cast %278 : vector<2x8xf32> to vector<2x8x1xf32>
    %280 = vector.broadcast %279 : vector<2x8x1xf32> to vector<2x8x8xf32>
    %281 = arith.subf %277, %280 : vector<2x8x8xf32>
    %282 = math.exp %281 : vector<2x8x8xf32>
    %cst_127 = arith.constant dense<0.000000e+00> : vector<2x8xf32>
    %283 = vector.multi_reduction <add>, %282, %cst_127 [2] : vector<2x8x8xf32> to vector<2x8xf32>
    %284 = vector.shape_cast %283 : vector<2x8xf32> to vector<2x8x1xf32>
    %285 = tpu.reciprocal %284 {approx = true} : vector<2x8x1xf32> -> vector<2x8x1xf32>
    %286 = vector.broadcast %285 : vector<2x8x1xf32> to vector<2x8x8xf32>
    %287 = arith.mulf %282, %286 : vector<2x8x8xf32>
    "tpu.trace_start"() <{level = 10 : i32, message = "bqk,bkd->bqd"}> : () -> ()
    %cst_128 = arith.constant dense<0.000000e+00> : vector<2x8x8xf32>
    %288 = tpu.matmul %287, %274, %cst_128 {dimension_numbers = #tpu.dot_dimension_numbers<[2], [1], [1], [2], [0, 0, 0, 1, 1, 2], [0], [0]>} : vector<2x8x8xf32>, vector<2x8x8xf32>, vector<2x8x8xf32> -> vector<2x8x8xf32>
    "tpu.trace_stop"() : () -> ()
    %c0_129 = arith.constant 0 : index
    %c0_130 = arith.constant 0 : index
    %c24_131 = arith.constant 24 : index
    %289 = vector.load %arg18[%c0_129, %c0_130, %c24_131] : memref<2x8x32xf32, #tpu.memory_space<vmem>>, vector<2x8x8xf32>
    tpu.vector_store %arg18[%c0_129, %c0_130, %c24_131], %288 {strides = array<i32>} : memref<2x8x32xf32, #tpu.memory_space<vmem>>, vector<2x8x8xf32>,
    %c0_132 = arith.constant 0 : index
    %c0_133 = arith.constant 0 : index
    %c0_134 = arith.constant 0 : index
    %290 = vector.load %arg18[%c0_132, %c0_133, %c0_134] : memref<2x8x32xf32, #tpu.memory_space<vmem>>, vector<2x8x32xf32>
    %291 = vector.shape_cast %290 : vector<2x8x32xf32> to vector<16x32xf32>
    %292 = arith.truncf %291 : vector<16x32xf32> to vector<16x32xbf16>
    %c1_135 = arith.constant 1 : index
    %c0_136 = arith.constant 0 : index
    %c0_137 = arith.constant 0 : index
    %293 = vector.load %arg5[%c1_135, %c0_136, %c0_137] : memref<4x32x32xbf16, #tpu.memory_space<vmem>>, vector<1x32x32xbf16>
    %294 = vector.shape_cast %293 : vector<1x32x32xbf16> to vector<32x32xbf16>
    %cst_138 = arith.constant dense<0.000000e+00> : vector<16x32xf32>
    %295 = tpu.matmul %292, %294, %cst_138 {dimension_numbers = #tpu.dot_dimension_numbers<[1], [0], [0], [1], [0, 0, 1, 1], [], []>} : vector<16x32xbf16>, vector<32x32xbf16>, vector<16x32xf32> -> vector<16x32xf32>
    %c1_139 = arith.constant 1 : index
    %c0_140 = arith.constant 0 : index
    %c0_141 = arith.constant 0 : index
    %296 = vector.load %arg6[%c1_139, %c0_140, %c0_141] : memref<4x1x32xf32, #tpu.memory_space<vmem>>, vector<1x1x32xf32>
    %297 = vector.shape_cast %296 : vector<1x1x32xf32> to vector<1x32xf32>
    %298 = vector.broadcast %297 : vector<1x32xf32> to vector<16x32xf32>
    %299 = arith.addf %295, %298 : vector<16x32xf32>
    %300 = arith.addf %179, %299 : vector<16x32xf32>
    %c1_142 = arith.constant 1 : index
    %c0_143 = arith.constant 0 : index
    %c0_144 = arith.constant 0 : index
    %301 = vector.load %arg7[%c1_142, %c0_143, %c0_144] : memref<4x1x32xf32, #tpu.memory_space<vmem>>, vector<1x1x32xf32>
    %302 = vector.shape_cast %301 : vector<1x1x32xf32> to vector<1x32xf32>
    %c1_145 = arith.constant 1 : index
    %c0_146 = arith.constant 0 : index
    %c0_147 = arith.constant 0 : index
    %303 = vector.load %arg8[%c1_145, %c0_146, %c0_147] : memref<4x1x32xf32, #tpu.memory_space<vmem>>, vector<1x1x32xf32>
    %304 = vector.shape_cast %303 : vector<1x1x32xf32> to vector<1x32xf32>
    %cst_148 = arith.constant dense<0.000000e+00> : vector<16xf32>
    %305 = vector.multi_reduction <add>, %300, %cst_148 [1] : vector<16x32xf32> to vector<16xf32>
    %306 = vector.shape_cast %305 : vector<16xf32> to vector<16x1xf32>
    %cst_149 = arith.constant 3.200000e+01 : f32
    %307 = vector.broadcast %cst_149 : f32 to vector<16x1xf32>
    %308 = arith.divf %306, %307 : vector<16x1xf32>
    %309 = arith.mulf %300, %300 : vector<16x32xf32>
    %cst_150 = arith.constant dense<0.000000e+00> : vector<16xf32>
    %310 = vector.multi_reduction <add>, %309, %cst_150 [1] : vector<16x32xf32> to vector<16xf32>
    %311 = vector.shape_cast %310 : vector<16xf32> to vector<16x1xf32>
    %cst_151 = arith.constant 3.200000e+01 : f32
    %312 = vector.broadcast %cst_151 : f32 to vector<16x1xf32>
    %313 = arith.divf %311, %312 : vector<16x1xf32>
    %314 = arith.mulf %308, %308 : vector<16x1xf32>
    %315 = arith.subf %313, %314 : vector<16x1xf32>
    %cst_152 = arith.constant 0.000000e+00 : f32
    %316 = vector.broadcast %cst_152 : f32 to vector<16x1xf32>
    %317 = arith.maximumf %315, %316 : vector<16x1xf32>
    %318 = vector.broadcast %308 : vector<16x1xf32> to vector<16x32xf32>
    %319 = arith.subf %300, %318 : vector<16x32xf32>
    %cst_153 = arith.constant 9.99999974E-6 : f32
    %320 = vector.broadcast %cst_153 : f32 to vector<16x1xf32>
    %321 = arith.addf %317, %320 : vector<16x1xf32>
    %322 = math.rsqrt %321 : vector<16x1xf32>
    %323 = vector.broadcast %322 : vector<16x1xf32> to vector<16x32xf32>
    %324 = arith.mulf %319, %323 : vector<16x32xf32>
    %325 = vector.broadcast %302 : vector<1x32xf32> to vector<16x32xf32>
    %326 = arith.mulf %324, %325 : vector<16x32xf32>
    %327 = vector.broadcast %304 : vector<1x32xf32> to vector<16x32xf32>
    %328 = arith.addf %326, %327 : vector<16x32xf32>
    %329 = arith.truncf %328 : vector<16x32xf32> to vector<16x32xbf16>
    %c1_154 = arith.constant 1 : index
    %c0_155 = arith.constant 0 : index
    %c0_156 = arith.constant 0 : index
    %330 = vector.load %arg9[%c1_154, %c0_155, %c0_156] : memref<4x32x128xbf16, #tpu.memory_space<vmem>>, vector<1x32x128xbf16>
    %331 = vector.shape_cast %330 : vector<1x32x128xbf16> to vector<32x128xbf16>
    %cst_157 = arith.constant dense<0.000000e+00> : vector<16x128xf32>
    %332 = tpu.matmul %329, %331, %cst_157 {dimension_numbers = #tpu.dot_dimension_numbers<[1], [0], [0], [1], [0, 0, 1, 1], [], []>} : vector<16x32xbf16>, vector<32x128xbf16>, vector<16x128xf32> -> vector<16x128xf32>
    %c1_158 = arith.constant 1 : index
    %c0_159 = arith.constant 0 : index
    %c0_160 = arith.constant 0 : index
    %333 = vector.load %arg10[%c1_158, %c0_159, %c0_160] : memref<4x1x128xf32, #tpu.memory_space<vmem>>, vector<1x1x128xf32>
    %334 = vector.shape_cast %333 : vector<1x1x128xf32> to vector<1x128xf32>
    %335 = vector.broadcast %334 : vector<1x128xf32> to vector<16x128xf32>
    %336 = arith.addf %332, %335 : vector<16x128xf32>
    %337 = arith.mulf %336, %336 : vector<16x128xf32>
    %338 = arith.mulf %336, %337 : vector<16x128xf32>
    %cst_161 = arith.constant 4.471500e-02 : f32
    %339 = vector.broadcast %cst_161 : f32 to vector<16x128xf32>
    %340 = arith.mulf %339, %338 : vector<16x128xf32>
    %341 = arith.addf %336, %340 : vector<16x128xf32>
    %cst_162 = arith.constant 0.797884583 : f32
    %342 = vector.broadcast %cst_162 : f32 to vector<16x128xf32>
    %343 = arith.mulf %342, %341 : vector<16x128xf32>
    %344 = math.tanh %343 : vector<16x128xf32>
    %cst_163 = arith.constant 1.000000e+00 : f32
    %345 = vector.broadcast %cst_163 : f32 to vector<16x128xf32>
    %346 = arith.addf %345, %344 : vector<16x128xf32>
    %cst_164 = arith.constant 5.000000e-01 : f32
    %347 = vector.broadcast %cst_164 : f32 to vector<16x128xf32>
    %348 = arith.mulf %347, %346 : vector<16x128xf32>
    %349 = arith.mulf %336, %348 : vector<16x128xf32>
    %350 = arith.truncf %349 : vector<16x128xf32> to vector<16x128xbf16>
    %c1_165 = arith.constant 1 : index
    %c0_166 = arith.constant 0 : index
    %c0_167 = arith.constant 0 : index
    %351 = vector.load %arg11[%c1_165, %c0_166, %c0_167] : memref<4x128x32xbf16, #tpu.memory_space<vmem>>, vector<1x128x32xbf16>
    %352 = vector.shape_cast %351 : vector<1x128x32xbf16> to vector<128x32xbf16>
    %cst_168 = arith.constant dense<0.000000e+00> : vector<16x32xf32>
    %353 = tpu.matmul %350, %352, %cst_168 {dimension_numbers = #tpu.dot_dimension_numbers<[1], [0], [0], [1], [0, 0, 1, 1], [], []>} : vector<16x128xbf16>, vector<128x32xbf16>, vector<16x32xf32> -> vector<16x32xf32>
    %c1_169 = arith.constant 1 : index
    %c0_170 = arith.constant 0 : index
    %c0_171 = arith.constant 0 : index
    %354 = vector.load %arg12[%c1_169, %c0_170, %c0_171] : memref<4x1x32xf32, #tpu.memory_space<vmem>>, vector<1x1x32xf32>
    %355 = vector.shape_cast %354 : vector<1x1x32xf32> to vector<1x32xf32>
    %356 = vector.broadcast %355 : vector<1x32xf32> to vector<16x32xf32>
    %357 = arith.addf %353, %356 : vector<16x32xf32>
    %358 = arith.addf %300, %357 : vector<16x32xf32>
    %c2 = arith.constant 2 : index
    %c0_172 = arith.constant 0 : index
    %c0_173 = arith.constant 0 : index
    %359 = vector.load %arg2[%c2, %c0_172, %c0_173] : memref<4x1x32xf32, #tpu.memory_space<vmem>>, vector<1x1x32xf32>
    %360 = vector.shape_cast %359 : vector<1x1x32xf32> to vector<1x32xf32>
    %c2_174 = arith.constant 2 : index
    %c0_175 = arith.constant 0 : index
    %c0_176 = arith.constant 0 : index
    %361 = vector.load %arg3[%c2_174, %c0_175, %c0_176] : memref<4x1x32xf32, #tpu.memory_space<vmem>>, vector<1x1x32xf32>
    %362 = vector.shape_cast %361 : vector<1x1x32xf32> to vector<1x32xf32>
    %cst_177 = arith.constant dense<0.000000e+00> : vector<16xf32>
    %363 = vector.multi_reduction <add>, %358, %cst_177 [1] : vector<16x32xf32> to vector<16xf32>
    %364 = vector.shape_cast %363 : vector<16xf32> to vector<16x1xf32>
    %cst_178 = arith.constant 3.200000e+01 : f32
    %365 = vector.broadcast %cst_178 : f32 to vector<16x1xf32>
    %366 = arith.divf %364, %365 : vector<16x1xf32>
    %367 = arith.mulf %358, %358 : vector<16x32xf32>
    %cst_179 = arith.constant dense<0.000000e+00> : vector<16xf32>
    %368 = vector.multi_reduction <add>, %367, %cst_179 [1] : vector<16x32xf32> to vector<16xf32>
    %369 = vector.shape_cast %368 : vector<16xf32> to vector<16x1xf32>
    %cst_180 = arith.constant 3.200000e+01 : f32
    %370 = vector.broadcast %cst_180 : f32 to vector<16x1xf32>
    %371 = arith.divf %369, %370 : vector<16x1xf32>
    %372 = arith.mulf %366, %366 : vector<16x1xf32>
    %373 = arith.subf %371, %372 : vector<16x1xf32>
    %cst_181 = arith.constant 0.000000e+00 : f32
    %374 = vector.broadcast %cst_181 : f32 to vector<16x1xf32>
    %375 = arith.maximumf %373, %374 : vector<16x1xf32>
    %376 = vector.broadcast %366 : vector<16x1xf32> to vector<16x32xf32>
    %377 = arith.subf %358, %376 : vector<16x32xf32>
    %cst_182 = arith.constant 9.99999974E-6 : f32
    %378 = vector.broadcast %cst_182 : f32 to vector<16x1xf32>
    %379 = arith.addf %375, %378 : vector<16x1xf32>
    %380 = math.rsqrt %379 : vector<16x1xf32>
    %381 = vector.broadcast %380 : vector<16x1xf32> to vector<16x32xf32>
    %382 = arith.mulf %377, %381 : vector<16x32xf32>
    %383 = vector.broadcast %360 : vector<1x32xf32> to vector<16x32xf32>
    %384 = arith.mulf %382, %383 : vector<16x32xf32>
    %385 = vector.broadcast %362 : vector<1x32xf32> to vector<16x32xf32>
    %386 = arith.addf %384, %385 : vector<16x32xf32>
    %387 = arith.truncf %386 : vector<16x32xf32> to vector<16x32xbf16>
    %c2_183 = arith.constant 2 : index
    %c0_184 = arith.constant 0 : index
    %c0_185 = arith.constant 0 : index
    %388 = vector.load %arg4[%c2_183, %c0_184, %c0_185] : memref<4x32x96xbf16, #tpu.memory_space<vmem>>, vector<1x32x96xbf16>
    %389 = vector.shape_cast %388 : vector<1x32x96xbf16> to vector<32x96xbf16>
    %cst_186 = arith.constant dense<0.000000e+00> : vector<16x96xf32>
    %390 = tpu.matmul %387, %389, %cst_186 {dimension_numbers = #tpu.dot_dimension_numbers<[1], [0], [0], [1], [0, 0, 1, 1], [], []>} : vector<16x32xbf16>, vector<32x96xbf16>, vector<16x96xf32> -> vector<16x96xf32>
    %391 = vector.extract_strided_slice %390 {offsets = [0, 0], sizes = [16, 32], strides = [1, 1]} : vector<16x96xf32> to vector<16x32xf32>
    %392 = vector.shape_cast %391 : vector<16x32xf32> to vector<2x8x32xf32>
    %393 = vector.extract_strided_slice %390 {offsets = [0, 32], sizes = [16, 32], strides = [1, 1]} : vector<16x96xf32> to vector<16x32xf32>
    %394 = vector.shape_cast %393 : vector<16x32xf32> to vector<2x8x32xf32>
    %395 = vector.extract_strided_slice %390 {offsets = [0, 64], sizes = [16, 32], strides = [1, 1]} : vector<16x96xf32> to vector<16x32xf32>
    %396 = vector.shape_cast %395 : vector<16x32xf32> to vector<2x8x32xf32>
    %397 = vector.extract_strided_slice %392 {offsets = [0, 0, 0], sizes = [2, 8, 8], strides = [1, 1, 1]} : vector<2x8x32xf32> to vector<2x8x8xf32>
    %398 = vector.extract_strided_slice %394 {offsets = [0, 0, 0], sizes = [2, 8, 8], strides = [1, 1, 1]} : vector<2x8x32xf32> to vector<2x8x8xf32>
    %399 = vector.extract_strided_slice %396 {offsets = [0, 0, 0], sizes = [2, 8, 8], strides = [1, 1, 1]} : vector<2x8x32xf32> to vector<2x8x8xf32>
    "tpu.trace_start"() <{level = 10 : i32, message = "bqd,bkd->bqk"}> : () -> ()
    %cst_187 = arith.constant dense<0.000000e+00> : vector<2x8x8xf32>
    %400 = tpu.matmul %397, %398, %cst_187 {dimension_numbers = #tpu.dot_dimension_numbers<[2], [2], [1], [1], [0, 0, 0, 1, 1, 1], [0], [0]>} : vector<2x8x8xf32>, vector<2x8x8xf32>, vector<2x8x8xf32> -> vector<2x8x8xf32>
    "tpu.trace_stop"() : () -> ()
    %cst_188 = arith.constant 0.353553385 : f32
    %401 = vector.broadcast %cst_188 : f32 to vector<2x8x8xf32>
    %402 = arith.mulf %400, %401 : vector<2x8x8xf32>
    %cst_189 = arith.constant dense<0xFF800000> : vector<2x8xf32>
    %403 = vector.multi_reduction <maximumf>, %402, %cst_189 [2] : vector<2x8x8xf32> to vector<2x8xf32>
    %404 = vector.shape_cast %403 : vector<2x8xf32> to vector<2x8x1xf32>
    %405 = vector.broadcast %404 : vector<2x8x1xf32> to vector<2x8x8xf32>
    %406 = arith.subf %402, %405 : vector<2x8x8xf32>
    %407 = math.exp %406 : vector<2x8x8xf32>
    %cst_190 = arith.constant dense<0.000000e+00> : vector<2x8xf32>
    %408 = vector.multi_reduction <add>, %407, %cst_190 [2] : vector<2x8x8xf32> to vector<2x8xf32>
    %409 = vector.shape_cast %408 : vector<2x8xf32> to vector<2x8x1xf32>
    %410 = tpu.reciprocal %409 {approx = true} : vector<2x8x1xf32> -> vector<2x8x1xf32>
    %411 = vector.broadcast %410 : vector<2x8x1xf32> to vector<2x8x8xf32>
    %412 = arith.mulf %407, %411 : vector<2x8x8xf32>
    "tpu.trace_start"() <{level = 10 : i32, message = "bqk,bkd->bqd"}> : () -> ()
    %cst_191 = arith.constant dense<0.000000e+00> : vector<2x8x8xf32>
    %413 = tpu.matmul %412, %399, %cst_191 {dimension_numbers = #tpu.dot_dimension_numbers<[2], [1], [1], [2], [0, 0, 0, 1, 1, 2], [0], [0]>} : vector<2x8x8xf32>, vector<2x8x8xf32>, vector<2x8x8xf32> -> vector<2x8x8xf32>
    "tpu.trace_stop"() : () -> ()
    %c0_192 = arith.constant 0 : index
    %c0_193 = arith.constant 0 : index
    %c0_194 = arith.constant 0 : index
    %414 = vector.load %arg18[%c0_192, %c0_193, %c0_194] : memref<2x8x32xf32, #tpu.memory_space<vmem>>, vector<2x8x8xf32>
    tpu.vector_store %arg18[%c0_192, %c0_193, %c0_194], %413 {strides = array<i32>} : memref<2x8x32xf32, #tpu.memory_space<vmem>>, vector<2x8x8xf32>,
    %415 = vector.extract_strided_slice %392 {offsets = [0, 0, 8], sizes = [2, 8, 8], strides = [1, 1, 1]} : vector<2x8x32xf32> to vector<2x8x8xf32>
    %416 = vector.extract_strided_slice %394 {offsets = [0, 0, 8], sizes = [2, 8, 8], strides = [1, 1, 1]} : vector<2x8x32xf32> to vector<2x8x8xf32>
    %417 = vector.extract_strided_slice %396 {offsets = [0, 0, 8], sizes = [2, 8, 8], strides = [1, 1, 1]} : vector<2x8x32xf32> to vector<2x8x8xf32>
    "tpu.trace_start"() <{level = 10 : i32, message = "bqd,bkd->bqk"}> : () -> ()
    %cst_195 = arith.constant dense<0.000000e+00> : vector<2x8x8xf32>
    %418 = tpu.matmul %415, %416, %cst_195 {dimension_numbers = #tpu.dot_dimension_numbers<[2], [2], [1], [1], [0, 0, 0, 1, 1, 1], [0], [0]>} : vector<2x8x8xf32>, vector<2x8x8xf32>, vector<2x8x8xf32> -> vector<2x8x8xf32>
    "tpu.trace_stop"() : () -> ()
    %cst_196 = arith.constant 0.353553385 : f32
    %419 = vector.broadcast %cst_196 : f32 to vector<2x8x8xf32>
    %420 = arith.mulf %418, %419 : vector<2x8x8xf32>
    %cst_197 = arith.constant dense<0xFF800000> : vector<2x8xf32>
    %421 = vector.multi_reduction <maximumf>, %420, %cst_197 [2] : vector<2x8x8xf32> to vector<2x8xf32>
    %422 = vector.shape_cast %421 : vector<2x8xf32> to vector<2x8x1xf32>
    %423 = vector.broadcast %422 : vector<2x8x1xf32> to vector<2x8x8xf32>
    %424 = arith.subf %420, %423 : vector<2x8x8xf32>
    %425 = math.exp %424 : vector<2x8x8xf32>
    %cst_198 = arith.constant dense<0.000000e+00> : vector<2x8xf32>
    %426 = vector.multi_reduction <add>, %425, %cst_198 [2] : vector<2x8x8xf32> to vector<2x8xf32>
    %427 = vector.shape_cast %426 : vector<2x8xf32> to vector<2x8x1xf32>
    %428 = tpu.reciprocal %427 {approx = true} : vector<2x8x1xf32> -> vector<2x8x1xf32>
    %429 = vector.broadcast %428 : vector<2x8x1xf32> to vector<2x8x8xf32>
    %430 = arith.mulf %425, %429 : vector<2x8x8xf32>
    "tpu.trace_start"() <{level = 10 : i32, message = "bqk,bkd->bqd"}> : () -> ()
    %cst_199 = arith.constant dense<0.000000e+00> : vector<2x8x8xf32>
    %431 = tpu.matmul %430, %417, %cst_199 {dimension_numbers = #tpu.dot_dimension_numbers<[2], [1], [1], [2], [0, 0, 0, 1, 1, 2], [0], [0]>} : vector<2x8x8xf32>, vector<2x8x8xf32>, vector<2x8x8xf32> -> vector<2x8x8xf32>
    "tpu.trace_stop"() : () -> ()
    %c0_200 = arith.constant 0 : index
    %c0_201 = arith.constant 0 : index
    %c8_202 = arith.constant 8 : index
    %432 = vector.load %arg18[%c0_200, %c0_201, %c8_202] : memref<2x8x32xf32, #tpu.memory_space<vmem>>, vector<2x8x8xf32>
    tpu.vector_store %arg18[%c0_200, %c0_201, %c8_202], %431 {strides = array<i32>} : memref<2x8x32xf32, #tpu.memory_space<vmem>>, vector<2x8x8xf32>,
    %433 = vector.extract_strided_slice %392 {offsets = [0, 0, 16], sizes = [2, 8, 8], strides = [1, 1, 1]} : vector<2x8x32xf32> to vector<2x8x8xf32>
    %434 = vector.extract_strided_slice %394 {offsets = [0, 0, 16], sizes = [2, 8, 8], strides = [1, 1, 1]} : vector<2x8x32xf32> to vector<2x8x8xf32>
    %435 = vector.extract_strided_slice %396 {offsets = [0, 0, 16], sizes = [2, 8, 8], strides = [1, 1, 1]} : vector<2x8x32xf32> to vector<2x8x8xf32>
    "tpu.trace_start"() <{level = 10 : i32, message = "bqd,bkd->bqk"}> : () -> ()
    %cst_203 = arith.constant dense<0.000000e+00> : vector<2x8x8xf32>
    %436 = tpu.matmul %433, %434, %cst_203 {dimension_numbers = #tpu.dot_dimension_numbers<[2], [2], [1], [1], [0, 0, 0, 1, 1, 1], [0], [0]>} : vector<2x8x8xf32>, vector<2x8x8xf32>, vector<2x8x8xf32> -> vector<2x8x8xf32>
    "tpu.trace_stop"() : () -> ()
    %cst_204 = arith.constant 0.353553385 : f32
    %437 = vector.broadcast %cst_204 : f32 to vector<2x8x8xf32>
    %438 = arith.mulf %436, %437 : vector<2x8x8xf32>
    %cst_205 = arith.constant dense<0xFF800000> : vector<2x8xf32>
    %439 = vector.multi_reduction <maximumf>, %438, %cst_205 [2] : vector<2x8x8xf32> to vector<2x8xf32>
    %440 = vector.shape_cast %439 : vector<2x8xf32> to vector<2x8x1xf32>
    %441 = vector.broadcast %440 : vector<2x8x1xf32> to vector<2x8x8xf32>
    %442 = arith.subf %438, %441 : vector<2x8x8xf32>
    %443 = math.exp %442 : vector<2x8x8xf32>
    %cst_206 = arith.constant dense<0.000000e+00> : vector<2x8xf32>
    %444 = vector.multi_reduction <add>, %443, %cst_206 [2] : vector<2x8x8xf32> to vector<2x8xf32>
    %445 = vector.shape_cast %444 : vector<2x8xf32> to vector<2x8x1xf32>
    %446 = tpu.reciprocal %445 {approx = true} : vector<2x8x1xf32> -> vector<2x8x1xf32>
    %447 = vector.broadcast %446 : vector<2x8x1xf32> to vector<2x8x8xf32>
    %448 = arith.mulf %443, %447 : vector<2x8x8xf32>
    "tpu.trace_start"() <{level = 10 : i32, message = "bqk,bkd->bqd"}> : () -> ()
    %cst_207 = arith.constant dense<0.000000e+00> : vector<2x8x8xf32>
    %449 = tpu.matmul %448, %435, %cst_207 {dimension_numbers = #tpu.dot_dimension_numbers<[2], [1], [1], [2], [0, 0, 0, 1, 1, 2], [0], [0]>} : vector<2x8x8xf32>, vector<2x8x8xf32>, vector<2x8x8xf32> -> vector<2x8x8xf32>
    "tpu.trace_stop"() : () -> ()
    %c0_208 = arith.constant 0 : index
    %c0_209 = arith.constant 0 : index
    %c16_210 = arith.constant 16 : index
    %450 = vector.load %arg18[%c0_208, %c0_209, %c16_210] : memref<2x8x32xf32, #tpu.memory_space<vmem>>, vector<2x8x8xf32>
    tpu.vector_store %arg18[%c0_208, %c0_209, %c16_210], %449 {strides = array<i32>} : memref<2x8x32xf32, #tpu.memory_space<vmem>>, vector<2x8x8xf32>,
    %451 = vector.extract_strided_slice %392 {offsets = [0, 0, 24], sizes = [2, 8, 8], strides = [1, 1, 1]} : vector<2x8x32xf32> to vector<2x8x8xf32>
    %452 = vector.extract_strided_slice %394 {offsets = [0, 0, 24], sizes = [2, 8, 8], strides = [1, 1, 1]} : vector<2x8x32xf32> to vector<2x8x8xf32>
    %453 = vector.extract_strided_slice %396 {offsets = [0, 0, 24], sizes = [2, 8, 8], strides = [1, 1, 1]} : vector<2x8x32xf32> to vector<2x8x8xf32>
    "tpu.trace_start"() <{level = 10 : i32, message = "bqd,bkd->bqk"}> : () -> ()
    %cst_211 = arith.constant dense<0.000000e+00> : vector<2x8x8xf32>
    %454 = tpu.matmul %451, %452, %cst_211 {dimension_numbers = #tpu.dot_dimension_numbers<[2], [2], [1], [1], [0, 0, 0, 1, 1, 1], [0], [0]>} : vector<2x8x8xf32>, vector<2x8x8xf32>, vector<2x8x8xf32> -> vector<2x8x8xf32>
    "tpu.trace_stop"() : () -> ()
    %cst_212 = arith.constant 0.353553385 : f32
    %455 = vector.broadcast %cst_212 : f32 to vector<2x8x8xf32>
    %456 = arith.mulf %454, %455 : vector<2x8x8xf32>
    %cst_213 = arith.constant dense<0xFF800000> : vector<2x8xf32>
    %457 = vector.multi_reduction <maximumf>, %456, %cst_213 [2] : vector<2x8x8xf32> to vector<2x8xf32>
    %458 = vector.shape_cast %457 : vector<2x8xf32> to vector<2x8x1xf32>
    %459 = vector.broadcast %458 : vector<2x8x1xf32> to vector<2x8x8xf32>
    %460 = arith.subf %456, %459 : vector<2x8x8xf32>
    %461 = math.exp %460 : vector<2x8x8xf32>
    %cst_214 = arith.constant dense<0.000000e+00> : vector<2x8xf32>
    %462 = vector.multi_reduction <add>, %461, %cst_214 [2] : vector<2x8x8xf32> to vector<2x8xf32>
    %463 = vector.shape_cast %462 : vector<2x8xf32> to vector<2x8x1xf32>
    %464 = tpu.reciprocal %463 {approx = true} : vector<2x8x1xf32> -> vector<2x8x1xf32>
    %465 = vector.broadcast %464 : vector<2x8x1xf32> to vector<2x8x8xf32>
    %466 = arith.mulf %461, %465 : vector<2x8x8xf32>
    "tpu.trace_start"() <{level = 10 : i32, message = "bqk,bkd->bqd"}> : () -> ()
    %cst_215 = arith.constant dense<0.000000e+00> : vector<2x8x8xf32>
    %467 = tpu.matmul %466, %453, %cst_215 {dimension_numbers = #tpu.dot_dimension_numbers<[2], [1], [1], [2], [0, 0, 0, 1, 1, 2], [0], [0]>} : vector<2x8x8xf32>, vector<2x8x8xf32>, vector<2x8x8xf32> -> vector<2x8x8xf32>
    "tpu.trace_stop"() : () -> ()
    %c0_216 = arith.constant 0 : index
    %c0_217 = arith.constant 0 : index
    %c24_218 = arith.constant 24 : index
    %468 = vector.load %arg18[%c0_216, %c0_217, %c24_218] : memref<2x8x32xf32, #tpu.memory_space<vmem>>, vector<2x8x8xf32>
    tpu.vector_store %arg18[%c0_216, %c0_217, %c24_218], %467 {strides = array<i32>} : memref<2x8x32xf32, #tpu.memory_space<vmem>>, vector<2x8x8xf32>,
    %c0_219 = arith.constant 0 : index
    %c0_220 = arith.constant 0 : index
    %c0_221 = arith.constant 0 : index
    %469 = vector.load %arg18[%c0_219, %c0_220, %c0_221] : memref<2x8x32xf32, #tpu.memory_space<vmem>>, vector<2x8x32xf32>
    %470 = vector.shape_cast %469 : vector<2x8x32xf32> to vector<16x32xf32>
    %471 = arith.truncf %470 : vector<16x32xf32> to vector<16x32xbf16>
    %c2_222 = arith.constant 2 : index
    %c0_223 = arith.constant 0 : index
    %c0_224 = arith.constant 0 : index
    %472 = vector.load %arg5[%c2_222, %c0_223, %c0_224] : memref<4x32x32xbf16, #tpu.memory_space<vmem>>, vector<1x32x32xbf16>
    %473 = vector.shape_cast %472 : vector<1x32x32xbf16> to vector<32x32xbf16>
    %cst_225 = arith.constant dense<0.000000e+00> : vector<16x32xf32>
    %474 = tpu.matmul %471, %473, %cst_225 {dimension_numbers = #tpu.dot_dimension_numbers<[1], [0], [0], [1], [0, 0, 1, 1], [], []>} : vector<16x32xbf16>, vector<32x32xbf16>, vector<16x32xf32> -> vector<16x32xf32>
    %c2_226 = arith.constant 2 : index
    %c0_227 = arith.constant 0 : index
    %c0_228 = arith.constant 0 : index
    %475 = vector.load %arg6[%c2_226, %c0_227, %c0_228] : memref<4x1x32xf32, #tpu.memory_space<vmem>>, vector<1x1x32xf32>
    %476 = vector.shape_cast %475 : vector<1x1x32xf32> to vector<1x32xf32>
    %477 = vector.broadcast %476 : vector<1x32xf32> to vector<16x32xf32>
    %478 = arith.addf %474, %477 : vector<16x32xf32>
    %479 = arith.addf %358, %478 : vector<16x32xf32>
    %c2_229 = arith.constant 2 : index
    %c0_230 = arith.constant 0 : index
    %c0_231 = arith.constant 0 : index
    %480 = vector.load %arg7[%c2_229, %c0_230, %c0_231] : memref<4x1x32xf32, #tpu.memory_space<vmem>>, vector<1x1x32xf32>
    %481 = vector.shape_cast %480 : vector<1x1x32xf32> to vector<1x32xf32>
    %c2_232 = arith.constant 2 : index
    %c0_233 = arith.constant 0 : index
    %c0_234 = arith.constant 0 : index
    %482 = vector.load %arg8[%c2_232, %c0_233, %c0_234] : memref<4x1x32xf32, #tpu.memory_space<vmem>>, vector<1x1x32xf32>
    %483 = vector.shape_cast %482 : vector<1x1x32xf32> to vector<1x32xf32>
    %cst_235 = arith.constant dense<0.000000e+00> : vector<16xf32>
    %484 = vector.multi_reduction <add>, %479, %cst_235 [1] : vector<16x32xf32> to vector<16xf32>
    %485 = vector.shape_cast %484 : vector<16xf32> to vector<16x1xf32>
    %cst_236 = arith.constant 3.200000e+01 : f32
    %486 = vector.broadcast %cst_236 : f32 to vector<16x1xf32>
    %487 = arith.divf %485, %486 : vector<16x1xf32>
    %488 = arith.mulf %479, %479 : vector<16x32xf32>
    %cst_237 = arith.constant dense<0.000000e+00> : vector<16xf32>
    %489 = vector.multi_reduction <add>, %488, %cst_237 [1] : vector<16x32xf32> to vector<16xf32>
    %490 = vector.shape_cast %489 : vector<16xf32> to vector<16x1xf32>
    %cst_238 = arith.constant 3.200000e+01 : f32
    %491 = vector.broadcast %cst_238 : f32 to vector<16x1xf32>
    %492 = arith.divf %490, %491 : vector<16x1xf32>
    %493 = arith.mulf %487, %487 : vector<16x1xf32>
    %494 = arith.subf %492, %493 : vector<16x1xf32>
    %cst_239 = arith.constant 0.000000e+00 : f32
    %495 = vector.broadcast %cst_239 : f32 to vector<16x1xf32>
    %496 = arith.maximumf %494, %495 : vector<16x1xf32>
    %497 = vector.broadcast %487 : vector<16x1xf32> to vector<16x32xf32>
    %498 = arith.subf %479, %497 : vector<16x32xf32>
    %cst_240 = arith.constant 9.99999974E-6 : f32
    %499 = vector.broadcast %cst_240 : f32 to vector<16x1xf32>
    %500 = arith.addf %496, %499 : vector<16x1xf32>
    %501 = math.rsqrt %500 : vector<16x1xf32>
    %502 = vector.broadcast %501 : vector<16x1xf32> to vector<16x32xf32>
    %503 = arith.mulf %498, %502 : vector<16x32xf32>
    %504 = vector.broadcast %481 : vector<1x32xf32> to vector<16x32xf32>
    %505 = arith.mulf %503, %504 : vector<16x32xf32>
    %506 = vector.broadcast %483 : vector<1x32xf32> to vector<16x32xf32>
    %507 = arith.addf %505, %506 : vector<16x32xf32>
    %508 = arith.truncf %507 : vector<16x32xf32> to vector<16x32xbf16>
    %c2_241 = arith.constant 2 : index
    %c0_242 = arith.constant 0 : index
    %c0_243 = arith.constant 0 : index
    %509 = vector.load %arg9[%c2_241, %c0_242, %c0_243] : memref<4x32x128xbf16, #tpu.memory_space<vmem>>, vector<1x32x128xbf16>
    %510 = vector.shape_cast %509 : vector<1x32x128xbf16> to vector<32x128xbf16>
    %cst_244 = arith.constant dense<0.000000e+00> : vector<16x128xf32>
    %511 = tpu.matmul %508, %510, %cst_244 {dimension_numbers = #tpu.dot_dimension_numbers<[1], [0], [0], [1], [0, 0, 1, 1], [], []>} : vector<16x32xbf16>, vector<32x128xbf16>, vector<16x128xf32> -> vector<16x128xf32>
    %c2_245 = arith.constant 2 : index
    %c0_246 = arith.constant 0 : index
    %c0_247 = arith.constant 0 : index
    %512 = vector.load %arg10[%c2_245, %c0_246, %c0_247] : memref<4x1x128xf32, #tpu.memory_space<vmem>>, vector<1x1x128xf32>
    %513 = vector.shape_cast %512 : vector<1x1x128xf32> to vector<1x128xf32>
    %514 = vector.broadcast %513 : vector<1x128xf32> to vector<16x128xf32>
    %515 = arith.addf %511, %514 : vector<16x128xf32>
    %516 = arith.mulf %515, %515 : vector<16x128xf32>
    %517 = arith.mulf %515, %516 : vector<16x128xf32>
    %cst_248 = arith.constant 4.471500e-02 : f32
    %518 = vector.broadcast %cst_248 : f32 to vector<16x128xf32>
    %519 = arith.mulf %518, %517 : vector<16x128xf32>
    %520 = arith.addf %515, %519 : vector<16x128xf32>
    %cst_249 = arith.constant 0.797884583 : f32
    %521 = vector.broadcast %cst_249 : f32 to vector<16x128xf32>
    %522 = arith.mulf %521, %520 : vector<16x128xf32>
    %523 = math.tanh %522 : vector<16x128xf32>
    %cst_250 = arith.constant 1.000000e+00 : f32
    %524 = vector.broadcast %cst_250 : f32 to vector<16x128xf32>
    %525 = arith.addf %524, %523 : vector<16x128xf32>
    %cst_251 = arith.constant 5.000000e-01 : f32
    %526 = vector.broadcast %cst_251 : f32 to vector<16x128xf32>
    %527 = arith.mulf %526, %525 : vector<16x128xf32>
    %528 = arith.mulf %515, %527 : vector<16x128xf32>
    %529 = arith.truncf %528 : vector<16x128xf32> to vector<16x128xbf16>
    %c2_252 = arith.constant 2 : index
    %c0_253 = arith.constant 0 : index
    %c0_254 = arith.constant 0 : index
    %530 = vector.load %arg11[%c2_252, %c0_253, %c0_254] : memref<4x128x32xbf16, #tpu.memory_space<vmem>>, vector<1x128x32xbf16>
    %531 = vector.shape_cast %530 : vector<1x128x32xbf16> to vector<128x32xbf16>
    %cst_255 = arith.constant dense<0.000000e+00> : vector<16x32xf32>
    %532 = tpu.matmul %529, %531, %cst_255 {dimension_numbers = #tpu.dot_dimension_numbers<[1], [0], [0], [1], [0, 0, 1, 1], [], []>} : vector<16x128xbf16>, vector<128x32xbf16>, vector<16x32xf32> -> vector<16x32xf32>
    %c2_256 = arith.constant 2 : index
    %c0_257 = arith.constant 0 : index
    %c0_258 = arith.constant 0 : index
    %533 = vector.load %arg12[%c2_256, %c0_257, %c0_258] : memref<4x1x32xf32, #tpu.memory_space<vmem>>, vector<1x1x32xf32>
    %534 = vector.shape_cast %533 : vector<1x1x32xf32> to vector<1x32xf32>
    %535 = vector.broadcast %534 : vector<1x32xf32> to vector<16x32xf32>
    %536 = arith.addf %532, %535 : vector<16x32xf32>
    %537 = arith.addf %479, %536 : vector<16x32xf32>
    %c3 = arith.constant 3 : index
    %c0_259 = arith.constant 0 : index
    %c0_260 = arith.constant 0 : index
    %538 = vector.load %arg2[%c3, %c0_259, %c0_260] : memref<4x1x32xf32, #tpu.memory_space<vmem>>, vector<1x1x32xf32>
    %539 = vector.shape_cast %538 : vector<1x1x32xf32> to vector<1x32xf32>
    %c3_261 = arith.constant 3 : index
    %c0_262 = arith.constant 0 : index
    %c0_263 = arith.constant 0 : index
    %540 = vector.load %arg3[%c3_261, %c0_262, %c0_263] : memref<4x1x32xf32, #tpu.memory_space<vmem>>, vector<1x1x32xf32>
    %541 = vector.shape_cast %540 : vector<1x1x32xf32> to vector<1x32xf32>
    %cst_264 = arith.constant dense<0.000000e+00> : vector<16xf32>
    %542 = vector.multi_reduction <add>, %537, %cst_264 [1] : vector<16x32xf32> to vector<16xf32>
    %543 = vector.shape_cast %542 : vector<16xf32> to vector<16x1xf32>
    %cst_265 = arith.constant 3.200000e+01 : f32
    %544 = vector.broadcast %cst_265 : f32 to vector<16x1xf32>
    %545 = arith.divf %543, %544 : vector<16x1xf32>
    %546 = arith.mulf %537, %537 : vector<16x32xf32>
    %cst_266 = arith.constant dense<0.000000e+00> : vector<16xf32>
    %547 = vector.multi_reduction <add>, %546, %cst_266 [1] : vector<16x32xf32> to vector<16xf32>
    %548 = vector.shape_cast %547 : vector<16xf32> to vector<16x1xf32>
    %cst_267 = arith.constant 3.200000e+01 : f32
    %549 = vector.broadcast %cst_267 : f32 to vector<16x1xf32>
    %550 = arith.divf %548, %549 : vector<16x1xf32>
    %551 = arith.mulf %545, %545 : vector<16x1xf32>
    %552 = arith.subf %550, %551 : vector<16x1xf32>
    %cst_268 = arith.constant 0.000000e+00 : f32
    %553 = vector.broadcast %cst_268 : f32 to vector<16x1xf32>
    %554 = arith.maximumf %552, %553 : vector<16x1xf32>
    %555 = vector.broadcast %545 : vector<16x1xf32> to vector<16x32xf32>
    %556 = arith.subf %537, %555 : vector<16x32xf32>
    %cst_269 = arith.constant 9.99999974E-6 : f32
    %557 = vector.broadcast %cst_269 : f32 to vector<16x1xf32>
    %558 = arith.addf %554, %557 : vector<16x1xf32>
    %559 = math.rsqrt %558 : vector<16x1xf32>
    %560 = vector.broadcast %559 : vector<16x1xf32> to vector<16x32xf32>
    %561 = arith.mulf %556, %560 : vector<16x32xf32>
    %562 = vector.broadcast %539 : vector<1x32xf32> to vector<16x32xf32>
    %563 = arith.mulf %561, %562 : vector<16x32xf32>
    %564 = vector.broadcast %541 : vector<1x32xf32> to vector<16x32xf32>
    %565 = arith.addf %563, %564 : vector<16x32xf32>
    %566 = arith.truncf %565 : vector<16x32xf32> to vector<16x32xbf16>
    %c3_270 = arith.constant 3 : index
    %c0_271 = arith.constant 0 : index
    %c0_272 = arith.constant 0 : index
    %567 = vector.load %arg4[%c3_270, %c0_271, %c0_272] : memref<4x32x96xbf16, #tpu.memory_space<vmem>>, vector<1x32x96xbf16>
    %568 = vector.shape_cast %567 : vector<1x32x96xbf16> to vector<32x96xbf16>
    %cst_273 = arith.constant dense<0.000000e+00> : vector<16x96xf32>
    %569 = tpu.matmul %566, %568, %cst_273 {dimension_numbers = #tpu.dot_dimension_numbers<[1], [0], [0], [1], [0, 0, 1, 1], [], []>} : vector<16x32xbf16>, vector<32x96xbf16>, vector<16x96xf32> -> vector<16x96xf32>
    %570 = vector.extract_strided_slice %569 {offsets = [0, 0], sizes = [16, 32], strides = [1, 1]} : vector<16x96xf32> to vector<16x32xf32>
    %571 = vector.shape_cast %570 : vector<16x32xf32> to vector<2x8x32xf32>
    %572 = vector.extract_strided_slice %569 {offsets = [0, 32], sizes = [16, 32], strides = [1, 1]} : vector<16x96xf32> to vector<16x32xf32>
    %573 = vector.shape_cast %572 : vector<16x32xf32> to vector<2x8x32xf32>
    %574 = vector.extract_strided_slice %569 {offsets = [0, 64], sizes = [16, 32], strides = [1, 1]} : vector<16x96xf32> to vector<16x32xf32>
    %575 = vector.shape_cast %574 : vector<16x32xf32> to vector<2x8x32xf32>
    %576 = vector.extract_strided_slice %571 {offsets = [0, 0, 0], sizes = [2, 8, 8], strides = [1, 1, 1]} : vector<2x8x32xf32> to vector<2x8x8xf32>
    %577 = vector.extract_strided_slice %573 {offsets = [0, 0, 0], sizes = [2, 8, 8], strides = [1, 1, 1]} : vector<2x8x32xf32> to vector<2x8x8xf32>
    %578 = vector.extract_strided_slice %575 {offsets = [0, 0, 0], sizes = [2, 8, 8], strides = [1, 1, 1]} : vector<2x8x32xf32> to vector<2x8x8xf32>
    "tpu.trace_start"() <{level = 10 : i32, message = "bqd,bkd->bqk"}> : () -> ()
    %cst_274 = arith.constant dense<0.000000e+00> : vector<2x8x8xf32>
    %579 = tpu.matmul %576, %577, %cst_274 {dimension_numbers = #tpu.dot_dimension_numbers<[2], [2], [1], [1], [0, 0, 0, 1, 1, 1], [0], [0]>} : vector<2x8x8xf32>, vector<2x8x8xf32>, vector<2x8x8xf32> -> vector<2x8x8xf32>
    "tpu.trace_stop"() : () -> ()
    %cst_275 = arith.constant 0.353553385 : f32
    %580 = vector.broadcast %cst_275 : f32 to vector<2x8x8xf32>
    %581 = arith.mulf %579, %580 : vector<2x8x8xf32>
    %cst_276 = arith.constant dense<0xFF800000> : vector<2x8xf32>
    %582 = vector.multi_reduction <maximumf>, %581, %cst_276 [2] : vector<2x8x8xf32> to vector<2x8xf32>
    %583 = vector.shape_cast %582 : vector<2x8xf32> to vector<2x8x1xf32>
    %584 = vector.broadcast %583 : vector<2x8x1xf32> to vector<2x8x8xf32>
    %585 = arith.subf %581, %584 : vector<2x8x8xf32>
    %586 = math.exp %585 : vector<2x8x8xf32>
    %cst_277 = arith.constant dense<0.000000e+00> : vector<2x8xf32>
    %587 = vector.multi_reduction <add>, %586, %cst_277 [2] : vector<2x8x8xf32> to vector<2x8xf32>
    %588 = vector.shape_cast %587 : vector<2x8xf32> to vector<2x8x1xf32>
    %589 = tpu.reciprocal %588 {approx = true} : vector<2x8x1xf32> -> vector<2x8x1xf32>
    %590 = vector.broadcast %589 : vector<2x8x1xf32> to vector<2x8x8xf32>
    %591 = arith.mulf %586, %590 : vector<2x8x8xf32>
    "tpu.trace_start"() <{level = 10 : i32, message = "bqk,bkd->bqd"}> : () -> ()
    %cst_278 = arith.constant dense<0.000000e+00> : vector<2x8x8xf32>
    %592 = tpu.matmul %591, %578, %cst_278 {dimension_numbers = #tpu.dot_dimension_numbers<[2], [1], [1], [2], [0, 0, 0, 1, 1, 2], [0], [0]>} : vector<2x8x8xf32>, vector<2x8x8xf32>, vector<2x8x8xf32> -> vector<2x8x8xf32>
    "tpu.trace_stop"() : () -> ()
    %c0_279 = arith.constant 0 : index
    %c0_280 = arith.constant 0 : index
    %c0_281 = arith.constant 0 : index
    %593 = vector.load %arg18[%c0_279, %c0_280, %c0_281] : memref<2x8x32xf32, #tpu.memory_space<vmem>>, vector<2x8x8xf32>
    tpu.vector_store %arg18[%c0_279, %c0_280, %c0_281], %592 {strides = array<i32>} : memref<2x8x32xf32, #tpu.memory_space<vmem>>, vector<2x8x8xf32>,
    %594 = vector.extract_strided_slice %571 {offsets = [0, 0, 8], sizes = [2, 8, 8], strides = [1, 1, 1]} : vector<2x8x32xf32> to vector<2x8x8xf32>
    %595 = vector.extract_strided_slice %573 {offsets = [0, 0, 8], sizes = [2, 8, 8], strides = [1, 1, 1]} : vector<2x8x32xf32> to vector<2x8x8xf32>
    %596 = vector.extract_strided_slice %575 {offsets = [0, 0, 8], sizes = [2, 8, 8], strides = [1, 1, 1]} : vector<2x8x32xf32> to vector<2x8x8xf32>
    "tpu.trace_start"() <{level = 10 : i32, message = "bqd,bkd->bqk"}> : () -> ()
    %cst_282 = arith.constant dense<0.000000e+00> : vector<2x8x8xf32>
    %597 = tpu.matmul %594, %595, %cst_282 {dimension_numbers = #tpu.dot_dimension_numbers<[2], [2], [1], [1], [0, 0, 0, 1, 1, 1], [0], [0]>} : vector<2x8x8xf32>, vector<2x8x8xf32>, vector<2x8x8xf32> -> vector<2x8x8xf32>
    "tpu.trace_stop"() : () -> ()
    %cst_283 = arith.constant 0.353553385 : f32
    %598 = vector.broadcast %cst_283 : f32 to vector<2x8x8xf32>
    %599 = arith.mulf %597, %598 : vector<2x8x8xf32>
    %cst_284 = arith.constant dense<0xFF800000> : vector<2x8xf32>
    %600 = vector.multi_reduction <maximumf>, %599, %cst_284 [2] : vector<2x8x8xf32> to vector<2x8xf32>
    %601 = vector.shape_cast %600 : vector<2x8xf32> to vector<2x8x1xf32>
    %602 = vector.broadcast %601 : vector<2x8x1xf32> to vector<2x8x8xf32>
    %603 = arith.subf %599, %602 : vector<2x8x8xf32>
    %604 = math.exp %603 : vector<2x8x8xf32>
    %cst_285 = arith.constant dense<0.000000e+00> : vector<2x8xf32>
    %605 = vector.multi_reduction <add>, %604, %cst_285 [2] : vector<2x8x8xf32> to vector<2x8xf32>
    %606 = vector.shape_cast %605 : vector<2x8xf32> to vector<2x8x1xf32>
    %607 = tpu.reciprocal %606 {approx = true} : vector<2x8x1xf32> -> vector<2x8x1xf32>
    %608 = vector.broadcast %607 : vector<2x8x1xf32> to vector<2x8x8xf32>
    %609 = arith.mulf %604, %608 : vector<2x8x8xf32>
    "tpu.trace_start"() <{level = 10 : i32, message = "bqk,bkd->bqd"}> : () -> ()
    %cst_286 = arith.constant dense<0.000000e+00> : vector<2x8x8xf32>
    %610 = tpu.matmul %609, %596, %cst_286 {dimension_numbers = #tpu.dot_dimension_numbers<[2], [1], [1], [2], [0, 0, 0, 1, 1, 2], [0], [0]>} : vector<2x8x8xf32>, vector<2x8x8xf32>, vector<2x8x8xf32> -> vector<2x8x8xf32>
    "tpu.trace_stop"() : () -> ()
    %c0_287 = arith.constant 0 : index
    %c0_288 = arith.constant 0 : index
    %c8_289 = arith.constant 8 : index
    %611 = vector.load %arg18[%c0_287, %c0_288, %c8_289] : memref<2x8x32xf32, #tpu.memory_space<vmem>>, vector<2x8x8xf32>
    tpu.vector_store %arg18[%c0_287, %c0_288, %c8_289], %610 {strides = array<i32>} : memref<2x8x32xf32, #tpu.memory_space<vmem>>, vector<2x8x8xf32>,
    %612 = vector.extract_strided_slice %571 {offsets = [0, 0, 16], sizes = [2, 8, 8], strides = [1, 1, 1]} : vector<2x8x32xf32> to vector<2x8x8xf32>
    %613 = vector.extract_strided_slice %573 {offsets = [0, 0, 16], sizes = [2, 8, 8], strides = [1, 1, 1]} : vector<2x8x32xf32> to vector<2x8x8xf32>
    %614 = vector.extract_strided_slice %575 {offsets = [0, 0, 16], sizes = [2, 8, 8], strides = [1, 1, 1]} : vector<2x8x32xf32> to vector<2x8x8xf32>
    "tpu.trace_start"() <{level = 10 : i32, message = "bqd,bkd->bqk"}> : () -> ()
    %cst_290 = arith.constant dense<0.000000e+00> : vector<2x8x8xf32>
    %615 = tpu.matmul %612, %613, %cst_290 {dimension_numbers = #tpu.dot_dimension_numbers<[2], [2], [1], [1], [0, 0, 0, 1, 1, 1], [0], [0]>} : vector<2x8x8xf32>, vector<2x8x8xf32>, vector<2x8x8xf32> -> vector<2x8x8xf32>
    "tpu.trace_stop"() : () -> ()
    %cst_291 = arith.constant 0.353553385 : f32
    %616 = vector.broadcast %cst_291 : f32 to vector<2x8x8xf32>
    %617 = arith.mulf %615, %616 : vector<2x8x8xf32>
    %cst_292 = arith.constant dense<0xFF800000> : vector<2x8xf32>
    %618 = vector.multi_reduction <maximumf>, %617, %cst_292 [2] : vector<2x8x8xf32> to vector<2x8xf32>
    %619 = vector.shape_cast %618 : vector<2x8xf32> to vector<2x8x1xf32>
    %620 = vector.broadcast %619 : vector<2x8x1xf32> to vector<2x8x8xf32>
    %621 = arith.subf %617, %620 : vector<2x8x8xf32>
    %622 = math.exp %621 : vector<2x8x8xf32>
    %cst_293 = arith.constant dense<0.000000e+00> : vector<2x8xf32>
    %623 = vector.multi_reduction <add>, %622, %cst_293 [2] : vector<2x8x8xf32> to vector<2x8xf32>
    %624 = vector.shape_cast %623 : vector<2x8xf32> to vector<2x8x1xf32>
    %625 = tpu.reciprocal %624 {approx = true} : vector<2x8x1xf32> -> vector<2x8x1xf32>
    %626 = vector.broadcast %625 : vector<2x8x1xf32> to vector<2x8x8xf32>
    %627 = arith.mulf %622, %626 : vector<2x8x8xf32>
    "tpu.trace_start"() <{level = 10 : i32, message = "bqk,bkd->bqd"}> : () -> ()
    %cst_294 = arith.constant dense<0.000000e+00> : vector<2x8x8xf32>
    %628 = tpu.matmul %627, %614, %cst_294 {dimension_numbers = #tpu.dot_dimension_numbers<[2], [1], [1], [2], [0, 0, 0, 1, 1, 2], [0], [0]>} : vector<2x8x8xf32>, vector<2x8x8xf32>, vector<2x8x8xf32> -> vector<2x8x8xf32>
    "tpu.trace_stop"() : () -> ()
    %c0_295 = arith.constant 0 : index
    %c0_296 = arith.constant 0 : index
    %c16_297 = arith.constant 16 : index
    %629 = vector.load %arg18[%c0_295, %c0_296, %c16_297] : memref<2x8x32xf32, #tpu.memory_space<vmem>>, vector<2x8x8xf32>
    tpu.vector_store %arg18[%c0_295, %c0_296, %c16_297], %628 {strides = array<i32>} : memref<2x8x32xf32, #tpu.memory_space<vmem>>, vector<2x8x8xf32>,
    %630 = vector.extract_strided_slice %571 {offsets = [0, 0, 24], sizes = [2, 8, 8], strides = [1, 1, 1]} : vector<2x8x32xf32> to vector<2x8x8xf32>
    %631 = vector.extract_strided_slice %573 {offsets = [0, 0, 24], sizes = [2, 8, 8], strides = [1, 1, 1]} : vector<2x8x32xf32> to vector<2x8x8xf32>
    %632 = vector.extract_strided_slice %575 {offsets = [0, 0, 24], sizes = [2, 8, 8], strides = [1, 1, 1]} : vector<2x8x32xf32> to vector<2x8x8xf32>
    "tpu.trace_start"() <{level = 10 : i32, message = "bqd,bkd->bqk"}> : () -> ()
    %cst_298 = arith.constant dense<0.000000e+00> : vector<2x8x8xf32>
    %633 = tpu.matmul %630, %631, %cst_298 {dimension_numbers = #tpu.dot_dimension_numbers<[2], [2], [1], [1], [0, 0, 0, 1, 1, 1], [0], [0]>} : vector<2x8x8xf32>, vector<2x8x8xf32>, vector<2x8x8xf32> -> vector<2x8x8xf32>
    "tpu.trace_stop"() : () -> ()
    %cst_299 = arith.constant 0.353553385 : f32
    %634 = vector.broadcast %cst_299 : f32 to vector<2x8x8xf32>
    %635 = arith.mulf %633, %634 : vector<2x8x8xf32>
    %cst_300 = arith.constant dense<0xFF800000> : vector<2x8xf32>
    %636 = vector.multi_reduction <maximumf>, %635, %cst_300 [2] : vector<2x8x8xf32> to vector<2x8xf32>
    %637 = vector.shape_cast %636 : vector<2x8xf32> to vector<2x8x1xf32>
    %638 = vector.broadcast %637 : vector<2x8x1xf32> to vector<2x8x8xf32>
    %639 = arith.subf %635, %638 : vector<2x8x8xf32>
    %640 = math.exp %639 : vector<2x8x8xf32>
    %cst_301 = arith.constant dense<0.000000e+00> : vector<2x8xf32>
    %641 = vector.multi_reduction <add>, %640, %cst_301 [2] : vector<2x8x8xf32> to vector<2x8xf32>
    %642 = vector.shape_cast %641 : vector<2x8xf32> to vector<2x8x1xf32>
    %643 = tpu.reciprocal %642 {approx = true} : vector<2x8x1xf32> -> vector<2x8x1xf32>
    %644 = vector.broadcast %643 : vector<2x8x1xf32> to vector<2x8x8xf32>
    %645 = arith.mulf %640, %644 : vector<2x8x8xf32>
    "tpu.trace_start"() <{level = 10 : i32, message = "bqk,bkd->bqd"}> : () -> ()
    %cst_302 = arith.constant dense<0.000000e+00> : vector<2x8x8xf32>
    %646 = tpu.matmul %645, %632, %cst_302 {dimension_numbers = #tpu.dot_dimension_numbers<[2], [1], [1], [2], [0, 0, 0, 1, 1, 2], [0], [0]>} : vector<2x8x8xf32>, vector<2x8x8xf32>, vector<2x8x8xf32> -> vector<2x8x8xf32>
    "tpu.trace_stop"() : () -> ()
    %c0_303 = arith.constant 0 : index
    %c0_304 = arith.constant 0 : index
    %c24_305 = arith.constant 24 : index
    %647 = vector.load %arg18[%c0_303, %c0_304, %c24_305] : memref<2x8x32xf32, #tpu.memory_space<vmem>>, vector<2x8x8xf32>
    tpu.vector_store %arg18[%c0_303, %c0_304, %c24_305], %646 {strides = array<i32>} : memref<2x8x32xf32, #tpu.memory_space<vmem>>, vector<2x8x8xf32>,
    %c0_306 = arith.constant 0 : index
    %c0_307 = arith.constant 0 : index
    %c0_308 = arith.constant 0 : index
    %648 = vector.load %arg18[%c0_306, %c0_307, %c0_308] : memref<2x8x32xf32, #tpu.memory_space<vmem>>, vector<2x8x32xf32>
    %649 = vector.shape_cast %648 : vector<2x8x32xf32> to vector<16x32xf32>
    %650 = arith.truncf %649 : vector<16x32xf32> to vector<16x32xbf16>
    %c3_309 = arith.constant 3 : index
    %c0_310 = arith.constant 0 : index
    %c0_311 = arith.constant 0 : index
    %651 = vector.load %arg5[%c3_309, %c0_310, %c0_311] : memref<4x32x32xbf16, #tpu.memory_space<vmem>>, vector<1x32x32xbf16>
    %652 = vector.shape_cast %651 : vector<1x32x32xbf16> to vector<32x32xbf16>
    %cst_312 = arith.constant dense<0.000000e+00> : vector<16x32xf32>
    %653 = tpu.matmul %650, %652, %cst_312 {dimension_numbers = #tpu.dot_dimension_numbers<[1], [0], [0], [1], [0, 0, 1, 1], [], []>} : vector<16x32xbf16>, vector<32x32xbf16>, vector<16x32xf32> -> vector<16x32xf32>
    %c3_313 = arith.constant 3 : index
    %c0_314 = arith.constant 0 : index
    %c0_315 = arith.constant 0 : index
    %654 = vector.load %arg6[%c3_313, %c0_314, %c0_315] : memref<4x1x32xf32, #tpu.memory_space<vmem>>, vector<1x1x32xf32>
    %655 = vector.shape_cast %654 : vector<1x1x32xf32> to vector<1x32xf32>
    %656 = vector.broadcast %655 : vector<1x32xf32> to vector<16x32xf32>
    %657 = arith.addf %653, %656 : vector<16x32xf32>
    %658 = arith.addf %537, %657 : vector<16x32xf32>
    %c3_316 = arith.constant 3 : index
    %c0_317 = arith.constant 0 : index
    %c0_318 = arith.constant 0 : index
    %659 = vector.load %arg7[%c3_316, %c0_317, %c0_318] : memref<4x1x32xf32, #tpu.memory_space<vmem>>, vector<1x1x32xf32>
    %660 = vector.shape_cast %659 : vector<1x1x32xf32> to vector<1x32xf32>
    %c3_319 = arith.constant 3 : index
    %c0_320 = arith.constant 0 : index
    %c0_321 = arith.constant 0 : index
    %661 = vector.load %arg8[%c3_319, %c0_320, %c0_321] : memref<4x1x32xf32, #tpu.memory_space<vmem>>, vector<1x1x32xf32>
    %662 = vector.shape_cast %661 : vector<1x1x32xf32> to vector<1x32xf32>
    %cst_322 = arith.constant dense<0.000000e+00> : vector<16xf32>
    %663 = vector.multi_reduction <add>, %658, %cst_322 [1] : vector<16x32xf32> to vector<16xf32>
    %664 = vector.shape_cast %663 : vector<16xf32> to vector<16x1xf32>
    %cst_323 = arith.constant 3.200000e+01 : f32
    %665 = vector.broadcast %cst_323 : f32 to vector<16x1xf32>
    %666 = arith.divf %664, %665 : vector<16x1xf32>
    %667 = arith.mulf %658, %658 : vector<16x32xf32>
    %cst_324 = arith.constant dense<0.000000e+00> : vector<16xf32>
    %668 = vector.multi_reduction <add>, %667, %cst_324 [1] : vector<16x32xf32> to vector<16xf32>
    %669 = vector.shape_cast %668 : vector<16xf32> to vector<16x1xf32>
    %cst_325 = arith.constant 3.200000e+01 : f32
    %670 = vector.broadcast %cst_325 : f32 to vector<16x1xf32>
    %671 = arith.divf %669, %670 : vector<16x1xf32>
    %672 = arith.mulf %666, %666 : vector<16x1xf32>
    %673 = arith.subf %671, %672 : vector<16x1xf32>
    %cst_326 = arith.constant 0.000000e+00 : f32
    %674 = vector.broadcast %cst_326 : f32 to vector<16x1xf32>
    %675 = arith.maximumf %673, %674 : vector<16x1xf32>
    %676 = vector.broadcast %666 : vector<16x1xf32> to vector<16x32xf32>
    %677 = arith.subf %658, %676 : vector<16x32xf32>
    %cst_327 = arith.constant 9.99999974E-6 : f32
    %678 = vector.broadcast %cst_327 : f32 to vector<16x1xf32>
    %679 = arith.addf %675, %678 : vector<16x1xf32>
    %680 = math.rsqrt %679 : vector<16x1xf32>
    %681 = vector.broadcast %680 : vector<16x1xf32> to vector<16x32xf32>
    %682 = arith.mulf %677, %681 : vector<16x32xf32>
    %683 = vector.broadcast %660 : vector<1x32xf32> to vector<16x32xf32>
    %684 = arith.mulf %682, %683 : vector<16x32xf32>
    %685 = vector.broadcast %662 : vector<1x32xf32> to vector<16x32xf32>
    %686 = arith.addf %684, %685 : vector<16x32xf32>
    %687 = arith.truncf %686 : vector<16x32xf32> to vector<16x32xbf16>
    %c3_328 = arith.constant 3 : index
    %c0_329 = arith.constant 0 : index
    %c0_330 = arith.constant 0 : index
    %688 = vector.load %arg9[%c3_328, %c0_329, %c0_330] : memref<4x32x128xbf16, #tpu.memory_space<vmem>>, vector<1x32x128xbf16>
    %689 = vector.shape_cast %688 : vector<1x32x128xbf16> to vector<32x128xbf16>
    %cst_331 = arith.constant dense<0.000000e+00> : vector<16x128xf32>
    %690 = tpu.matmul %687, %689, %cst_331 {dimension_numbers = #tpu.dot_dimension_numbers<[1], [0], [0], [1], [0, 0, 1, 1], [], []>} : vector<16x32xbf16>, vector<32x128xbf16>, vector<16x128xf32> -> vector<16x128xf32>
    %c3_332 = arith.constant 3 : index
    %c0_333 = arith.constant 0 : index
    %c0_334 = arith.constant 0 : index
    %691 = vector.load %arg10[%c3_332, %c0_333, %c0_334] : memref<4x1x128xf32, #tpu.memory_space<vmem>>, vector<1x1x128xf32>
    %692 = vector.shape_cast %691 : vector<1x1x128xf32> to vector<1x128xf32>
    %693 = vector.broadcast %692 : vector<1x128xf32> to vector<16x128xf32>
    %694 = arith.addf %690, %693 : vector<16x128xf32>
    %695 = arith.mulf %694, %694 : vector<16x128xf32>
    %696 = arith.mulf %694, %695 : vector<16x128xf32>
    %cst_335 = arith.constant 4.471500e-02 : f32
    %697 = vector.broadcast %cst_335 : f32 to vector<16x128xf32>
    %698 = arith.mulf %697, %696 : vector<16x128xf32>
    %699 = arith.addf %694, %698 : vector<16x128xf32>
    %cst_336 = arith.constant 0.797884583 : f32
    %700 = vector.broadcast %cst_336 : f32 to vector<16x128xf32>
    %701 = arith.mulf %700, %699 : vector<16x128xf32>
    %702 = math.tanh %701 : vector<16x128xf32>
    %cst_337 = arith.constant 1.000000e+00 : f32
    %703 = vector.broadcast %cst_337 : f32 to vector<16x128xf32>
    %704 = arith.addf %703, %702 : vector<16x128xf32>
    %cst_338 = arith.constant 5.000000e-01 : f32
    %705 = vector.broadcast %cst_338 : f32 to vector<16x128xf32>
    %706 = arith.mulf %705, %704 : vector<16x128xf32>
    %707 = arith.mulf %694, %706 : vector<16x128xf32>
    %708 = arith.truncf %707 : vector<16x128xf32> to vector<16x128xbf16>
    %c3_339 = arith.constant 3 : index
    %c0_340 = arith.constant 0 : index
    %c0_341 = arith.constant 0 : index
    %709 = vector.load %arg11[%c3_339, %c0_340, %c0_341] : memref<4x128x32xbf16, #tpu.memory_space<vmem>>, vector<1x128x32xbf16>
    %710 = vector.shape_cast %709 : vector<1x128x32xbf16> to vector<128x32xbf16>
    %cst_342 = arith.constant dense<0.000000e+00> : vector<16x32xf32>
    %711 = tpu.matmul %708, %710, %cst_342 {dimension_numbers = #tpu.dot_dimension_numbers<[1], [0], [0], [1], [0, 0, 1, 1], [], []>} : vector<16x128xbf16>, vector<128x32xbf16>, vector<16x32xf32> -> vector<16x32xf32>
    %c3_343 = arith.constant 3 : index
    %c0_344 = arith.constant 0 : index
    %c0_345 = arith.constant 0 : index
    %712 = vector.load %arg12[%c3_343, %c0_344, %c0_345] : memref<4x1x32xf32, #tpu.memory_space<vmem>>, vector<1x1x32xf32>
    %713 = vector.shape_cast %712 : vector<1x1x32xf32> to vector<1x32xf32>
    %714 = vector.broadcast %713 : vector<1x32xf32> to vector<16x32xf32>
    %715 = arith.addf %711, %714 : vector<16x32xf32>
    %716 = arith.addf %658, %715 : vector<16x32xf32>
    %c0_346 = arith.constant 0 : index
    %c0_347 = arith.constant 0 : index
    %717 = vector.load %arg13[%c0_346, %c0_347] : memref<1x32xf32, #tpu.memory_space<vmem>>, vector<1x32xf32>
    %c0_348 = arith.constant 0 : index
    %c0_349 = arith.constant 0 : index
    %718 = vector.load %arg14[%c0_348, %c0_349] : memref<1x32xf32, #tpu.memory_space<vmem>>, vector<1x32xf32>
    %cst_350 = arith.constant dense<0.000000e+00> : vector<16xf32>
    %719 = vector.multi_reduction <add>, %716, %cst_350 [1] : vector<16x32xf32> to vector<16xf32>
    %720 = vector.shape_cast %719 : vector<16xf32> to vector<16x1xf32>
    %cst_351 = arith.constant 3.200000e+01 : f32
    %721 = vector.broadcast %cst_351 : f32 to vector<16x1xf32>
    %722 = arith.divf %720, %721 : vector<16x1xf32>
    %723 = arith.mulf %716, %716 : vector<16x32xf32>
    %cst_352 = arith.constant dense<0.000000e+00> : vector<16xf32>
    %724 = vector.multi_reduction <add>, %723, %cst_352 [1] : vector<16x32xf32> to vector<16xf32>
    %725 = vector.shape_cast %724 : vector<16xf32> to vector<16x1xf32>
    %cst_353 = arith.constant 3.200000e+01 : f32
    %726 = vector.broadcast %cst_353 : f32 to vector<16x1xf32>
    %727 = arith.divf %725, %726 : vector<16x1xf32>
    %728 = arith.mulf %722, %722 : vector<16x1xf32>
    %729 = arith.subf %727, %728 : vector<16x1xf32>
    %cst_354 = arith.constant 0.000000e+00 : f32
    %730 = vector.broadcast %cst_354 : f32 to vector<16x1xf32>
    %731 = arith.maximumf %729, %730 : vector<16x1xf32>
    %732 = vector.broadcast %722 : vector<16x1xf32> to vector<16x32xf32>
    %733 = arith.subf %716, %732 : vector<16x32xf32>
    %cst_355 = arith.constant 9.99999974E-6 : f32
    %734 = vector.broadcast %cst_355 : f32 to vector<16x1xf32>
    %735 = arith.addf %731, %734 : vector<16x1xf32>
    %736 = math.rsqrt %735 : vector<16x1xf32>
    %737 = vector.broadcast %736 : vector<16x1xf32> to vector<16x32xf32>
    %738 = arith.mulf %733, %737 : vector<16x32xf32>
    %739 = vector.broadcast %717 : vector<1x32xf32> to vector<16x32xf32>
    %740 = arith.mulf %738, %739 : vector<16x32xf32>
    %741 = vector.broadcast %718 : vector<1x32xf32> to vector<16x32xf32>
    %742 = arith.addf %740, %741 : vector<16x32xf32>
    %743 = arith.truncf %742 : vector<16x32xf32> to vector<16x32xbf16>
    %c0_356 = arith.constant 0 : index
    %c0_357 = arith.constant 0 : index
    %744 = vector.load %arg15[%c0_356, %c0_357] : memref<32x128xbf16, #tpu.memory_space<vmem>>, vector<32x128xbf16>
    %cst_358 = arith.constant dense<0.000000e+00> : vector<16x128xf32>
    %745 = tpu.matmul %743, %744, %cst_358 {dimension_numbers = #tpu.dot_dimension_numbers<[1], [0], [0], [1], [0, 0, 1, 1], [], []>} : vector<16x32xbf16>, vector<32x128xbf16>, vector<16x128xf32> -> vector<16x128xf32>
    %c0_359 = arith.constant 0 : index
    %c0_360 = arith.constant 0 : index
    %746 = vector.load %arg16[%c0_359, %c0_360] : memref<1x128xf32, #tpu.memory_space<vmem>>, vector<1x128xf32>
    %747 = vector.broadcast %746 : vector<1x128xf32> to vector<16x128xf32>
    %748 = arith.addf %745, %747 : vector<16x128xf32>
    %c0_361 = arith.constant 0 : index
    %c0_362 = arith.constant 0 : index
    %749 = vector.load %arg17[%c0_361, %c0_362] : memref<16x128xf32, #tpu.memory_space<vmem>>, vector<16x128xf32>
    tpu.vector_store %arg17[%c0_361, %c0_362], %748 {strides = array<i32>} : memref<16x128xf32, #tpu.memory_space<vmem>>, vector<16x128xf32>,
    return
  }
  func.func @transform_0(%arg0: i32) -> (i32, i32) {
    %c0_i32 = arith.constant 0 : i32
    %c0_i32_0 = arith.constant 0 : i32
    %c0_i32_1 = arith.constant 0 : i32
    return %c0_i32, %c0_i32_0 : i32, i32
  }
  func.func @transform_1(%arg0: i32) -> (i32, i32, i32) {
    %c0_i32 = arith.constant 0 : i32
    %c0_i32_0 = arith.constant 0 : i32
    %c0_i32_1 = arith.constant 0 : i32
    %c0_i32_2 = arith.constant 0 : i32
    return %c0_i32, %c0_i32_0, %c0_i32_1 : i32, i32, i32
  }
  func.func @transform_2(%arg0: i32) -> (i32, i32, i32) {
    %c0_i32 = arith.constant 0 : i32
    %c0_i32_0 = arith.constant 0 : i32
    %c0_i32_1 = arith.constant 0 : i32
    %c0_i32_2 = arith.constant 0 : i32
    return %c0_i32, %c0_i32_0, %c0_i32_1 : i32, i32, i32
  }
  func.func @transform_3(%arg0: i32) -> (i32, i32, i32) {
    %c0_i32 = arith.constant 0 : i32
    %c0_i32_0 = arith.constant 0 : i32
    %c0_i32_1 = arith.constant 0 : i32
    %c0_i32_2 = arith.constant 0 : i32
    return %c0_i32, %c0_i32_0, %c0_i32_1 : i32, i32, i32
  }
  func.func @transform_4(%arg0: i32) -> (i32, i32, i32) {
    %c0_i32 = arith.constant 0 : i32
    %c0_i32_0 = arith.constant 0 : i32
    %c0_i32_1 = arith.constant 0 : i32
    %c0_i32_2 = arith.constant 0 : i32
    return %c0_i32, %c0_i32_0, %c0_i32_1 : i32, i32, i32
  }
  func.func @transform_5(%arg0: i32) -> (i32, i32, i32) {
    %c0_i32 = arith.constant 0 : i32
    %c0_i32_0 = arith.constant 0 : i32
    %c0_i32_1 = arith.constant 0 : i32
    %c0_i32_2 = arith.constant 0 : i32
    return %c0_i32, %c0_i32_0, %c0_i32_1 : i32, i32, i32
  }
  func.func @transform_6(%arg0: i32) -> (i32, i32, i32) {
    %c0_i32 = arith.constant 0 : i32
    %c0_i32_0 = arith.constant 0 : i32
    %c0_i32_1 = arith.constant 0 : i32
    %c0_i32_2 = arith.constant 0 : i32
    return %c0_i32, %c0_i32_0, %c0_i32_1 : i32, i32, i32
  }
  func.func @transform_7(%arg0: i32) -> (i32, i32, i32) {
    %c0_i32 = arith.constant 0 : i32
    %c0_i32_0 = arith.constant 0 : i32
    %c0_i32_1 = arith.constant 0 : i32
    %c0_i32_2 = arith.constant 0 : i32
    return %c0_i32, %c0_i32_0, %c0_i32_1 : i32, i32, i32
  }
  func.func @transform_8(%arg0: i32) -> (i32, i32, i32) {
    %c0_i32 = arith.constant 0 : i32
    %c0_i32_0 = arith.constant 0 : i32
    %c0_i32_1 = arith.constant 0 : i32
    %c0_i32_2 = arith.constant 0 : i32
    return %c0_i32, %c0_i32_0, %c0_i32_1 : i32, i32, i32
  }
  func.func @transform_9(%arg0: i32) -> (i32, i32, i32) {
    %c0_i32 = arith.constant 0 : i32
    %c0_i32_0 = arith.constant 0 : i32
    %c0_i32_1 = arith.constant 0 : i32
    %c0_i32_2 = arith.constant 0 : i32
    return %c0_i32, %c0_i32_0, %c0_i32_1 : i32, i32, i32
  }
  func.func @transform_10(%arg0: i32) -> (i32, i32, i32) {
    %c0_i32 = arith.constant 0 : i32
    %c0_i32_0 = arith.constant 0 : i32
    %c0_i32_1 = arith.constant 0 : i32
    %c0_i32_2 = arith.constant 0 : i32
    return %c0_i32, %c0_i32_0, %c0_i32_1 : i32, i32, i32
  }
  func.func @transform_11(%arg0: i32) -> (i32, i32, i32) {
    %c0_i32 = arith.constant 0 : i32
    %c0_i32_0 = arith.constant 0 : i32
    %c0_i32_1 = arith.constant 0 : i32
    %c0_i32_2 = arith.constant 0 : i32
    return %c0_i32, %c0_i32_0, %c0_i32_1 : i32, i32, i32
  }
  func.func @transform_12(%arg0: i32) -> (i32, i32) {
    %c0_i32 = arith.constant 0 : i32
    %c0_i32_0 = arith.constant 0 : i32
    %c0_i32_1 = arith.constant 0 : i32
    return %c0_i32, %c0_i32_0 : i32, i32
  }
  func.func @transform_13(%arg0: i32) -> (i32, i32) {
    %c0_i32 = arith.constant 0 : i32
    %c0_i32_0 = arith.constant 0 : i32
    %c0_i32_1 = arith.constant 0 : i32
    return %c0_i32, %c0_i32_0 : i32, i32
  }
  func.func @transform_14(%arg0: i32) -> (i32, i32) {
    %c0_i32 = arith.constant 0 : i32
    %c0_i32_0 = arith.constant 0 : i32
    %c0_i32_1 = arith.constant 0 : i32
    return %c0_i32, %c0_i32_0 : i32, i32
  }
  func.func @transform_15(%arg0: i32) -> (i32, i32) {
    %c0_i32 = arith.constant 0 : i32
    %c0_i32_0 = arith.constant 0 : i32
    %c0_i32_1 = arith.constant 0 : i32
    return %c0_i32, %c0_i32_0 : i32, i32
  }
  func.func @transform_16(%arg0: i32) -> (i32, i32) {
    %c0_i32 = arith.constant 0 : i32
    %c0_i32_0 = arith.constant 0 : i32
    %c0_i32_1 = arith.constant 0 : i32
    return %c0_i32, %c0_i32_0 : i32, i32
  }
}

</mosaic_0001>

<bundles_post_ra>
// kernel: tpu_custom_call.1
= control target key start
LH: loop header
LB: loop body
LE: loop exit
PB: predicated region body
PF: predicated region fallthrough
CT: control target
= control target key end

     0   :  { %s9964_s0 = inlined_call_operand.vmem [shape: f32[16,32], index: 0, kind: input, shape index: {}]   ;;  %s9965_s1 = inlined_call_operand.vmem [shape: f32[4,1,32], index: 1, kind: input, shape index: {}]   ;;  %s9966_s2 = inlined_call_operand.vmem [shape: f32[4,1,32], index: 2, kind: input, shape index: {}]   ;;  %s9967_s3 = inlined_call_operand.vmem [shape: bf16[4,32,96], index: 3, kind: input, shape index: {}]   ;;  %s9968_s4 = inlined_call_operand.vmem [shape: bf16[4,32,32], index: 4, kind: input, shape index: {}]   ;;  %s9969_s5 = inlined_call_operand.vmem [shape: f32[4,1,32], index: 5, kind: input, shape index: {}]   ;;  %s9970_s6 = inlined_call_operand.vmem [shape: f32[4,1,32], index: 6, kind: input, shape index: {}]   ;;  %s9971_s7 = inlined_call_operand.vmem [shape: f32[4,1,32], index: 7, kind: input, shape index: {}]   ;;  %s9972_s8 = inlined_call_operand.vmem [shape: bf16[4,32,128], index: 8, kind: input, shape index: {}]   ;;  %s9973_s9 = inlined_call_operand.vmem [shape: f32[4,1,128], index: 9, kind: input, shape index: {}]   ;;  %s9974_s10 = inlined_call_operand.vmem [shape: bf16[4,128,32], index: 10, kind: input, shape index: {}]   ;;  %s9975_s11 = inlined_call_operand.vmem [shape: f32[4,1,32], index: 11, kind: input, shape index: {}]   ;;  %s9976_s12 = inlined_call_operand.vmem [shape: f32[1,32], index: 12, kind: input, shape index: {}]   ;;  %s9977_s13 = inlined_call_operand.vmem [shape: f32[1,32], index: 13, kind: input, shape index: {}]   ;;  %s9978_s14 = inlined_call_operand.vmem [shape: bf16[32,128], index: 14, kind: input, shape index: {}]   ;;  %s9979_s15 = inlined_call_operand.vmem [shape: f32[1,128], index: 15, kind: input, shape index: {}]   ;;  %s9980_s16 = inlined_call_operand.hbm [shape: f32[16,128], index: 16, kind: output, shape index: {}]  }
   0x1   :  { %10011 = sst [smem:[#allocation6_spill]] %s9964_s0 }
   0x2   :  { %10012 = sst [smem:[#allocation7_spill]] %s9976_s12 }
   0x3   :  { %10013 = sst [smem:[#allocation8_spill]] %s9977_s13 }
   0x4   :  { %10014 = sst [smem:[#allocation9_spill]] %s9979_s15 }
   0x5   :  { %10015 = sst [smem:[#allocation10_spill]] %s9980_s16 }
   0x6   :  { %s10016_s23 = sld [smem:[#allocation6_spill]]  ;;  %vm59_vm0 = vcmask 261120   ;;  %v8428_v8 = vld [vmem:[%s9967_s3] sm:$0xff]   ;;  %v8690_v9 = vmov 0.0   ;;  %v8429_v10 = vld [vmem:[%s9967_s3 + $0x8] sm:$0xff]   ;;  %vm8691_vm1 = vmmov 0  }
   0x7   :  { %7906 = vmatprep.subr.bf16.mxu0 %v8690_v9  ;;  %7910 = vmatprep.mubr.msk.bf16.mxu0 %vm8691_vm1, %v8690_v9 }
   0x8   :  { %7907 = vmatpush3.bf16.msra.mxu0 %v8428_v8  ;;  %7914 = vmatprep.subr.mxu1 %v8690_v9 }
   0x9   :  { %7908 = vmatprep.subr.bf16.mxu0 %v8690_v9  ;;  %7916 = vmatprep.mubr.msk.f32.mxu1 %vm8691_vm1, %v8690_v9 }
   0xc   :  { %v8796_v0 = vld [vmem:[%s10016_s23] sm:$0xff]  ;;  %v8801_v1 = vld [vmem:[%s10016_s23 + $0x8] sm:$0xff]  ;;  %7909 = vmatpush3.bf16.msra.mxu0 %v8429_v10 }
   0xd   :  { %v60_v2 = vsel %vm59_vm0, %v8796_v0, 0.0  ;;  %v69_v3 = vmul.f32 %v8796_v0, %v8796_v0  ;;  %v63_v4 = vsel %vm59_vm0, %v8801_v1, 0.0  ;;  %v70_v5 = vmul.f32 %v8801_v1, %v8801_v1  ;;  %7929 = vmatprep.subr.mxu0 %v8690_v9 }
   0xe   :  { %61 = vadd.xlane.f32.xlu0 %v60_v2 }
   0xf   :  { %v71_v6 = vsel %vm59_vm0, %v69_v3, 0.0  ;;  %v74_v7 = vsel %vm59_vm0, %v70_v5, 0.0 }
  0x10   :  { %72 = vadd.xlane.f32.xlu1 %v71_v6 }
  0x12   :  { %64 = vadd.xlane.f32.xlu0 %v63_v4 }
  0x14   :  { %75 = vadd.xlane.f32.xlu1 %v74_v7 }
  0x15   :  { %21 = vsyncpa [#allocation4], 0  ;;  %v7400_v30 = vld [vmem:[%s9965_s1] ss:$0 sm:$0xff]  ;;  %s10008_s19 = smov 96   ;;  %vm173_vm2 = vcmask 64512  }
  0x16   :  { %v7401_v35 = vld [vmem:[%s9966_s2] ss:$0 sm:$0xff]  ;;  %s10006_s20 = smov 64   ;;  %s10004_s21 = smov 88   ;;  %vm843_vm3 = vcmask 130112   ;;  %vm1186_vm4 = vcmask 195712  }
  0x17   :  { %s10002_s22 = smov 120   ;;  %s10000_s23 = smov 56   ;;  %vm1529_vm5 = vcmask 261312  }
  0x18   :  { %s9998_s24 = smov 80   ;;  %s9996_s25 = smov 112  }
  0x19   :  { %s9994_s26 = smov 48   ;;  %s9992_s27 = smov 72  }
  0x1a   :  { %s9990_s28 = smov 104   ;;  %s9986_s29 = smov 40  }
  0x1b   :  { %s9984_s30 = smov 8   ;;  %s9982_s0 = smov 16  }
  0x1c   :  { %s10017_s17 = smov 72   ;;  %s10018_s18 = smov 104  }
  0x9b   :  { %v62_v11 = vpop.xlane.xlu0 %61 }
  0x9c   :  { %v67_v12 = vmul.f32 0.03125, %v62_v11 }
  0x9d   :  { %v73_v13 = vpop.xlane.xlu1 %72 }
  0x9e   :  { %v79_v14 = vmul.f32 %v67_v12, %v67_v12  ;;  %v77_v15 = vmul.f32 0.03125, %v73_v13  ;;  %v85_v27 = vsub.f32 %v8796_v0, %v67_v12 }
  0x9f   :  { %v65_v16 = vpop.xlane.xlu0 %64 }
  0xa0   :  { %v81_v17 = vsub.f32 %v77_v15, %v79_v14  ;;  %v68_v18 = vmul.f32 0.03125, %v65_v16 }
  0xa1   :  { %v76_v19 = vpop.xlane.xlu1 %75 }
  0xa2   :  { %v83_v20 = vmax.f32 %v81_v17, 0.0  ;;  %v80_v21 = vmul.f32 %v68_v18, %v68_v18  ;;  %v78_v22 = vmul.f32 0.03125, %v76_v19  ;;  %v86_v31 = vsub.f32 %v8801_v1, %v68_v18 }
  0xa4   :  { %v87_v23 = vadd.f32 1e-05, %v83_v20  ;;  %v82_v24 = vsub.f32 %v78_v22, %v80_v21 }
  0xa6   :  { %8486 = vrsqrt.f32 %v87_v23  ;;  %v84_v25 = vmax.f32 %v82_v24, 0.0 }
  0xa8   :  { %v88_v26 = vadd.f32 1e-05, %v84_v25 }
  0xaa   :  { %8488 = vrsqrt.f32 %v88_v26 }
  0xb0   :  { %v8487_v28 = vpop.eup %8486 }
  0xb1   :  { %v91_v29 = vmul.f32 %v8487_v28, %v85_v27 }
  0xb3   :  { %v99_v34 = vmul.f32 %v7400_v30, %v91_v29 }
  0xb4   :  { %v8489_v32 = vpop.eup %8488 }
  0xb5   :  { %v92_v33 = vmul.f32 %v8489_v32, %v86_v31  ;;  %v107_v37 = vadd.f32 %v7401_v35, %v99_v34 }
  0xb7   :  { %v100_v36 = vmul.f32 %v7400_v30, %v92_v33 }
  0xb9   :  { %v108_v38 = vadd.f32 %v7401_v35, %v100_v36 }
  0xbb   :  { %v109_v39 = vpack.c.bf16 %v108_v38, %v107_v37 }
  0xbd   :  { %7911 = vmatmul.mubr.msk.bf16.vlgmr.msra.gmra.mrb[0].mxu0 %vm59_vm0, %v109_v39 }
  0xbe   :  { %7931 = vmatprep.mubr.msk.f32.mxu0 %vm8691_vm1, %v8690_v9 }
 0x190   :  { %v8838_v40 = vpop.f32.mrb[0].mxu0 }
 0x191   :  { %171 = vrot.lane.b32.xlu0 %v8838_v40, %s10008_s19  ;;  %v7912_v41 = vpop.f32.mrb[1].mxu0 }
 0x192   :  { %v8842_v42 = vpop.f32.mrb[2].mxu0 }
 0x193   :  { %249 = vrot.lane.b32.xlu1 %v8842_v42, %s10008_s19  ;;  %v7913_v43 = vpop.f32.mrb[3].mxu0 }
 0x203   :  { %v172_v44 = vpop.permute.xlu0 %171 }
 0x204   :  { %7915 = vmatpush3.xpose.msk.msra.mxu1 %vm173_vm2, %v172_v44 }
 0x205   :  { %7919 = vmatprep.subr.mxu1 %v8690_v9  ;;  %v250_v45 = vpop.permute.xlu1 %249 }
 0x207   :  { %7917 = vmatmul.mubr.msk.f32.vlgmr.msra.gmra.mrb[0].mxu1 %vm173_vm2, %v8838_v40 }
 0x208   :  { %7920 = vmatpush3.xpose.msk.msra.mxu1 %vm173_vm2, %v250_v45  ;;  %7921 = vmatprep.mubr.msk.f32.mxu1 %vm8691_vm1, %v8690_v9 }
 0x209   :  { %7924 = vmatprep.subr.mxu1 %v8690_v9 }
 0x20b   :  { %7922 = vmatmul.mubr.msk.f32.vlgmr.msra.gmra.mrb[2].mxu1 %vm173_vm2, %v8842_v42 }
 0x20c   :  { %7926 = vmatprep.mubr.msk.f32.mxu1 %vm8691_vm1, %v8690_v9 }
 0x2da   :  { %v244_v46 = vpop.f32.mrb[0].mxu1 }
 0x2db   :  { %v325_v47 = vmul.f32 0.35355338, %v244_v46  ;;  %v7918_v48 = vpop.f32.mrb[1].mxu1 }
 0x2dd   :  { %v327_v49 = vsel %vm173_vm2, %v325_v47, -inf }
 0x2de   :  { %328 = vmax.xlane.f32.xlu1 %v327_v49  ;;  %v321_v50 = vpop.f32.mrb[2].mxu1 }
 0x2df   :  { %v326_v51 = vmul.f32 0.35355338, %v321_v50  ;;  %v7923_v52 = vpop.f32.mrb[3].mxu1 }
 0x2e1   :  { %v330_v53 = vsel %vm173_vm2, %v326_v51, -inf }
 0x2e2   :  { %331 = vmax.xlane.f32.xlu0 %v330_v53 }
 0x2ef   :  { %425 = vrot.lane.b32.xlu1 %v8842_v42, %s10006_s20 }
 0x2f3   :  { %505 = vrot.lane.b32.xlu1 %v8838_v40, %s10004_s21 }
 0x2f7   :  { %583 = vrot.lane.b32.xlu1 %v8842_v42, %s10004_s21 }
 0x2f8   :  { %349 = vrot.lane.b32.xlu0 %v8838_v40, %s10006_s20 }
 0x36b   :  { %v329_v54 = vpop.xlane.xlu1 %328 }
 0x36c   :  { %v333_v55 = vsub.f32 %v325_v47, %v329_v54 }
 0x36e   :  { %v335_v56 = vmul.f32 1.442695, %v333_v55 }
 0x36f   :  { %v332_v57 = vpop.xlane.xlu0 %331  ;;  %v426_v58 = vpop.permute.xlu1 %425 }
 0x370   :  { %8490 = vpow2.f32 %v335_v56  ;;  %v334_v59 = vsub.f32 %v326_v51, %v332_v57  ;;  %7930 = vmatpush3.msra.mxu0 %v426_v58 }
 0x371   :  { %7939 = vmatprep.subr.mxu0 %v8690_v9 }
 0x372   :  { %v337_v60 = vmul.f32 1.442695, %v334_v59 }
 0x373   :  { %v350_v61 = vpop.permute.xlu0 %349  ;;  %v506_v4 = vpop.permute.xlu1 %505 }
 0x374   :  { %8492 = vpow2.f32 %v337_v60  ;;  %7925 = vmatpush3.msra.mxu1 %v350_v61 }
 0x375   :  { %7934 = vmatprep.subr.mxu1 %v8690_v9 }
 0x377   :  { %v584_v5 = vpop.permute.xlu1 %583 }
 0x37a   :  { %v8491_v62 = vpop.eup %8490 }
 0x37b   :  { %v339_v63 = vsel %vm173_vm2, %v8491_v62, 0.0 }
 0x37c   :  { %340 = vadd.xlane.f32.xlu0 %v339_v63 }
 0x37e   :  { %v8493_v2 = vpop.eup %8492 }
 0x37f   :  { %v342_v3 = vsel %vm173_vm2, %v8493_v2, 0.0 }
 0x380   :  { %343 = vadd.xlane.f32.xlu1 %v342_v3 }
 0x391   :  { %581 = vrot.lane.b32.xlu1 %v8842_v42, %s10002_s22 }
 0x392   :  { %503 = vrot.lane.b32.xlu0 %v8838_v40, %s10002_s22 }
 0x409   :  { %v341_v6 = vpop.xlane.xlu0 %340 }
 0x40a   :  { %8494 = vrcp.f32 %v341_v6 }
 0x40d   :  { %v344_v7 = vpop.xlane.xlu1 %343  ;;  %v504_v13 = vpop.permute.xlu0 %503 }
 0x40e   :  { %8496 = vrcp.f32 %v344_v7 }
 0x411   :  { %v582_v14 = vpop.permute.xlu1 %581 }
 0x414   :  { %v8495_v8 = vpop.eup %8494 }
 0x415   :  { %v347_v10 = vmul.f32 %v8495_v8, %v8491_v62 }
 0x417   :  { %7927 = vmatmul.mubr.msk.f32.vlgmr.msra.gmra.mrb[4].mxu1 %vm173_vm2, %v347_v10 }
 0x418   :  { %v8497_v11 = vpop.eup %8496  ;;  %7935 = vmatpush3.xpose.msk.msra.mxu1 %vm173_vm2, %v506_v4  ;;  %7936 = vmatprep.mubr.msk.f32.mxu1 %vm8691_vm1, %v8690_v9 }
 0x419   :  { %v348_v12 = vmul.f32 %v8497_v11, %v8493_v2  ;;  %7944 = vmatprep.subr.mxu1 %v8690_v9 }
 0x41b   :  { %7932 = vmatmul.mubr.msk.f32.vlgmr.msra.gmra.mrb[4].mxu0 %vm173_vm2, %v348_v12  ;;  %7937 = vmatmul.mubr.msk.f32.vlgmr.msra.gmra.mrb[6].mxu1 %vm173_vm2, %v504_v13 }
 0x41c   :  { %7940 = vmatpush3.xpose.msk.msra.mxu0 %vm173_vm2, %v584_v5  ;;  %7941 = vmatprep.mubr.msk.f32.mxu0 %vm8691_vm1, %v8690_v9 }
 0x41d   :  { %7949 = vmatprep.subr.mxu0 %v8690_v9  ;;  %7946 = vmatprep.mubr.msk.f32.mxu1 %vm8691_vm1, %v8690_v9 }
 0x41f   :  { %7942 = vmatmul.mubr.msk.f32.vlgmr.msra.gmra.mrb[6].mxu0 %vm173_vm2, %v582_v14 }
 0x420   :  { %7951 = vmatprep.mubr.msk.f32.mxu0 %vm8691_vm1, %v8690_v9 }
 0x4ea   :  { %v421_v15 = vpop.f32.mrb[4].mxu1 }
 0x4eb   :  { %501 = vst.msk [vmem:[#allocation2] sm:$0xff] %vm173_vm2, %v421_v15  ;;  %v7928_v16 = vpop.f32.mrb[5].mxu1 }
 0x4ee   :  { %v497_v17 = vpop.f32.mrb[4].mxu0  ;;  %v577_v18 = vpop.f32.mrb[6].mxu1 }
 0x4ef   :  { %502 = vst.msk [vmem:[#allocation2 + $0x8] sm:$0xff] %vm173_vm2, %v497_v17  ;;  %v659_v19 = vmul.f32 0.35355338, %v577_v18  ;;  %v7933_v20 = vpop.f32.mrb[5].mxu0  ;;  %v7938_v21 = vpop.f32.mrb[7].mxu1 }
 0x4f1   :  { %v661_v22 = vsel %vm173_vm2, %v659_v19, -inf }
 0x4f2   :  { %662 = vmax.xlane.f32.xlu0 %v661_v22  ;;  %v655_v23 = vpop.f32.mrb[6].mxu0 }
 0x4f3   :  { %v660_v24 = vmul.f32 0.35355338, %v655_v23  ;;  %v7943_v25 = vpop.f32.mrb[7].mxu0 }
 0x4f5   :  { %v664_v26 = vsel %vm173_vm2, %v660_v24, -inf }
 0x4f6   :  { %665 = vmax.xlane.f32.xlu1 %v664_v26 }
 0x507   :  { %759 = vrot.lane.b32.xlu1 %v8842_v42, %s10000_s23 }
 0x508   :  { %683 = vrot.lane.b32.xlu0 %v8838_v40, %s10000_s23 }
 0x50b   :  { %848 = vrot.lane.b32.xlu1 %v8838_v40, %s9998_s24 }
 0x50f   :  { %926 = vrot.lane.b32.xlu1 %v8842_v42, %s9998_s24 }
 0x513   :  { %924 = vrot.lane.b32.xlu1 %v8842_v42, %s9996_s25 }
 0x57f   :  { %v663_v27 = vpop.xlane.xlu0 %662 }
 0x580   :  { %v667_v28 = vsub.f32 %v659_v19, %v663_v27 }
 0x582   :  { %v669_v29 = vmul.f32 1.442695, %v667_v28 }
 0x583   :  { %v684_v30 = vpop.permute.xlu0 %683  ;;  %v666_v31 = vpop.xlane.xlu1 %665 }
 0x584   :  { %8498 = vpow2.f32 %v669_v29  ;;  %v668_v32 = vsub.f32 %v660_v24, %v666_v31  ;;  %7945 = vmatpush3.msra.mxu1 %v684_v30 }
 0x585   :  { %7954 = vmatprep.subr.mxu1 %v8690_v9 }
 0x586   :  { %v671_v33 = vmul.f32 1.442695, %v668_v32 }
 0x587   :  { %v760_v34 = vpop.permute.xlu1 %759 }
 0x588   :  { %8500 = vpow2.f32 %v671_v33  ;;  %7950 = vmatpush3.msra.mxu0 %v760_v34 }
 0x589   :  { %7959 = vmatprep.subr.mxu0 %v8690_v9 }
 0x58b   :  { %v849_v43 = vpop.permute.xlu1 %848 }
 0x58e   :  { %v8499_v35 = vpop.eup %8498 }
 0x58f   :  { %v673_v36 = vsel %vm173_vm2, %v8499_v35, 0.0  ;;  %v927_v47 = vpop.permute.xlu1 %926 }
 0x590   :  { %674 = vadd.xlane.f32.xlu0 %v673_v36 }
 0x592   :  { %v8501_v37 = vpop.eup %8500 }
 0x593   :  { %v676_v38 = vsel %vm173_vm2, %v8501_v37, 0.0  ;;  %v925_v50 = vpop.permute.xlu1 %924 }
 0x594   :  { %677 = vadd.xlane.f32.xlu0 %v676_v38 }
 0x5aa   :  { %846 = vrot.lane.b32.xlu0 %v8838_v40, %s9996_s25 }
 0x61d   :  { %v675_v39 = vpop.xlane.xlu0 %674 }
 0x61e   :  { %8502 = vrcp.f32 %v675_v39 }
 0x621   :  { %v678_v41 = vpop.xlane.xlu0 %677 }
 0x622   :  { %8504 = vrcp.f32 %v678_v41 }
 0x625   :  { %v847_v49 = vpop.permute.xlu0 %846 }
 0x628   :  { %v8503_v44 = vpop.eup %8502 }
 0x629   :  { %v681_v45 = vmul.f32 %v8503_v44, %v8499_v35 }
 0x62b   :  { %7947 = vmatmul.mubr.msk.f32.vlgmr.msra.gmra.mrb[8].mxu1 %vm173_vm2, %v681_v45 }
 0x62c   :  { %v8505_v46 = vpop.eup %8504  ;;  %7955 = vmatpush3.xpose.msk.msra.mxu1 %vm173_vm2, %v849_v43  ;;  %7956 = vmatprep.mubr.msk.f32.mxu1 %vm8691_vm1, %v8690_v9 }
 0x62d   :  { %v682_v48 = vmul.f32 %v8505_v46, %v8501_v37  ;;  %7964 = vmatprep.subr.mxu1 %v8690_v9 }
 0x62f   :  { %7952 = vmatmul.mubr.msk.f32.vlgmr.msra.gmra.mrb[8].mxu0 %vm173_vm2, %v682_v48  ;;  %7957 = vmatmul.mubr.msk.f32.vlgmr.msra.gmra.mrb[10].mxu1 %vm173_vm2, %v847_v49 }
 0x630   :  { %7960 = vmatpush3.xpose.msk.msra.mxu0 %vm173_vm2, %v927_v47  ;;  %7961 = vmatprep.mubr.msk.f32.mxu0 %vm8691_vm1, %v8690_v9 }
 0x631   :  { %7969 = vmatprep.subr.mxu0 %v8690_v9  ;;  %7966 = vmatprep.mubr.msk.f32.mxu1 %vm8691_vm1, %v8690_v9 }
 0x633   :  { %7962 = vmatmul.mubr.msk.f32.vlgmr.msra.gmra.mrb[10].mxu0 %vm173_vm2, %v925_v50 }
 0x634   :  { %7971 = vmatprep.mubr.msk.f32.mxu0 %vm8691_vm1, %v8690_v9 }
 0x6fe   :  { %v8928_v51 = vpop.f32.mrb[8].mxu1 }
 0x6ff   :  { %v7948_v52 = vpop.f32.mrb[9].mxu1 }
 0x702   :  { %v8930_v53 = vpop.f32.mrb[8].mxu0  ;;  %v920_v54 = vpop.f32.mrb[10].mxu1 }
 0x703   :  { %v1002_v55 = vmul.f32 0.35355338, %v920_v54  ;;  %v7953_v56 = vpop.f32.mrb[9].mxu0  ;;  %v7958_v57 = vpop.f32.mrb[11].mxu1 }
 0x705   :  { %v1004_v58 = vsel %vm173_vm2, %v1002_v55, -inf }
 0x706   :  { %1005 = vmax.xlane.f32.xlu0 %v1004_v58  ;;  %v998_v59 = vpop.f32.mrb[10].mxu0  ;;  %v8430_v58 = vld [vmem:[%s9968_s4] sm:$0xff]  }
 0x707   :  { %v1003_v60 = vmul.f32 0.35355338, %v998_v59  ;;  %v7963_v61 = vpop.f32.mrb[11].mxu0  ;;  %v8431_v59 = vld [vmem:[%s9968_s4 + $0x8] sm:$0xff]  }
 0x709   :  { %v1007_v62 = vsel %vm173_vm2, %v1003_v60, -inf }
 0x70a   :  { %1008 = vmax.xlane.f32.xlu1 %v1007_v62 }
 0x71b   :  { %1102 = vrot.lane.b32.xlu1 %v8842_v42, %s9994_s26 }
 0x71c   :  { %1026 = vrot.lane.b32.xlu0 %v8838_v40, %s9994_s26 }
 0x71f   :  { %1191 = vrot.lane.b32.xlu1 %v8838_v40, %s9992_s27 }
 0x723   :  { %1269 = vrot.lane.b32.xlu1 %v8842_v42, %s9992_s27  ;;  %s10024_s27 = smov 120  }
 0x727   :  { %1267 = vrot.lane.b32.xlu1 %v8842_v42, %s9990_s28 }
 0x793   :  { %v1006_v63 = vpop.xlane.xlu0 %1005 }
 0x794   :  { %v1010_v2 = vsub.f32 %v1002_v55, %v1006_v63 }
 0x796   :  { %v1012_v3 = vmul.f32 1.442695, %v1010_v2 }
 0x797   :  { %v1027_v4 = vpop.permute.xlu0 %1026  ;;  %v1009_v5 = vpop.xlane.xlu1 %1008 }
 0x798   :  { %8506 = vpow2.f32 %v1012_v3  ;;  %v1011_v6 = vsub.f32 %v1003_v60, %v1009_v5  ;;  %7965 = vmatpush3.msra.mxu1 %v1027_v4 }
 0x799   :  { %7974 = vmatprep.subr.mxu1 %v8690_v9 }
 0x79a   :  { %v1014_v7 = vmul.f32 1.442695, %v1011_v6 }
 0x79b   :  { %v1103_v8 = vpop.permute.xlu1 %1102 }
 0x79c   :  { %8508 = vpow2.f32 %v1014_v7  ;;  %7970 = vmatpush3.msra.mxu0 %v1103_v8  ;;  %v7429_v7 = vld [vmem:[%s9969_s5] ss:$0 sm:$0xff] }
 0x79d   :  { %7979 = vmatprep.subr.mxu0 %v8690_v9 }
 0x79f   :  { %v1192_v16 = vpop.permute.xlu1 %1191 }
 0x7a2   :  { %v8507_v10 = vpop.eup %8506 }
 0x7a3   :  { %v1016_v11 = vsel %vm173_vm2, %v8507_v10, 0.0  ;;  %v1270_v20 = vpop.permute.xlu1 %1269 }
 0x7a4   :  { %1017 = vadd.xlane.f32.xlu0 %v1016_v11 }
 0x7a6   :  { %v8509_v12 = vpop.eup %8508 }
 0x7a7   :  { %v1019_v13 = vsel %vm173_vm2, %v8509_v12, 0.0  ;;  %v1268_v23 = vpop.permute.xlu1 %1267 }
 0x7a8   :  { %1020 = vadd.xlane.f32.xlu0 %v1019_v13 }
 0x7be   :  { %1189 = vrot.lane.b32.xlu0 %v8838_v40, %s9990_s28  ;;  %s10019_s28 = smov 40  }
 0x831   :  { %v1018_v14 = vpop.xlane.xlu0 %1017 }
 0x832   :  { %8510 = vrcp.f32 %v1018_v14 }
 0x835   :  { %v1021_v15 = vpop.xlane.xlu0 %1020 }
 0x836   :  { %8512 = vrcp.f32 %v1021_v15 }
 0x839   :  { %v1190_v22 = vpop.permute.xlu0 %1189 }
 0x83c   :  { %v8511_v17 = vpop.eup %8510 }
 0x83d   :  { %v1024_v18 = vmul.f32 %v8511_v17, %v8507_v10 }
 0x83f   :  { %7967 = vmatmul.mubr.msk.f32.vlgmr.msra.gmra.mrb[12].mxu1 %vm173_vm2, %v1024_v18 }
 0x840   :  { %v8513_v19 = vpop.eup %8512  ;;  %7975 = vmatpush3.xpose.msk.msra.mxu1 %vm173_vm2, %v1192_v16  ;;  %7976 = vmatprep.mubr.msk.f32.mxu1 %vm8691_vm1, %v8690_v9 }
 0x841   :  { %v1025_v21 = vmul.f32 %v8513_v19, %v8509_v12  ;;  %7984 = vmatprep.subr.mxu1 %v8690_v9 }
 0x843   :  { %7972 = vmatmul.mubr.msk.f32.vlgmr.msra.gmra.mrb[12].mxu0 %vm173_vm2, %v1025_v21  ;;  %7977 = vmatmul.mubr.msk.f32.vlgmr.msra.gmra.mrb[14].mxu1 %vm173_vm2, %v1190_v22  ;;  %v8432_v21 = vld [vmem:[%s9972_s8] sm:$0xff]   ;;  %v8433_v22 = vld [vmem:[%s9972_s8 + $0x8] sm:$0xff]  }
 0x844   :  { %7980 = vmatpush3.xpose.msk.msra.mxu0 %vm173_vm2, %v1270_v20  ;;  %7981 = vmatprep.mubr.msk.f32.mxu0 %vm8691_vm1, %v8690_v9 }
 0x845   :  { %7989 = vmatprep.subr.mxu0 %v8690_v9  ;;  %7986 = vmatprep.mubr.msk.f32.mxu1 %vm8691_vm1, %v8690_v9 }
 0x847   :  { %7982 = vmatmul.mubr.msk.f32.vlgmr.msra.gmra.mrb[14].mxu0 %vm173_vm2, %v1268_v23 }
 0x848   :  { %7991 = vmatprep.mubr.msk.f32.mxu0 %vm8691_vm1, %v8690_v9 }
 0x912   :  { %v1098_v24 = vpop.f32.mrb[12].mxu1 }
 0x913   :  { %v7968_v25 = vpop.f32.mrb[13].mxu1 }
 0x916   :  { %v1174_v26 = vpop.f32.mrb[12].mxu0  ;;  %v1263_v27 = vpop.f32.mrb[14].mxu1 }
 0x917   :  { %v1345_v28 = vmul.f32 0.35355338, %v1263_v27  ;;  %v7973_v29 = vpop.f32.mrb[13].mxu0  ;;  %v7978_v30 = vpop.f32.mrb[15].mxu1 }
 0x919   :  { %v1347_v31 = vsel %vm173_vm2, %v1345_v28, -inf }
 0x91a   :  { %1348 = vmax.xlane.f32.xlu0 %v1347_v31  ;;  %v1341_v32 = vpop.f32.mrb[14].mxu0 }
 0x91b   :  { %v1346_v33 = vmul.f32 0.35355338, %v1341_v32  ;;  %v7983_v34 = vpop.f32.mrb[15].mxu0 }
 0x91d   :  { %v1350_v35 = vsel %vm173_vm2, %v1346_v33, -inf }
 0x91e   :  { %1351 = vmax.xlane.f32.xlu1 %v1350_v35 }
 0x92f   :  { %1445 = vrot.lane.b32.xlu1 %v8842_v42, %s9986_s29 }
 0x933   :  { %837 = vrot.lane.b32.xlu1 %v8928_v51, %s9984_s30 }
 0x937   :  { %839 = vrot.lane.b32.xlu1 %v8930_v53, %s9984_s30  ;;  %s10021_s30 = smov 16  }
 0x93b   :  { %1182 = vrot.lane.b32.xlu1 %v1174_v26, %s9982_s0 }
 0x9a7   :  { %v1349_v36 = vpop.xlane.xlu0 %1348 }
 0x9a8   :  { %v1353_v37 = vsub.f32 %v1345_v28, %v1349_v36 }
 0x9aa   :  { %v1355_v38 = vmul.f32 1.442695, %v1353_v37 }
 0x9ab   :  { %v1352_v39 = vpop.xlane.xlu1 %1351 }
 0x9ac   :  { %8514 = vpow2.f32 %v1355_v38  ;;  %v1354_v41 = vsub.f32 %v1346_v33, %v1352_v39 }
 0x9ae   :  { %v1357_v43 = vmul.f32 1.442695, %v1354_v41 }
 0x9af   :  { %v1446_v44 = vpop.permute.xlu1 %1445 }
 0x9b0   :  { %8516 = vpow2.f32 %v1357_v43  ;;  %7990 = vmatpush3.msra.mxu0 %v1446_v44  ;;  %v7433_v44 = vld [vmem:[%s9970_s6] ss:$0 sm:$0xff] }
 0x9b1   :  { %7994 = vmatprep.subr.bf16.mxu0 %v8690_v9 }
 0x9b3   :  { %v838_v42 = vpop.permute.xlu1 %837 }
 0x9b4   :  { %844 = vst.msk [vmem:[#allocation2] sm:$0xff] %vm843_vm3, %v838_v42 }
 0x9b6   :  { %v8515_v45 = vpop.eup %8514 }
 0x9b7   :  { %v840_v46 = vpop.permute.xlu1 %839  ;;  %v1359_v47 = vsel %vm173_vm2, %v8515_v45, 0.0 }
 0x9b8   :  { %845 = vst.msk [vmem:[#allocation2 + $0x8] sm:$0xff] %vm843_vm3, %v840_v46  ;;  %1360 = vadd.xlane.f32.xlu0 %v1359_v47 }
 0x9ba   :  { %v8517_v48 = vpop.eup %8516 }
 0x9bb   :  { %v1183_v49 = vpop.permute.xlu1 %1182  ;;  %v1362_v50 = vsel %vm173_vm2, %v8517_v48, 0.0 }
 0x9bc   :  { %1188 = vst.msk [vmem:[#allocation2 + $0x8] sm:$0xff] %vm1186_vm4, %v1183_v49  ;;  %1363 = vadd.xlane.f32.xlu0 %v1362_v50 }
 0x9d2   :  { %1369 = vrot.lane.b32.xlu0 %v8838_v40, %s9986_s29  ;;  %s9988_s29 = smov 24  }
 0x9d6   :  { %1180 = vrot.lane.b32.xlu0 %v1098_v24, %s9982_s0  ;;  %s10023_s0 = smov 88  }
 0xa45   :  { %v1361_v51 = vpop.xlane.xlu0 %1360 }
 0xa46   :  { %8518 = vrcp.f32 %v1361_v51 }
 0xa49   :  { %v1364_v52 = vpop.xlane.xlu0 %1363 }
 0xa4a   :  { %8520 = vrcp.f32 %v1364_v52 }
 0xa4d   :  { %v1370_v53 = vpop.permute.xlu0 %1369 }
 0xa4e   :  { %7985 = vmatpush3.msra.mxu1 %v1370_v53  ;;  %v8434_v53 = vld [vmem:[%s9974_s10] sm:$0xff]  }
 0xa4f   :  { %8010 = vmatprep.subr.bf16.mxu1 %v8690_v9 }
 0xa50   :  { %v8519_v54 = vpop.eup %8518 }
 0xa51   :  { %v1181_v55 = vpop.permute.xlu0 %1180  ;;  %v1367_v56 = vmul.f32 %v8519_v54, %v8515_v45  ;;  %v8435_v54 = vld [vmem:[%s9974_s10 + $0x8] sm:$0xff]  }
 0xa52   :  { %1187 = vst.msk [vmem:[#allocation2] sm:$0xff] %vm1186_vm4, %v1181_v55  ;;  %v8436_v55 = vld [vmem:[%s9974_s10 + $0x10] sm:$0xff]  }
 0xa53   :  { %7987 = vmatmul.mubr.msk.f32.vlgmr.msra.gmra.mrb[16].mxu1 %vm173_vm2, %v1367_v56  ;;  %v8437_v56 = vld [vmem:[%s9974_s10 + $0x18] sm:$0xff]  }
 0xa54   :  { %v8521_v57 = vpop.eup %8520  ;;  %8026 = vmatprep.mubr.msk.bf16.mxu1 %vm8691_vm1, %v8690_v9  ;;  %8011 = vmatpush3.bf16.msra.mxu1 %v8434_v53 }
 0xa55   :  { %v1368_v40 = vmul.f32 %v8521_v57, %v8517_v48  ;;  %v7434_v48 = vld [vmem:[%s9971_s7] ss:$0 sm:$0xff]  ;;  %8012 = vmatprep.subr.bf16.mxu1 %v8690_v9 }
 0xa56   :  { %v8438_v57 = vld [vmem:[%s9974_s10 + $0x20] sm:$0xff]  }
 0xa57   :  { %7992 = vmatmul.mubr.msk.f32.vlgmr.msra.gmra.mrb[16].mxu0 %vm173_vm2, %v1368_v40  ;;  %v8439_v40 = vld [vmem:[%s9974_s10 + $0x28] sm:$0xff]  }
 0xa58   :  { %7998 = vmatprep.mubr.msk.bf16.mxu0 %vm8691_vm1, %v8690_v9  ;;  %7995 = vmatpush3.bf16.msra.mxu0 %v8430_v58  ;;  %v8440_v58 = vld [vmem:[%s9974_s10 + $0x30] sm:$0xff]  }
 0xa59   :  { %7996 = vmatprep.subr.bf16.mxu0 %v8690_v9  ;;  %8013 = vmatpush3.bf16.msra.mxu1 %v8435_v54 }
 0xa5a   :  { %8014 = vmatprep.subr.bf16.mxu1 %v8690_v9 }
 0xa5c   :  { %7997 = vmatpush3.bf16.msra.mxu0 %v8431_v59  ;;  %v8441_v59 = vld [vmem:[%s9974_s10 + $0x38] sm:$0xff]  }
 0xa5d   :  { %8002 = vmatprep.subr.bf16.mxu0 %v8690_v9  ;;  %8015 = vmatpush3.bf16.msra.mxu1 %v8436_v55 }
 0xa5e   :  { %8016 = vmatprep.subr.bf16.mxu1 %v8690_v9 }
 0xa61   :  { %8017 = vmatpush3.bf16.msra.mxu1 %v8437_v56 }
 0xa62   :  { %8018 = vmatprep.subr.bf16.mxu1 %v8690_v9 }
 0xa65   :  { %8019 = vmatpush3.bf16.msra.mxu1 %v8438_v57 }
 0xa66   :  { %8020 = vmatprep.subr.bf16.mxu1 %v8690_v9 }
 0xa69   :  { %8021 = vmatpush3.bf16.msra.mxu1 %v8439_v40 }
 0xa6a   :  { %8022 = vmatprep.subr.bf16.mxu1 %v8690_v9 }
 0xa6d   :  { %8023 = vmatpush3.bf16.msra.mxu1 %v8440_v58  ;;  %v7450_v58 = vld [vmem:[%s9965_s1 + $0x1] ss:$0 sm:$0xff] }
 0xa6e   :  { %8024 = vmatprep.subr.bf16.mxu1 %v8690_v9 }
 0xa71   :  { %8025 = vmatpush3.bf16.msra.mxu1 %v8441_v59 }
 0xa72   :  { %8068 = vmatprep.subr.mxu1 %v8690_v9 }
 0xb26   :  { %v1441_v60 = vpop.f32.mrb[16].mxu1 }
 0xb27   :  { %1523 = vrot.lane.b32.xlu0 %v1441_v60, %s9988_s29  ;;  %v7988_v61 = vpop.f32.mrb[17].mxu1  ;;  %v7435_v60 = vld [vmem:[%s9973_s9] ss:$0 sm:$0xff] }
 0xb2a   :  { %v1517_v62 = vpop.f32.mrb[16].mxu0 }
 0xb2b   :  { %1525 = vrot.lane.b32.xlu1 %v1517_v62, %s9988_s29  ;;  %v7993_v63 = vpop.f32.mrb[17].mxu0  ;;  %s10020_s29 = smov 8  }
 0xb99   :  { %v1524_v2 = vpop.permute.xlu0 %1523 }
 0xb9a   :  { %1530 = vst.msk [vmem:[#allocation2] sm:$0xff] %vm1529_vm5, %v1524_v2 }
 0xb9d   :  { %v1526_v3 = vpop.permute.xlu1 %1525 }
 0xb9e   :  { %1531 = vst.msk [vmem:[#allocation2 + $0x8] sm:$0xff] %vm1529_vm5, %v1526_v3 }
 0xba1   :  { %v1532_v4 = vld [vmem:[#allocation2] sm:$0xff] }
 0xba5   :  { %v1533_v5 = vld [vmem:[#allocation2 + $0x8] sm:$0xff] }
 0xba6   :  { %v1534_v6 = vpack.c.bf16 %v1533_v5, %v1532_v4 }
 0xba8   :  { %7999 = vmatmul.mubr.msk.bf16.vlgmr.msra.gmra.mrb[20].mxu0 %vm59_vm0, %v1534_v6 }
 0xba9   :  { %8006 = vmatprep.mubr.msk.bf16.mxu0 %vm8691_vm1, %v8690_v9  ;;  %8003 = vmatpush3.bf16.msra.mxu0 %v8432_v21 }
 0xbaa   :  { %8004 = vmatprep.subr.bf16.mxu0 %v8690_v9 }
 0xbad   :  { %8005 = vmatpush3.bf16.msra.mxu0 %v8433_v22 }
 0xbae   :  { %8030 = vmatprep.subr.bf16.mxu0 %v8690_v9 }
 0xc7b   :  { %v1595_v8 = vpop.f32.mrb[20].mxu0 }
 0xc7c   :  { %v1596_v10 = vadd.f32 %v7429_v7, %v1595_v8  ;;  %v8000_v11 = vpop.f32.mrb[21].mxu0 }
 0xc7d   :  { %v1598_v12 = vpop.f32.mrb[22].mxu0 }
 0xc7e   :  { %v9011_v13 = vadd.f32 %v1596_v10, %v8796_v0  ;;  %v1599_v14 = vadd.f32 %v7429_v7, %v1598_v12  ;;  %v8001_v15 = vpop.f32.mrb[23].mxu0 }
 0xc80   :  { %v9014_v16 = vadd.f32 %v1599_v14, %v8801_v1  ;;  %v1606_v17 = vsel %vm59_vm0, %v9011_v13, 0.0  ;;  %v1614_v18 = vmul.f32 %v9011_v13, %v9011_v13 }
 0xc81   :  { %1607 = vadd.xlane.f32.xlu0 %v1606_v17 }
 0xc82   :  { %v1609_v19 = vsel %vm59_vm0, %v9014_v16, 0.0  ;;  %v1616_v20 = vsel %vm59_vm0, %v1614_v18, 0.0  ;;  %v1615_v0 = vmul.f32 %v9014_v16, %v9014_v16 }
 0xc83   :  { %1610 = vadd.xlane.f32.xlu1 %v1609_v19 }
 0xc84   :  { %v1619_v1 = vsel %vm59_vm0, %v1615_v0, 0.0 }
 0xc85   :  { %1617 = vadd.xlane.f32.xlu0 %v1616_v20 }
 0xc89   :  { %1620 = vadd.xlane.f32.xlu0 %v1619_v1 }
 0xd0e   :  { %v1608_v23 = vpop.xlane.xlu0 %1607 }
 0xd0f   :  { %v1612_v24 = vmul.f32 0.03125, %v1608_v23 }
 0xd10   :  { %v1611_v25 = vpop.xlane.xlu1 %1610 }
 0xd11   :  { %v1624_v27 = vmul.f32 %v1612_v24, %v1612_v24  ;;  %v1613_v28 = vmul.f32 0.03125, %v1611_v25  ;;  %v1630_v39 = vsub.f32 %v9011_v13, %v1612_v24  ;;  %v7439_v25 = vld [vmem:[%s9975_s11] ss:$0 sm:$0xff] }
 0xd12   :  { %v1618_v26 = vpop.xlane.xlu0 %1617 }
 0xd13   :  { %v1622_v29 = vmul.f32 0.03125, %v1618_v26  ;;  %v1625_v32 = vmul.f32 %v1613_v28, %v1613_v28  ;;  %v1631_v42 = vsub.f32 %v9014_v16, %v1613_v28 }
 0xd15   :  { %v1626_v30 = vsub.f32 %v1622_v29, %v1624_v27 }
 0xd16   :  { %v1621_v31 = vpop.xlane.xlu0 %1620 }
 0xd17   :  { %v1628_v33 = vmax.f32 %v1626_v30, 0.0  ;;  %v1623_v34 = vmul.f32 0.03125, %v1621_v31 }
 0xd19   :  { %v1632_v35 = vadd.f32 1e-05, %v1628_v33  ;;  %v1627_v36 = vsub.f32 %v1623_v34, %v1625_v32 }
 0xd1b   :  { %8522 = vrsqrt.f32 %v1632_v35  ;;  %v1629_v37 = vmax.f32 %v1627_v36, 0.0 }
 0xd1d   :  { %v1633_v38 = vadd.f32 1e-05, %v1629_v37 }
 0xd1f   :  { %8524 = vrsqrt.f32 %v1633_v38  ;;  %v8442_v38 = vld [vmem:[%s9967_s3 + $0x10] sm:$0xff]  }
 0xd25   :  { %v8523_v41 = vpop.eup %8522 }
 0xd26   :  { %v1636_v43 = vmul.f32 %v8523_v41, %v1630_v39  ;;  %v8443_v39 = vld [vmem:[%s9967_s3 + $0x18] sm:$0xff]  }
 0xd28   :  { %v1644_v47 = vmul.f32 %v7433_v44, %v1636_v43 }
 0xd29   :  { %v8525_v45 = vpop.eup %8524 }
 0xd2a   :  { %v1637_v46 = vmul.f32 %v8525_v45, %v1631_v42  ;;  %v1652_v50 = vadd.f32 %v7434_v48, %v1644_v47 }
 0xd2c   :  { %v1645_v49 = vmul.f32 %v7433_v44, %v1637_v46 }
 0xd2e   :  { %v1653_v51 = vadd.f32 %v7434_v48, %v1645_v49 }
 0xd30   :  { %v1654_v52 = vpack.c.bf16 %v1653_v51, %v1652_v50 }
 0xd32   :  { %8007 = vmatmul.mubr.msk.bf16.vlgmr.msra.gmra.mrb[24].mxu0 %vm59_vm0, %v1654_v52 }
 0xd33   :  { %8034 = vmatprep.mubr.msk.bf16.mxu0 %vm8691_vm1, %v8690_v9  ;;  %8031 = vmatpush3.bf16.msra.mxu0 %v8442_v38 }
 0xd34   :  { %8032 = vmatprep.subr.bf16.mxu0 %v8690_v9 }
 0xd37   :  { %8033 = vmatpush3.bf16.msra.mxu0 %v8443_v39 }
 0xd38   :  { %8038 = vmatprep.subr.mxu0 %v8690_v9 }
 0xe05   :  { %v1715_v61 = vpop.f32.mrb[24].mxu0 }
 0xe06   :  { %v1716_v62 = vadd.f32 %v7435_v60, %v1715_v61  ;;  %v8008_v63 = vpop.f32.mrb[25].mxu0 }
 0xe07   :  { %v1718_v2 = vpop.f32.mrb[26].mxu0 }
 0xe08   :  { %v1722_v3 = vmul.f32 %v1716_v62, %v1716_v62  ;;  %v1719_v4 = vadd.f32 %v7435_v60, %v1718_v2  ;;  %v8009_v5 = vpop.f32.mrb[27].mxu0  ;;  %v7451_v2 = vld [vmem:[%s9966_s2 + $0x1] ss:$0 sm:$0xff] }
 0xe0a   :  { %v1724_v6 = vmul.f32 %v1722_v3, %v1716_v62  ;;  %v1723_v7 = vmul.f32 %v1719_v4, %v1719_v4 }
 0xe0c   :  { %v1726_v8 = vmul.f32 0.044715, %v1724_v6  ;;  %v1725_v10 = vmul.f32 %v1723_v7, %v1719_v4 }
 0xe0e   :  { %v1728_v11 = vadd.f32 %v1726_v8, %v1716_v62  ;;  %v1727_v12 = vmul.f32 0.044715, %v1725_v10 }
 0xe10   :  { %v1730_v14 = vmul.f32 0.7978846, %v1728_v11  ;;  %v1729_v15 = vadd.f32 %v1727_v12, %v1719_v4 }
 0xe12   :  { %8526 = vtanh.f32 %v1730_v14  ;;  %v1731_v17 = vmul.f32 0.7978846, %v1729_v15 }
 0xe14   :  { %8528 = vtanh.f32 %v1731_v17 }
 0xe1c   :  { %v8527_v18 = vpop.eup %8526 }
 0xe1d   :  { %v1734_v19 = vadd.f32 1.0, %v8527_v18 }
 0xe1e   :  { %v8529_v20 = vpop.eup %8528 }
 0xe1f   :  { %v1736_v0 = vmul.f32 0.5, %v1734_v19  ;;  %v1735_v1 = vadd.f32 1.0, %v8529_v20 }
 0xe21   :  { %v1737_v21 = vmul.f32 0.5, %v1735_v1  ;;  %v1738_v22 = vmul.f32 %v1736_v0, %v1716_v62 }
 0xe23   :  { %v1739_v23 = vmul.f32 %v1737_v21, %v1719_v4 }
 0xe25   :  { %v1740_v24 = vpack.c.bf16 %v1739_v23, %v1738_v22 }
 0xe27   :  { %8027 = vmatmul.mubr.bf16.vlgmr.msra.gmra.mrb[20].mxu1 %v1740_v24 }
 0xe28   :  { %8070 = vmatprep.mubr.msk.f32.mxu1 %vm8691_vm1, %v8690_v9 }
 0xefa   :  { %v1846_v26 = vpop.f32.mrb[20].mxu1 }
 0xefb   :  { %v1847_v27 = vadd.f32 %v7439_v25, %v1846_v26  ;;  %v8028_v28 = vpop.f32.mrb[21].mxu1 }
 0xefc   :  { %v1849_v29 = vpop.f32.mrb[22].mxu1 }
 0xefd   :  { %v9086_v30 = vadd.f32 %v1847_v27, %v9011_v13  ;;  %v1850_v31 = vadd.f32 %v7439_v25, %v1849_v29  ;;  %v8029_v32 = vpop.f32.mrb[23].mxu1 }
 0xeff   :  { %v9089_v33 = vadd.f32 %v1850_v31, %v9014_v16  ;;  %v1859_v34 = vsel %vm59_vm0, %v9086_v30, 0.0  ;;  %v1867_v35 = vmul.f32 %v9086_v30, %v9086_v30 }
 0xf00   :  { %1860 = vadd.xlane.f32.xlu0 %v1859_v34 }
 0xf01   :  { %v1862_v36 = vsel %vm59_vm0, %v9089_v33, 0.0  ;;  %v1868_v37 = vmul.f32 %v9089_v33, %v9089_v33  ;;  %v1869_v13 = vsel %vm59_vm0, %v1867_v35, 0.0 }
 0xf02   :  { %1863 = vadd.xlane.f32.xlu1 %v1862_v36 }
 0xf03   :  { %v1872_v16 = vsel %vm59_vm0, %v1868_v37, 0.0 }
 0xf04   :  { %1870 = vadd.xlane.f32.xlu0 %v1869_v13 }
 0xf06   :  { %1873 = vadd.xlane.f32.xlu1 %v1872_v16 }
 0xf8d   :  { %v1861_v41 = vpop.xlane.xlu0 %1860 }
 0xf8e   :  { %v1865_v43 = vmul.f32 0.03125, %v1861_v41 }
 0xf8f   :  { %v1864_v44 = vpop.xlane.xlu1 %1863 }
 0xf90   :  { %v1866_v42 = vmul.f32 0.03125, %v1864_v44  ;;  %v1877_v46 = vmul.f32 %v1865_v43, %v1865_v43  ;;  %v1883_v57 = vsub.f32 %v9086_v30, %v1865_v43 }
 0xf91   :  { %v1871_v45 = vpop.xlane.xlu0 %1870 }
 0xf92   :  { %v1875_v47 = vmul.f32 0.03125, %v1871_v45  ;;  %v1878_v49 = vmul.f32 %v1866_v42, %v1866_v42  ;;  %v1884_v59 = vsub.f32 %v9089_v33, %v1866_v42 }
 0xf93   :  { %v1874_v48 = vpop.xlane.xlu1 %1873 }
 0xf94   :  { %v1879_v50 = vsub.f32 %v1875_v47, %v1877_v46  ;;  %v1876_v51 = vmul.f32 0.03125, %v1874_v48 }
 0xf96   :  { %v1881_v52 = vmax.f32 %v1879_v50, 0.0  ;;  %v1880_v53 = vsub.f32 %v1876_v51, %v1878_v49 }
 0xf98   :  { %v1885_v54 = vadd.f32 1e-05, %v1881_v52  ;;  %v1882_v55 = vmax.f32 %v1880_v53, 0.0 }
 0xf9a   :  { %8530 = vrsqrt.f32 %v1885_v54  ;;  %v1886_v56 = vadd.f32 1e-05, %v1882_v55 }
 0xf9c   :  { %8532 = vrsqrt.f32 %v1886_v56 }
 0xfa4   :  { %v8531_v40 = vpop.eup %8530 }
 0xfa5   :  { %v1889_v60 = vmul.f32 %v8531_v40, %v1883_v57 }
 0xfa6   :  { %v8533_v61 = vpop.eup %8532 }
 0xfa7   :  { %v1890_v62 = vmul.f32 %v8533_v61, %v1884_v59  ;;  %v1897_v63 = vmul.f32 %v7450_v58, %v1889_v60 }
 0xfa9   :  { %v1898_v3 = vmul.f32 %v7450_v58, %v1890_v62  ;;  %v1905_v4 = vadd.f32 %v7451_v2, %v1897_v63 }
 0xfab   :  { %v1906_v5 = vadd.f32 %v7451_v2, %v1898_v3 }
 0xfad   :  { %v1907_v6 = vpack.c.bf16 %v1906_v5, %v1905_v4 }
 0xfaf   :  { %8035 = vmatmul.mubr.msk.bf16.vlgmr.msra.gmra.mrb[28].mxu0 %vm59_vm0, %v1907_v6 }
 0xfb0   :  { %8040 = vmatprep.mubr.msk.f32.mxu0 %vm8691_vm1, %v8690_v9 }
0x1082   :  { %v9120_v7 = vpop.f32.mrb[28].mxu0 }
0x1083   :  { %1970 = vrot.lane.b32.xlu0 %v9120_v7, %s10008_s19  ;;  %v8036_v8 = vpop.f32.mrb[29].mxu0 }
0x1084   :  { %v9124_v10 = vpop.f32.mrb[30].mxu0 }
0x1085   :  { %2047 = vrot.lane.b32.xlu1 %v9124_v10, %s10008_s19  ;;  %v8037_v11 = vpop.f32.mrb[31].mxu0 }
0x10f5   :  { %v1971_v12 = vpop.permute.xlu0 %1970 }
0x10f6   :  { %8039 = vmatpush3.xpose.msk.msra.mxu0 %vm173_vm2, %v1971_v12 }
0x10f7   :  { %8043 = vmatprep.subr.mxu0 %v8690_v9  ;;  %v2048_v14 = vpop.permute.xlu1 %2047 }
0x10f9   :  { %8041 = vmatmul.mubr.msk.f32.vlgmr.msra.gmra.mrb[18].mxu0 %vm173_vm2, %v9120_v7 }
0x10fa   :  { %8044 = vmatpush3.xpose.msk.msra.mxu0 %vm173_vm2, %v2048_v14  ;;  %8045 = vmatprep.mubr.msk.f32.mxu0 %vm8691_vm1, %v8690_v9 }
0x10fb   :  { %8048 = vmatprep.subr.mxu0 %v8690_v9 }
0x10fd   :  { %8046 = vmatmul.mubr.msk.f32.vlgmr.msra.gmra.mrb[32].mxu0 %vm173_vm2, %v9124_v10 }
0x10fe   :  { %8050 = vmatprep.mubr.msk.f32.mxu0 %vm8691_vm1, %v8690_v9 }
0x11cc   :  { %v2042_v15 = vpop.f32.mrb[18].mxu0 }
0x11cd   :  { %v2123_v17 = vmul.f32 0.35355338, %v2042_v15  ;;  %v8042_v18 = vpop.f32.mrb[19].mxu0 }
0x11cf   :  { %v2125_v19 = vsel %vm173_vm2, %v2123_v17, -inf }
0x11d0   :  { %2126 = vmax.xlane.f32.xlu1 %v2125_v19  ;;  %v2119_v20 = vpop.f32.mrb[32].mxu0 }
0x11d1   :  { %v2124_v0 = vmul.f32 0.35355338, %v2119_v20  ;;  %v8047_v1 = vpop.f32.mrb[33].mxu0 }
0x11d3   :  { %v2128_v21 = vsel %vm173_vm2, %v2124_v0, -inf }
0x11d4   :  { %2129 = vmax.xlane.f32.xlu0 %v2128_v21 }
0x11e1   :  { %2223 = vrot.lane.b32.xlu1 %v9124_v10, %s10006_s20 }
0x11e5   :  { %2303 = vrot.lane.b32.xlu1 %v9120_v7, %s10004_s21 }
0x11e9   :  { %2301 = vrot.lane.b32.xlu1 %v9120_v7, %s10002_s22 }
0x125d   :  { %v2127_v22 = vpop.xlane.xlu1 %2126 }
0x125e   :  { %v2131_v23 = vsub.f32 %v2123_v17, %v2127_v22 }
0x1260   :  { %v2133_v24 = vmul.f32 1.442695, %v2131_v23 }
0x1261   :  { %v2130_v25 = vpop.xlane.xlu0 %2129  ;;  %v2224_v34 = vpop.permute.xlu1 %2223 }
0x1262   :  { %8534 = vpow2.f32 %v2133_v24  ;;  %v2132_v26 = vsub.f32 %v2124_v0, %v2130_v25 }
0x1264   :  { %v2135_v27 = vmul.f32 1.442695, %v2132_v26 }
0x1265   :  { %v2304_v35 = vpop.permute.xlu1 %2303 }
0x1266   :  { %8536 = vpow2.f32 %v2135_v27 }
0x1269   :  { %v2302_v36 = vpop.permute.xlu1 %2301 }
0x126c   :  { %v8535_v28 = vpop.eup %8534 }
0x126d   :  { %v2137_v29 = vsel %vm173_vm2, %v8535_v28, 0.0 }
0x126e   :  { %2138 = vadd.xlane.f32.xlu0 %v2137_v29 }
0x1270   :  { %v8537_v31 = vpop.eup %8536 }
0x1271   :  { %v2140_v32 = vsel %vm173_vm2, %v8537_v31, 0.0 }
0x1272   :  { %2141 = vadd.xlane.f32.xlu1 %v2140_v32 }
0x1283   :  { %2379 = vrot.lane.b32.xlu1 %v9124_v10, %s10002_s22  ;;  %s10025_s22 = smov 56  }
0x1284   :  { %2147 = vrot.lane.b32.xlu0 %v9120_v7, %s10006_s20 }
0x1288   :  { %2381 = vrot.lane.b32.xlu0 %v9124_v10, %s10004_s21  ;;  %s8706_s21 = smov [#allocation3]  }
0x12fb   :  { %v2139_v37 = vpop.xlane.xlu0 %2138 }
0x12fc   :  { %8538 = vrcp.f32 %v2139_v37 }
0x12ff   :  { %v2142_v13 = vpop.xlane.xlu1 %2141  ;;  %v2148_v16 = vpop.permute.xlu0 %2147 }
0x1300   :  { %8540 = vrcp.f32 %v2142_v13  ;;  %8049 = vmatpush3.msra.mxu0 %v2148_v16 }
0x1301   :  { %8053 = vmatprep.subr.mxu0 %v8690_v9 }
0x1303   :  { %v2382_v44 = vpop.permute.xlu0 %2381  ;;  %v2380_v42 = vpop.permute.xlu1 %2379 }
0x1306   :  { %v8539_v38 = vpop.eup %8538 }
0x1307   :  { %v2145_v39 = vmul.f32 %v8539_v38, %v8535_v28 }
0x1309   :  { %8051 = vmatmul.mubr.msk.f32.vlgmr.msra.gmra.mrb[34].mxu0 %vm173_vm2, %v2145_v39 }
0x130a   :  { %v8541_v41 = vpop.eup %8540  ;;  %8054 = vmatpush3.msra.mxu0 %v2224_v34  ;;  %8055 = vmatprep.mubr.msk.f32.mxu0 %vm8691_vm1, %v8690_v9 }
0x130b   :  { %v2146_v43 = vmul.f32 %v8541_v41, %v8537_v31  ;;  %8058 = vmatprep.subr.mxu0 %v8690_v9 }
0x130d   :  { %8056 = vmatmul.mubr.msk.f32.vlgmr.msra.gmra.mrb[36].mxu0 %vm173_vm2, %v2146_v43 }
0x130e   :  { %8060 = vmatprep.mubr.msk.f32.mxu0 %vm8691_vm1, %v8690_v9 }
0x1311   :  { %8059 = vmatpush3.xpose.msk.msra.mxu0 %vm173_vm2, %v2304_v35 }
0x1312   :  { %8063 = vmatprep.subr.mxu0 %v8690_v9 }
0x1314   :  { %8061 = vmatmul.mubr.msk.f32.vlgmr.msra.gmra.mrb[38].mxu0 %vm173_vm2, %v2302_v36 }
0x1315   :  { %8064 = vmatpush3.xpose.msk.msra.mxu0 %vm173_vm2, %v2382_v44  ;;  %8065 = vmatprep.mubr.msk.f32.mxu0 %vm8691_vm1, %v8690_v9 }
0x1316   :  { %8073 = vmatprep.subr.mxu0 %v8690_v9 }
0x1318   :  { %8066 = vmatmul.mubr.msk.f32.vlgmr.msra.gmra.mrb[40].mxu0 %vm173_vm2, %v2380_v42 }
0x1319   :  { %8075 = vmatprep.mubr.msk.f32.mxu0 %vm8691_vm1, %v8690_v9 }
0x13dc   :  { %v2219_v45 = vpop.f32.mrb[34].mxu0 }
0x13dd   :  { %2299 = vst.msk [vmem:[#allocation2] sm:$0xff] %vm173_vm2, %v2219_v45  ;;  %v8052_v46 = vpop.f32.mrb[35].mxu0 }
0x13e0   :  { %v2295_v47 = vpop.f32.mrb[36].mxu0 }
0x13e1   :  { %2300 = vst.msk [vmem:[#allocation2 + $0x8] sm:$0xff] %vm173_vm2, %v2295_v47  ;;  %v8057_v48 = vpop.f32.mrb[37].mxu0 }
0x13e7   :  { %v2375_v49 = vpop.f32.mrb[38].mxu0 }
0x13e8   :  { %v2457_v50 = vmul.f32 0.35355338, %v2375_v49  ;;  %v8062_v51 = vpop.f32.mrb[39].mxu0 }
0x13ea   :  { %v2459_v52 = vsel %vm173_vm2, %v2457_v50, -inf }
0x13eb   :  { %2460 = vmax.xlane.f32.xlu0 %v2459_v52  ;;  %v2453_v53 = vpop.f32.mrb[40].mxu0 }
0x13ec   :  { %v2458_v54 = vmul.f32 0.35355338, %v2453_v53  ;;  %v8067_v55 = vpop.f32.mrb[41].mxu0 }
0x13ee   :  { %v2462_v56 = vsel %vm173_vm2, %v2458_v54, -inf }
0x13ef   :  { %2463 = vmax.xlane.f32.xlu1 %v2462_v56 }
0x1400   :  { %2557 = vrot.lane.b32.xlu1 %v9124_v10, %s10000_s23 }
0x1401   :  { %2481 = vrot.lane.b32.xlu0 %v9120_v7, %s10000_s23  ;;  %s10026_s23 = smov 80  }
0x1404   :  { %2645 = vrot.lane.b32.xlu1 %v9120_v7, %s9998_s24 }
0x1408   :  { %2723 = vrot.lane.b32.xlu1 %v9124_v10, %s9998_s24  ;;  %s10022_s24 = smov 24  }
0x140c   :  { %2721 = vrot.lane.b32.xlu1 %v9124_v10, %s9996_s25 }
0x1478   :  { %v2461_v57 = vpop.xlane.xlu0 %2460 }
0x1479   :  { %v2465_v40 = vsub.f32 %v2457_v50, %v2461_v57 }
0x147b   :  { %v2467_v58 = vmul.f32 1.442695, %v2465_v40 }
0x147c   :  { %v2482_v59 = vpop.permute.xlu0 %2481  ;;  %v2464_v60 = vpop.xlane.xlu1 %2463 }
0x147d   :  { %8542 = vpow2.f32 %v2467_v58  ;;  %v2466_v61 = vsub.f32 %v2458_v54, %v2464_v60  ;;  %8069 = vmatpush3.msra.mxu1 %v2482_v59 }
0x147e   :  { %8078 = vmatprep.subr.mxu1 %v8690_v9 }
0x147f   :  { %v2469_v62 = vmul.f32 1.442695, %v2466_v61 }
0x1480   :  { %v2558_v63 = vpop.permute.xlu1 %2557 }
0x1481   :  { %8544 = vpow2.f32 %v2469_v62  ;;  %8074 = vmatpush3.msra.mxu0 %v2558_v63 }
0x1482   :  { %8083 = vmatprep.subr.mxu0 %v8690_v9 }
0x1484   :  { %v2646_v11 = vpop.permute.xlu1 %2645 }
0x1487   :  { %v8543_v2 = vpop.eup %8542 }
0x1488   :  { %v2471_v3 = vsel %vm173_vm2, %v8543_v2, 0.0  ;;  %v2724_v17 = vpop.permute.xlu1 %2723 }
0x1489   :  { %2472 = vadd.xlane.f32.xlu0 %v2471_v3 }
0x148b   :  { %v8545_v4 = vpop.eup %8544 }
0x148c   :  { %v2474_v5 = vsel %vm173_vm2, %v8545_v4, 0.0  ;;  %v2722_v20 = vpop.permute.xlu1 %2721 }
0x148d   :  { %2475 = vadd.xlane.f32.xlu0 %v2474_v5 }
0x14a3   :  { %2643 = vrot.lane.b32.xlu0 %v9120_v7, %s9996_s25  ;;  %s10027_s25 = smov 112  }
0x1516   :  { %v2473_v6 = vpop.xlane.xlu0 %2472 }
0x1517   :  { %8546 = vrcp.f32 %v2473_v6 }
0x151a   :  { %v2476_v8 = vpop.xlane.xlu0 %2475 }
0x151b   :  { %8548 = vrcp.f32 %v2476_v8 }
0x151e   :  { %v2644_v19 = vpop.permute.xlu0 %2643 }
0x1521   :  { %v8547_v12 = vpop.eup %8546 }
0x1522   :  { %v2479_v14 = vmul.f32 %v8547_v12, %v8543_v2 }
0x1524   :  { %8071 = vmatmul.mubr.msk.f32.vlgmr.msra.gmra.mrb[18].mxu1 %vm173_vm2, %v2479_v14 }
0x1525   :  { %v8549_v15 = vpop.eup %8548  ;;  %8079 = vmatpush3.xpose.msk.msra.mxu1 %vm173_vm2, %v2646_v11  ;;  %8080 = vmatprep.mubr.msk.f32.mxu1 %vm8691_vm1, %v8690_v9 }
0x1526   :  { %v2480_v18 = vmul.f32 %v8549_v15, %v8545_v4  ;;  %8088 = vmatprep.subr.mxu1 %v8690_v9 }
0x1528   :  { %8076 = vmatmul.mubr.msk.f32.vlgmr.msra.gmra.mrb[42].mxu0 %vm173_vm2, %v2480_v18  ;;  %8081 = vmatmul.mubr.msk.f32.vlgmr.msra.gmra.mrb[24].mxu1 %vm173_vm2, %v2644_v19 }
0x1529   :  { %8084 = vmatpush3.xpose.msk.msra.mxu0 %vm173_vm2, %v2724_v17  ;;  %8085 = vmatprep.mubr.msk.f32.mxu0 %vm8691_vm1, %v8690_v9 }
0x152a   :  { %8093 = vmatprep.subr.mxu0 %v8690_v9  ;;  %8090 = vmatprep.mubr.msk.f32.mxu1 %vm8691_vm1, %v8690_v9 }
0x152c   :  { %8086 = vmatmul.mubr.msk.f32.vlgmr.msra.gmra.mrb[44].mxu0 %vm173_vm2, %v2722_v20 }
0x152d   :  { %8095 = vmatprep.mubr.msk.f32.mxu0 %vm8691_vm1, %v8690_v9 }
0x15f7   :  { %v9210_v0 = vpop.f32.mrb[18].mxu1 }
0x15f8   :  { %v8072_v1 = vpop.f32.mrb[19].mxu1 }
0x15fb   :  { %v9212_v21 = vpop.f32.mrb[42].mxu0  ;;  %v2717_v22 = vpop.f32.mrb[24].mxu1 }
0x15fc   :  { %v2799_v23 = vmul.f32 0.35355338, %v2717_v22  ;;  %v8077_v24 = vpop.f32.mrb[43].mxu0  ;;  %v8082_v25 = vpop.f32.mrb[25].mxu1 }
0x15fe   :  { %v2801_v26 = vsel %vm173_vm2, %v2799_v23, -inf }
0x15ff   :  { %2802 = vmax.xlane.f32.xlu0 %v2801_v26  ;;  %v2795_v27 = vpop.f32.mrb[44].mxu0  ;;  %v8444_v26 = vld [vmem:[%s9968_s4 + $0x10] sm:$0xff]  }
0x1600   :  { %v2800_v28 = vmul.f32 0.35355338, %v2795_v27  ;;  %v8087_v29 = vpop.f32.mrb[45].mxu0  ;;  %v8445_v27 = vld [vmem:[%s9968_s4 + $0x18] sm:$0xff]  }
0x1602   :  { %v2804_v31 = vsel %vm173_vm2, %v2800_v28, -inf }
0x1603   :  { %2805 = vmax.xlane.f32.xlu1 %v2804_v31 }
0x1614   :  { %2899 = vrot.lane.b32.xlu1 %v9124_v10, %s9994_s26 }
0x1615   :  { %2823 = vrot.lane.b32.xlu0 %v9120_v7, %s9994_s26  ;;  %s10028_s26 = smov 48  }
0x1618   :  { %2987 = vrot.lane.b32.xlu1 %v9120_v7, %s10017_s17 }
0x161c   :  { %3065 = vrot.lane.b32.xlu1 %v9124_v10, %s10017_s17 }
0x1620   :  { %3063 = vrot.lane.b32.xlu1 %v9124_v10, %s10018_s18 }
0x168c   :  { %v2803_v32 = vpop.xlane.xlu0 %2802 }
0x168d   :  { %v2807_v34 = vsub.f32 %v2799_v23, %v2803_v32 }
0x168f   :  { %v2809_v35 = vmul.f32 1.442695, %v2807_v34 }
0x1690   :  { %v2824_v36 = vpop.permute.xlu0 %2823  ;;  %v2806_v37 = vpop.xlane.xlu1 %2805 }
0x1691   :  { %8550 = vpow2.f32 %v2809_v35  ;;  %v2808_v13 = vsub.f32 %v2800_v28, %v2806_v37  ;;  %8089 = vmatpush3.msra.mxu1 %v2824_v36 }
0x1692   :  { %8098 = vmatprep.subr.mxu1 %v8690_v9 }
0x1693   :  { %v2811_v16 = vmul.f32 1.442695, %v2808_v13 }
0x1694   :  { %v2900_v38 = vpop.permute.xlu1 %2899 }
0x1695   :  { %8552 = vpow2.f32 %v2811_v16  ;;  %8094 = vmatpush3.msra.mxu0 %v2900_v38  ;;  %v7488_v16 = vld [vmem:[%s9969_s5 + $0x1] ss:$0 sm:$0xff] }
0x1696   :  { %8103 = vmatprep.subr.mxu0 %v8690_v9 }
0x1698   :  { %v2988_v46 = vpop.permute.xlu1 %2987 }
0x169b   :  { %v8551_v39 = vpop.eup %8550 }
0x169c   :  { %v2813_v41 = vsel %vm173_vm2, %v8551_v39, 0.0  ;;  %v3066_v50 = vpop.permute.xlu1 %3065 }
0x169d   :  { %2814 = vadd.xlane.f32.xlu0 %v2813_v41 }
0x169f   :  { %v8553_v43 = vpop.eup %8552 }
0x16a0   :  { %v2816_v44 = vsel %vm173_vm2, %v8553_v43, 0.0  ;;  %v3064_v53 = vpop.permute.xlu1 %3063 }
0x16a1   :  { %2817 = vadd.xlane.f32.xlu0 %v2816_v44 }
0x16b7   :  { %2985 = vrot.lane.b32.xlu0 %v9120_v7, %s10018_s18 }
0x172a   :  { %v2815_v42 = vpop.xlane.xlu0 %2814 }
0x172b   :  { %8554 = vrcp.f32 %v2815_v42 }
0x172e   :  { %v2818_v45 = vpop.xlane.xlu0 %2817 }
0x172f   :  { %8556 = vrcp.f32 %v2818_v45 }
0x1732   :  { %v2986_v52 = vpop.permute.xlu0 %2985 }
0x1735   :  { %v8555_v47 = vpop.eup %8554 }
0x1736   :  { %v2821_v48 = vmul.f32 %v8555_v47, %v8551_v39 }
0x1738   :  { %8091 = vmatmul.mubr.msk.f32.vlgmr.msra.gmra.mrb[26].mxu1 %vm173_vm2, %v2821_v48 }
0x1739   :  { %v8557_v49 = vpop.eup %8556  ;;  %8099 = vmatpush3.xpose.msk.msra.mxu1 %vm173_vm2, %v2988_v46  ;;  %8100 = vmatprep.mubr.msk.f32.mxu1 %vm8691_vm1, %v8690_v9 }
0x173a   :  { %v2822_v51 = vmul.f32 %v8557_v49, %v8553_v43  ;;  %8108 = vmatprep.subr.mxu1 %v8690_v9 }
0x173c   :  { %8096 = vmatmul.mubr.msk.f32.vlgmr.msra.gmra.mrb[46].mxu0 %vm173_vm2, %v2822_v51  ;;  %8101 = vmatmul.mubr.msk.f32.vlgmr.msra.gmra.mrb[28].mxu1 %vm173_vm2, %v2986_v52  ;;  %v8446_v51 = vld [vmem:[%s9972_s8 + $0x10] sm:$0xff]   ;;  %v8447_v52 = vld [vmem:[%s9972_s8 + $0x18] sm:$0xff]  }
0x173d   :  { %8104 = vmatpush3.xpose.msk.msra.mxu0 %vm173_vm2, %v3066_v50  ;;  %8105 = vmatprep.mubr.msk.f32.mxu0 %vm8691_vm1, %v8690_v9 }
0x173e   :  { %8113 = vmatprep.subr.mxu0 %v8690_v9  ;;  %8110 = vmatprep.mubr.msk.f32.mxu1 %vm8691_vm1, %v8690_v9 }
0x1740   :  { %8106 = vmatmul.mubr.msk.f32.vlgmr.msra.gmra.mrb[48].mxu0 %vm173_vm2, %v3064_v53 }
0x1741   :  { %8115 = vmatprep.mubr.msk.f32.mxu0 %vm8691_vm1, %v8690_v9 }
0x180b   :  { %v2895_v54 = vpop.f32.mrb[26].mxu1 }
0x180c   :  { %v8092_v55 = vpop.f32.mrb[27].mxu1 }
0x180f   :  { %v2971_v56 = vpop.f32.mrb[46].mxu0  ;;  %v3059_v57 = vpop.f32.mrb[28].mxu1 }
0x1810   :  { %v3141_v40 = vmul.f32 0.35355338, %v3059_v57  ;;  %v8097_v58 = vpop.f32.mrb[47].mxu0  ;;  %v8102_v59 = vpop.f32.mrb[29].mxu1 }
0x1812   :  { %v3143_v60 = vsel %vm173_vm2, %v3141_v40, -inf }
0x1813   :  { %3144 = vmax.xlane.f32.xlu0 %v3143_v60  ;;  %v3137_v61 = vpop.f32.mrb[48].mxu0 }
0x1814   :  { %v3142_v62 = vmul.f32 0.35355338, %v3137_v61  ;;  %v8107_v63 = vpop.f32.mrb[49].mxu0 }
0x1816   :  { %v3146_v2 = vsel %vm173_vm2, %v3142_v62, -inf }
0x1817   :  { %3147 = vmax.xlane.f32.xlu1 %v3146_v2 }
0x1828   :  { %3241 = vrot.lane.b32.xlu1 %v9124_v10, %s10019_s28 }
0x182c   :  { %2635 = vrot.lane.b32.xlu1 %v9210_v0, %s10020_s29 }
0x1830   :  { %2637 = vrot.lane.b32.xlu1 %v9212_v21, %s10020_s29 }
0x1834   :  { %2979 = vrot.lane.b32.xlu1 %v2971_v56, %s10021_s30 }
0x18a0   :  { %v3145_v3 = vpop.xlane.xlu0 %3144 }
0x18a1   :  { %v3149_v4 = vsub.f32 %v3141_v40, %v3145_v3 }
0x18a3   :  { %v3151_v5 = vmul.f32 1.442695, %v3149_v4 }
0x18a4   :  { %v3148_v6 = vpop.xlane.xlu1 %3147 }
0x18a5   :  { %8558 = vpow2.f32 %v3151_v5  ;;  %v3150_v8 = vsub.f32 %v3142_v62, %v3148_v6 }
0x18a7   :  { %v3153_v11 = vmul.f32 1.442695, %v3150_v8 }
0x18a8   :  { %v3242_v12 = vpop.permute.xlu1 %3241 }
0x18a9   :  { %8560 = vpow2.f32 %v3153_v11  ;;  %8114 = vmatpush3.msra.mxu0 %v3242_v12  ;;  %v7494_v12 = vld [vmem:[%s9970_s6 + $0x1] ss:$0 sm:$0xff] }
0x18aa   :  { %8126 = vmatprep.subr.bf16.mxu0 %v8690_v9 }
0x18ac   :  { %v2636_v10 = vpop.permute.xlu1 %2635 }
0x18ad   :  { %2641 = vst.msk [vmem:[#allocation2] sm:$0xff] %vm843_vm3, %v2636_v10 }
0x18af   :  { %v8559_v14 = vpop.eup %8558 }
0x18b0   :  { %v2638_v15 = vpop.permute.xlu1 %2637  ;;  %v3155_v17 = vsel %vm173_vm2, %v8559_v14, 0.0 }
0x18b1   :  { %2642 = vst.msk [vmem:[#allocation2 + $0x8] sm:$0xff] %vm843_vm3, %v2638_v15  ;;  %3156 = vadd.xlane.f32.xlu0 %v3155_v17 }
0x18b3   :  { %v8561_v18 = vpop.eup %8560 }
0x18b4   :  { %v2980_v19 = vpop.permute.xlu1 %2979  ;;  %v3158_v20 = vsel %vm173_vm2, %v8561_v18, 0.0 }
0x18b5   :  { %2984 = vst.msk [vmem:[#allocation2 + $0x8] sm:$0xff] %vm1186_vm4, %v2980_v19  ;;  %3159 = vadd.xlane.f32.xlu0 %v3158_v20 }
0x18cb   :  { %3165 = vrot.lane.b32.xlu0 %v9120_v7, %s10019_s28 }
0x18cf   :  { %2977 = vrot.lane.b32.xlu0 %v2895_v54, %s10021_s30 }
0x193e   :  { %v3157_v0 = vpop.xlane.xlu0 %3156 }
0x193f   :  { %8562 = vrcp.f32 %v3157_v0 }
0x1942   :  { %v3160_v1 = vpop.xlane.xlu0 %3159 }
0x1943   :  { %8564 = vrcp.f32 %v3160_v1 }
0x1946   :  { %v3166_v21 = vpop.permute.xlu0 %3165 }
0x1947   :  { %8109 = vmatpush3.msra.mxu1 %v3166_v21  ;;  %v8448_v21 = vld [vmem:[%s9974_s10 + $0x40] sm:$0xff]  }
0x1948   :  { %8118 = vmatprep.subr.bf16.mxu1 %v8690_v9 }
0x1949   :  { %v8563_v22 = vpop.eup %8562 }
0x194a   :  { %v2978_v23 = vpop.permute.xlu0 %2977  ;;  %v3163_v24 = vmul.f32 %v8563_v22, %v8559_v14  ;;  %v8449_v22 = vld [vmem:[%s9974_s10 + $0x48] sm:$0xff]  }
0x194b   :  { %2983 = vst.msk [vmem:[#allocation2] sm:$0xff] %vm1186_vm4, %v2978_v23  ;;  %v8450_v23 = vld [vmem:[%s9974_s10 + $0x50] sm:$0xff]  }
0x194c   :  { %8111 = vmatmul.mubr.msk.f32.vlgmr.msra.gmra.mrb[30].mxu1 %vm173_vm2, %v3163_v24  ;;  %v8451_v24 = vld [vmem:[%s9974_s10 + $0x58] sm:$0xff]  }
0x194d   :  { %v8565_v25 = vpop.eup %8564  ;;  %8122 = vmatprep.mubr.msk.bf16.mxu1 %vm8691_vm1, %v8690_v9  ;;  %8119 = vmatpush3.bf16.msra.mxu1 %v8444_v26  ;;  %v8454_v26 = vld [vmem:[%s9974_s10 + $0x70] sm:$0xff]  }
0x194e   :  { %v3164_v7 = vmul.f32 %v8565_v25, %v8561_v18  ;;  %8120 = vmatprep.subr.bf16.mxu1 %v8690_v9  ;;  %v7495_v18 = vld [vmem:[%s9971_s7 + $0x1] ss:$0 sm:$0xff] }
0x194f   :  { %v8452_v25 = vld [vmem:[%s9974_s10 + $0x60] sm:$0xff]  }
0x1950   :  { %8116 = vmatmul.mubr.msk.f32.vlgmr.msra.gmra.mrb[50].mxu0 %vm173_vm2, %v3164_v7  ;;  %v8453_v7 = vld [vmem:[%s9974_s10 + $0x68] sm:$0xff]  }
0x1951   :  { %8130 = vmatprep.mubr.msk.bf16.mxu0 %vm8691_vm1, %v8690_v9  ;;  %8121 = vmatpush3.bf16.msra.mxu1 %v8445_v27  ;;  %v8455_v27 = vld [vmem:[%s9974_s10 + $0x78] sm:$0xff]  }
0x1952   :  { %8134 = vmatprep.subr.bf16.mxu1 %v8690_v9  ;;  %8127 = vmatpush3.bf16.msra.mxu0 %v8446_v51 }
0x1953   :  { %8128 = vmatprep.subr.bf16.mxu0 %v8690_v9 }
0x1956   :  { %8129 = vmatpush3.bf16.msra.mxu0 %v8447_v52 }
0x1957   :  { %8154 = vmatprep.subr.bf16.mxu0 %v8690_v9 }
0x1a1f   :  { %v3237_v28 = vpop.f32.mrb[30].mxu1 }
0x1a20   :  { %3319 = vrot.lane.b32.xlu0 %v3237_v28, %s10022_s24  ;;  %v8112_v29 = vpop.f32.mrb[31].mxu1  ;;  %v7501_v28 = vld [vmem:[%s9973_s9 + $0x1] ss:$0 sm:$0xff] }
0x1a23   :  { %v3313_v31 = vpop.f32.mrb[50].mxu0 }
0x1a24   :  { %3321 = vrot.lane.b32.xlu1 %v3313_v31, %s10022_s24  ;;  %v8117_v32 = vpop.f32.mrb[51].mxu0 }
0x1a92   :  { %v3320_v34 = vpop.permute.xlu0 %3319 }
0x1a93   :  { %3325 = vst.msk [vmem:[#allocation2] sm:$0xff] %vm1529_vm5, %v3320_v34 }
0x1a96   :  { %v3322_v35 = vpop.permute.xlu1 %3321 }
0x1a97   :  { %3326 = vst.msk [vmem:[#allocation2 + $0x8] sm:$0xff] %vm1529_vm5, %v3322_v35 }
0x1a9a   :  { %v3327_v36 = vld [vmem:[#allocation2] sm:$0xff] }
0x1a9e   :  { %v3328_v37 = vld [vmem:[#allocation2 + $0x8] sm:$0xff] }
0x1a9f   :  { %v3329_v13 = vpack.c.bf16 %v3328_v37, %v3327_v36 }
0x1aa1   :  { %8123 = vmatmul.mubr.msk.bf16.vlgmr.msra.gmra.mrb[32].mxu1 %vm59_vm0, %v3329_v13 }
0x1aa2   :  { %8150 = vmatprep.mubr.msk.bf16.mxu1 %vm8691_vm1, %v8690_v9  ;;  %8135 = vmatpush3.bf16.msra.mxu1 %v8448_v21 }
0x1aa3   :  { %8136 = vmatprep.subr.bf16.mxu1 %v8690_v9 }
0x1aa6   :  { %8137 = vmatpush3.bf16.msra.mxu1 %v8449_v22 }
0x1aa7   :  { %8138 = vmatprep.subr.bf16.mxu1 %v8690_v9 }
0x1aaa   :  { %8139 = vmatpush3.bf16.msra.mxu1 %v8450_v23 }
0x1aab   :  { %8140 = vmatprep.subr.bf16.mxu1 %v8690_v9 }
0x1aae   :  { %8141 = vmatpush3.bf16.msra.mxu1 %v8451_v24 }
0x1aaf   :  { %8142 = vmatprep.subr.bf16.mxu1 %v8690_v9 }
0x1ab2   :  { %8143 = vmatpush3.bf16.msra.mxu1 %v8452_v25 }
0x1ab3   :  { %8144 = vmatprep.subr.bf16.mxu1 %v8690_v9 }
0x1ab6   :  { %8145 = vmatpush3.bf16.msra.mxu1 %v8453_v7 }
0x1ab7   :  { %8146 = vmatprep.subr.bf16.mxu1 %v8690_v9 }
0x1aba   :  { %8147 = vmatpush3.bf16.msra.mxu1 %v8454_v26  ;;  %v7533_v26 = vld [vmem:[%s9965_s1 + $0x2] ss:$0 sm:$0xff] }
0x1abb   :  { %8148 = vmatprep.subr.bf16.mxu1 %v8690_v9 }
0x1abe   :  { %8149 = vmatpush3.bf16.msra.mxu1 %v8455_v27 }
0x1abf   :  { %8192 = vmatprep.subr.mxu1 %v8690_v9 }
0x1b74   :  { %v3392_v38 = vpop.f32.mrb[32].mxu1 }
0x1b75   :  { %v3393_v39 = vadd.f32 %v7488_v16, %v3392_v38  ;;  %v8124_v41 = vpop.f32.mrb[33].mxu1 }
0x1b76   :  { %v3395_v43 = vpop.f32.mrb[34].mxu1 }
0x1b77   :  { %v9293_v44 = vadd.f32 %v3393_v39, %v9086_v30  ;;  %v3396_v42 = vadd.f32 %v7488_v16, %v3395_v43  ;;  %v8125_v45 = vpop.f32.mrb[35].mxu1 }
0x1b79   :  { %v9296_v46 = vadd.f32 %v3396_v42, %v9089_v33  ;;  %v3405_v47 = vsel %vm59_vm0, %v9293_v44, 0.0  ;;  %v3413_v48 = vmul.f32 %v9293_v44, %v9293_v44 }
0x1b7a   :  { %3406 = vadd.xlane.f32.xlu0 %v3405_v47 }
0x1b7b   :  { %v3408_v49 = vsel %vm59_vm0, %v9296_v46, 0.0  ;;  %v3415_v50 = vsel %vm59_vm0, %v3413_v48, 0.0  ;;  %v3414_v30 = vmul.f32 %v9296_v46, %v9296_v46 }
0x1b7c   :  { %3409 = vadd.xlane.f32.xlu1 %v3408_v49 }
0x1b7d   :  { %v3418_v33 = vsel %vm59_vm0, %v3414_v30, 0.0 }
0x1b7e   :  { %3416 = vadd.xlane.f32.xlu0 %v3415_v50 }
0x1b82   :  { %3419 = vadd.xlane.f32.xlu0 %v3418_v33 }
0x1c07   :  { %v3407_v53 = vpop.xlane.xlu0 %3406 }
0x1c08   :  { %v3411_v54 = vmul.f32 0.03125, %v3407_v53 }
0x1c09   :  { %v3410_v55 = vpop.xlane.xlu1 %3409 }
0x1c0a   :  { %v3423_v57 = vmul.f32 %v3411_v54, %v3411_v54  ;;  %v3412_v40 = vmul.f32 0.03125, %v3410_v55  ;;  %v3429_v6 = vsub.f32 %v9293_v44, %v3411_v54  ;;  %v7522_v55 = vld [vmem:[%s9975_s11 + $0x1] ss:$0 sm:$0xff] }
0x1c0b   :  { %v3417_v56 = vpop.xlane.xlu0 %3416 }
0x1c0c   :  { %v3421_v58 = vmul.f32 0.03125, %v3417_v56  ;;  %v3424_v61 = vmul.f32 %v3412_v40, %v3412_v40  ;;  %v3430_v10 = vsub.f32 %v9296_v46, %v3412_v40 }
0x1c0e   :  { %v3425_v59 = vsub.f32 %v3421_v58, %v3423_v57 }
0x1c0f   :  { %v3420_v60 = vpop.xlane.xlu0 %3419 }
0x1c10   :  { %v3427_v62 = vmax.f32 %v3425_v59, 0.0  ;;  %v3422_v63 = vmul.f32 0.03125, %v3420_v60 }
0x1c12   :  { %v3431_v2 = vadd.f32 1e-05, %v3427_v62  ;;  %v3426_v3 = vsub.f32 %v3422_v63, %v3424_v61 }
0x1c14   :  { %8566 = vrsqrt.f32 %v3431_v2  ;;  %v3428_v4 = vmax.f32 %v3426_v3, 0.0 }
0x1c16   :  { %v3432_v5 = vadd.f32 1e-05, %v3428_v4 }
0x1c18   :  { %8568 = vrsqrt.f32 %v3432_v5  ;;  %v8456_v5 = vld [vmem:[%s9967_s3 + $0x20] sm:$0xff]  }
0x1c1e   :  { %v8567_v8 = vpop.eup %8566 }
0x1c1f   :  { %v3435_v11 = vmul.f32 %v8567_v8, %v3429_v6  ;;  %v8457_v6 = vld [vmem:[%s9967_s3 + $0x28] sm:$0xff]  }
0x1c21   :  { %v3443_v17 = vmul.f32 %v7494_v12, %v3435_v11 }
0x1c22   :  { %v8569_v14 = vpop.eup %8568 }
0x1c23   :  { %v3436_v15 = vmul.f32 %v8569_v14, %v3430_v10  ;;  %v3451_v20 = vadd.f32 %v7495_v18, %v3443_v17 }
0x1c25   :  { %v3444_v19 = vmul.f32 %v7494_v12, %v3436_v15 }
0x1c27   :  { %v3452_v0 = vadd.f32 %v7495_v18, %v3444_v19 }
0x1c29   :  { %v3453_v1 = vpack.c.bf16 %v3452_v0, %v3451_v20 }
0x1c2b   :  { %8131 = vmatmul.mubr.msk.bf16.vlgmr.msra.gmra.mrb[52].mxu0 %vm59_vm0, %v3453_v1 }
0x1c2c   :  { %8158 = vmatprep.mubr.msk.bf16.mxu0 %vm8691_vm1, %v8690_v9  ;;  %8155 = vmatpush3.bf16.msra.mxu0 %v8456_v5 }
0x1c2d   :  { %8156 = vmatprep.subr.bf16.mxu0 %v8690_v9 }
0x1c30   :  { %8157 = vmatpush3.bf16.msra.mxu0 %v8457_v6 }
0x1c31   :  { %8162 = vmatprep.subr.mxu0 %v8690_v9 }
0x1cfe   :  { %v3516_v29 = vpop.f32.mrb[52].mxu0 }
0x1cff   :  { %v3517_v31 = vadd.f32 %v7501_v28, %v3516_v29  ;;  %v8132_v32 = vpop.f32.mrb[53].mxu0 }
0x1d00   :  { %v3519_v34 = vpop.f32.mrb[54].mxu0 }
0x1d01   :  { %v3523_v35 = vmul.f32 %v3517_v31, %v3517_v31  ;;  %v3520_v36 = vadd.f32 %v7501_v28, %v3519_v34  ;;  %v8133_v37 = vpop.f32.mrb[55].mxu0  ;;  %v7534_v34 = vld [vmem:[%s9966_s2 + $0x2] ss:$0 sm:$0xff] }
0x1d03   :  { %v3525_v13 = vmul.f32 %v3523_v35, %v3517_v31  ;;  %v3524_v16 = vmul.f32 %v3520_v36, %v3520_v36 }
0x1d05   :  { %v3527_v38 = vmul.f32 0.044715, %v3525_v13  ;;  %v3526_v39 = vmul.f32 %v3524_v16, %v3520_v36 }
0x1d07   :  { %v3529_v41 = vadd.f32 %v3527_v38, %v3517_v31  ;;  %v3528_v43 = vmul.f32 0.044715, %v3526_v39 }
0x1d09   :  { %v3531_v42 = vmul.f32 0.7978846, %v3529_v41  ;;  %v3530_v45 = vadd.f32 %v3528_v43, %v3520_v36 }
0x1d0b   :  { %8570 = vtanh.f32 %v3531_v42  ;;  %v3532_v47 = vmul.f32 0.7978846, %v3530_v45 }
0x1d0d   :  { %8572 = vtanh.f32 %v3532_v47 }
0x1d15   :  { %v8571_v48 = vpop.eup %8570 }
0x1d16   :  { %v3535_v49 = vadd.f32 1.0, %v8571_v48 }
0x1d17   :  { %v8573_v50 = vpop.eup %8572 }
0x1d18   :  { %v3537_v30 = vmul.f32 0.5, %v3535_v49  ;;  %v3536_v33 = vadd.f32 1.0, %v8573_v50 }
0x1d1a   :  { %v3538_v51 = vmul.f32 0.5, %v3536_v33  ;;  %v3539_v52 = vmul.f32 %v3537_v30, %v3517_v31 }
0x1d1c   :  { %v3540_v53 = vmul.f32 %v3538_v51, %v3520_v36 }
0x1d1e   :  { %v3541_v54 = vpack.c.bf16 %v3540_v53, %v3539_v52 }
0x1d20   :  { %8151 = vmatmul.mubr.bf16.vlgmr.msra.gmra.mrb[36].mxu1 %v3541_v54 }
0x1d21   :  { %8194 = vmatprep.mubr.msk.f32.mxu1 %vm8691_vm1, %v8690_v9 }
0x1df3   :  { %v3649_v56 = vpop.f32.mrb[36].mxu1 }
0x1df4   :  { %v3650_v57 = vadd.f32 %v7522_v55, %v3649_v56  ;;  %v8152_v40 = vpop.f32.mrb[37].mxu1 }
0x1df5   :  { %v3652_v58 = vpop.f32.mrb[38].mxu1 }
0x1df6   :  { %v9368_v59 = vadd.f32 %v3650_v57, %v9293_v44  ;;  %v3653_v60 = vadd.f32 %v7522_v55, %v3652_v58  ;;  %v8153_v61 = vpop.f32.mrb[39].mxu1 }
0x1df8   :  { %v9371_v62 = vadd.f32 %v3653_v60, %v9296_v46  ;;  %v3662_v63 = vsel %vm59_vm0, %v9368_v59, 0.0  ;;  %v3670_v2 = vmul.f32 %v9368_v59, %v9368_v59 }
0x1df9   :  { %3663 = vadd.xlane.f32.xlu0 %v3662_v63 }
0x1dfa   :  { %v3665_v3 = vsel %vm59_vm0, %v9371_v62, 0.0  ;;  %v3671_v4 = vmul.f32 %v9371_v62, %v9371_v62  ;;  %v3672_v44 = vsel %vm59_vm0, %v3670_v2, 0.0 }
0x1dfb   :  { %3666 = vadd.xlane.f32.xlu1 %v3665_v3 }
0x1dfc   :  { %v3675_v46 = vsel %vm59_vm0, %v3671_v4, 0.0 }
0x1dfd   :  { %3673 = vadd.xlane.f32.xlu0 %v3672_v44 }
0x1dff   :  { %3676 = vadd.xlane.f32.xlu1 %v3675_v46 }
0x1e86   :  { %v3664_v8 = vpop.xlane.xlu0 %3663 }
0x1e87   :  { %v3668_v11 = vmul.f32 0.03125, %v3664_v8 }
0x1e88   :  { %v3667_v12 = vpop.xlane.xlu1 %3666 }
0x1e89   :  { %v3669_v10 = vmul.f32 0.03125, %v3667_v12  ;;  %v3680_v15 = vmul.f32 %v3668_v11, %v3668_v11  ;;  %v3686_v25 = vsub.f32 %v9368_v59, %v3668_v11 }
0x1e8a   :  { %v3674_v14 = vpop.xlane.xlu0 %3673 }
0x1e8b   :  { %v3678_v17 = vmul.f32 0.03125, %v3674_v14  ;;  %v3681_v19 = vmul.f32 %v3669_v10, %v3669_v10  ;;  %v3687_v27 = vsub.f32 %v9371_v62, %v3669_v10 }
0x1e8c   :  { %v3677_v18 = vpop.xlane.xlu1 %3676 }
0x1e8d   :  { %v3682_v20 = vsub.f32 %v3678_v17, %v3680_v15  ;;  %v3679_v0 = vmul.f32 0.03125, %v3677_v18 }
0x1e8f   :  { %v3684_v1 = vmax.f32 %v3682_v20, 0.0  ;;  %v3683_v21 = vsub.f32 %v3679_v0, %v3681_v19 }
0x1e91   :  { %v3688_v22 = vadd.f32 1e-05, %v3684_v1  ;;  %v3685_v23 = vmax.f32 %v3683_v21, 0.0 }
0x1e93   :  { %8574 = vrsqrt.f32 %v3688_v22  ;;  %v3689_v24 = vadd.f32 1e-05, %v3685_v23 }
0x1e95   :  { %8576 = vrsqrt.f32 %v3689_v24 }
0x1e9d   :  { %v8575_v7 = vpop.eup %8574 }
0x1e9e   :  { %v3692_v28 = vmul.f32 %v8575_v7, %v3686_v25 }
0x1e9f   :  { %v8577_v29 = vpop.eup %8576 }
0x1ea0   :  { %v3693_v31 = vmul.f32 %v8577_v29, %v3687_v27  ;;  %v3700_v32 = vmul.f32 %v7533_v26, %v3692_v28 }
0x1ea2   :  { %v3701_v35 = vmul.f32 %v7533_v26, %v3693_v31  ;;  %v3708_v36 = vadd.f32 %v7534_v34, %v3700_v32 }
0x1ea4   :  { %v3709_v37 = vadd.f32 %v7534_v34, %v3701_v35 }
0x1ea6   :  { %v3710_v13 = vpack.c.bf16 %v3709_v37, %v3708_v36 }
0x1ea8   :  { %8159 = vmatmul.mubr.msk.bf16.vlgmr.msra.gmra.mrb[56].mxu0 %vm59_vm0, %v3710_v13 }
0x1ea9   :  { %8164 = vmatprep.mubr.msk.f32.mxu0 %vm8691_vm1, %v8690_v9 }
0x1f7b   :  { %v9402_v16 = vpop.f32.mrb[56].mxu0 }
0x1f7c   :  { %3773 = vrot.lane.b32.xlu0 %v9402_v16, %s10008_s19  ;;  %v8160_v38 = vpop.f32.mrb[57].mxu0 }
0x1f7d   :  { %v9406_v39 = vpop.f32.mrb[58].mxu0 }
0x1f7e   :  { %3850 = vrot.lane.b32.xlu1 %v9406_v39, %s10008_s19  ;;  %v8161_v41 = vpop.f32.mrb[59].mxu0 }
0x1fee   :  { %v3774_v43 = vpop.permute.xlu0 %3773 }
0x1fef   :  { %8163 = vmatpush3.xpose.msk.msra.mxu0 %vm173_vm2, %v3774_v43 }
0x1ff0   :  { %8167 = vmatprep.subr.mxu0 %v8690_v9  ;;  %v3851_v42 = vpop.permute.xlu1 %3850 }
0x1ff2   :  { %8165 = vmatmul.mubr.msk.f32.vlgmr.msra.gmra.mrb[60].mxu0 %vm173_vm2, %v9402_v16 }
0x1ff3   :  { %8168 = vmatpush3.xpose.msk.msra.mxu0 %vm173_vm2, %v3851_v42  ;;  %8169 = vmatprep.mubr.msk.f32.mxu0 %vm8691_vm1, %v8690_v9 }
0x1ff4   :  { %8172 = vmatprep.subr.mxu0 %v8690_v9 }
0x1ff6   :  { %8170 = vmatmul.mubr.msk.f32.vlgmr.msra.gmra.mrb[62].mxu0 %vm173_vm2, %v9406_v39 }
0x1ff7   :  { %8174 = vmatprep.mubr.msk.f32.mxu0 %vm8691_vm1, %v8690_v9 }
0x20c5   :  { %v3845_v45 = vpop.f32.mrb[60].mxu0 }
0x20c6   :  { %v3926_v47 = vmul.f32 0.35355338, %v3845_v45  ;;  %v8166_v48 = vpop.f32.mrb[61].mxu0 }
0x20c8   :  { %v3928_v49 = vsel %vm173_vm2, %v3926_v47, -inf }
0x20c9   :  { %3929 = vmax.xlane.f32.xlu1 %v3928_v49  ;;  %v3922_v50 = vpop.f32.mrb[62].mxu0 }
0x20ca   :  { %v3927_v30 = vmul.f32 0.35355338, %v3922_v50  ;;  %v8171_v33 = vpop.f32.mrb[63].mxu0 }
0x20cc   :  { %v3931_v51 = vsel %vm173_vm2, %v3927_v30, -inf }
0x20cd   :  { %3932 = vmax.xlane.f32.xlu0 %v3931_v51 }
0x20da   :  { %4026 = vrot.lane.b32.xlu1 %v9406_v39, %s10006_s20 }
0x20de   :  { %4106 = vrot.lane.b32.xlu1 %v9402_v16, %s10023_s0 }
0x20e2   :  { %4104 = vrot.lane.b32.xlu1 %v9402_v16, %s10024_s27 }
0x2156   :  { %v3930_v52 = vpop.xlane.xlu1 %3929 }
0x2157   :  { %v3934_v53 = vsub.f32 %v3926_v47, %v3930_v52 }
0x2159   :  { %v3936_v54 = vmul.f32 1.442695, %v3934_v53 }
0x215a   :  { %v3933_v55 = vpop.xlane.xlu0 %3932  ;;  %v4027_v63 = vpop.permute.xlu1 %4026 }
0x215b   :  { %8578 = vpow2.f32 %v3936_v54  ;;  %v3935_v56 = vsub.f32 %v3927_v30, %v3933_v55 }
0x215d   :  { %v3938_v57 = vmul.f32 1.442695, %v3935_v56 }
0x215e   :  { %v4107_v2 = vpop.permute.xlu1 %4106 }
0x215f   :  { %8580 = vpow2.f32 %v3938_v57 }
0x2162   :  { %v4105_v3 = vpop.permute.xlu1 %4104 }
0x2165   :  { %v8579_v40 = vpop.eup %8578 }
0x2166   :  { %v3940_v58 = vsel %vm173_vm2, %v8579_v40, 0.0 }
0x2167   :  { %3941 = vadd.xlane.f32.xlu0 %v3940_v58 }
0x2169   :  { %v8581_v60 = vpop.eup %8580 }
0x216a   :  { %v3943_v61 = vsel %vm173_vm2, %v8581_v60, 0.0 }
0x216b   :  { %3944 = vadd.xlane.f32.xlu1 %v3943_v61 }
0x217c   :  { %4182 = vrot.lane.b32.xlu1 %v9406_v39, %s10024_s27 }
0x217d   :  { %3950 = vrot.lane.b32.xlu0 %v9402_v16, %s10006_s20  ;;  %s10033_s20 = sld [smem:[#allocation9_spill]] }
0x2181   :  { %4184 = vrot.lane.b32.xlu0 %v9406_v39, %s10023_s0 }
0x21f4   :  { %v3942_v4 = vpop.xlane.xlu0 %3941 }
0x21f5   :  { %8582 = vrcp.f32 %v3942_v4 }
0x21f8   :  { %v3945_v44 = vpop.xlane.xlu1 %3944  ;;  %v3951_v46 = vpop.permute.xlu0 %3950 }
0x21f9   :  { %8584 = vrcp.f32 %v3945_v44  ;;  %8173 = vmatpush3.msra.mxu0 %v3951_v46 }
0x21fa   :  { %8177 = vmatprep.subr.mxu0 %v8690_v9 }
0x21fc   :  { %v4185_v12 = vpop.permute.xlu0 %4184  ;;  %v4183_v10 = vpop.permute.xlu1 %4182 }
0x21ff   :  { %v8583_v5 = vpop.eup %8582 }
0x2200   :  { %v3948_v6 = vmul.f32 %v8583_v5, %v8579_v40 }
0x2202   :  { %8175 = vmatmul.mubr.msk.f32.vlgmr.msra.gmra.mrb[64].mxu0 %vm173_vm2, %v3948_v6 }
0x2203   :  { %v8585_v8 = vpop.eup %8584  ;;  %8178 = vmatpush3.msra.mxu0 %v4027_v63  ;;  %8179 = vmatprep.mubr.msk.f32.mxu0 %vm8691_vm1, %v8690_v9 }
0x2204   :  { %v3949_v11 = vmul.f32 %v8585_v8, %v8581_v60  ;;  %8182 = vmatprep.subr.mxu0 %v8690_v9 }
0x2206   :  { %8180 = vmatmul.mubr.msk.f32.vlgmr.msra.gmra.mrb[66].mxu0 %vm173_vm2, %v3949_v11 }
0x2207   :  { %8184 = vmatprep.mubr.msk.f32.mxu0 %vm8691_vm1, %v8690_v9 }
0x220a   :  { %8183 = vmatpush3.xpose.msk.msra.mxu0 %vm173_vm2, %v4107_v2 }
0x220b   :  { %8187 = vmatprep.subr.mxu0 %v8690_v9 }
0x220d   :  { %8185 = vmatmul.mubr.msk.f32.vlgmr.msra.gmra.mrb[68].mxu0 %vm173_vm2, %v4105_v3 }
0x220e   :  { %8188 = vmatpush3.xpose.msk.msra.mxu0 %vm173_vm2, %v4185_v12  ;;  %8189 = vmatprep.mubr.msk.f32.mxu0 %vm8691_vm1, %v8690_v9 }
0x220f   :  { %8197 = vmatprep.subr.mxu0 %v8690_v9 }
0x2211   :  { %8190 = vmatmul.mubr.msk.f32.vlgmr.msra.gmra.mrb[70].mxu0 %vm173_vm2, %v4183_v10 }
0x2212   :  { %8199 = vmatprep.mubr.msk.f32.mxu0 %vm8691_vm1, %v8690_v9 }
0x22d5   :  { %v4022_v14 = vpop.f32.mrb[64].mxu0 }
0x22d6   :  { %4102 = vst.msk [vmem:[#allocation2] sm:$0xff] %vm173_vm2, %v4022_v14  ;;  %v8176_v15 = vpop.f32.mrb[65].mxu0 }
0x22d9   :  { %v4098_v17 = vpop.f32.mrb[66].mxu0 }
0x22da   :  { %4103 = vst.msk [vmem:[#allocation2 + $0x8] sm:$0xff] %vm173_vm2, %v4098_v17  ;;  %v8181_v18 = vpop.f32.mrb[67].mxu0 }
0x22e0   :  { %v4178_v19 = vpop.f32.mrb[68].mxu0 }
0x22e1   :  { %v4260_v20 = vmul.f32 0.35355338, %v4178_v19  ;;  %v8186_v0 = vpop.f32.mrb[69].mxu0 }
0x22e3   :  { %v4262_v1 = vsel %vm173_vm2, %v4260_v20, -inf }
0x22e4   :  { %4263 = vmax.xlane.f32.xlu0 %v4262_v1  ;;  %v4256_v21 = vpop.f32.mrb[70].mxu0 }
0x22e5   :  { %v4261_v22 = vmul.f32 0.35355338, %v4256_v21  ;;  %v8191_v23 = vpop.f32.mrb[71].mxu0 }
0x22e7   :  { %v4265_v24 = vsel %vm173_vm2, %v4261_v22, -inf }
0x22e8   :  { %4266 = vmax.xlane.f32.xlu1 %v4265_v24 }
0x22f9   :  { %4360 = vrot.lane.b32.xlu1 %v9406_v39, %s10025_s22 }
0x22fa   :  { %4284 = vrot.lane.b32.xlu0 %v9402_v16, %s10025_s22 }
0x22fd   :  { %4448 = vrot.lane.b32.xlu1 %v9402_v16, %s10026_s23 }
0x2301   :  { %4526 = vrot.lane.b32.xlu1 %v9406_v39, %s10026_s23 }
0x2305   :  { %4524 = vrot.lane.b32.xlu1 %v9406_v39, %s10027_s25 }
0x2371   :  { %v4264_v25 = vpop.xlane.xlu0 %4263 }
0x2372   :  { %v4268_v7 = vsub.f32 %v4260_v20, %v4264_v25 }
0x2374   :  { %v4270_v26 = vmul.f32 1.442695, %v4268_v7 }
0x2375   :  { %v4285_v27 = vpop.permute.xlu0 %4284  ;;  %v4267_v28 = vpop.xlane.xlu1 %4266 }
0x2376   :  { %8586 = vpow2.f32 %v4270_v26  ;;  %v4269_v29 = vsub.f32 %v4261_v22, %v4267_v28  ;;  %8193 = vmatpush3.msra.mxu1 %v4285_v27 }
0x2377   :  { %8202 = vmatprep.subr.mxu1 %v8690_v9 }
0x2378   :  { %v4272_v31 = vmul.f32 1.442695, %v4269_v29 }
0x2379   :  { %v4361_v32 = vpop.permute.xlu1 %4360 }
0x237a   :  { %8588 = vpow2.f32 %v4272_v31  ;;  %8198 = vmatpush3.msra.mxu0 %v4361_v32 }
0x237b   :  { %8207 = vmatprep.subr.mxu0 %v8690_v9 }
0x237d   :  { %v4449_v41 = vpop.permute.xlu1 %4448 }
0x2380   :  { %v8587_v34 = vpop.eup %8586 }
0x2381   :  { %v4274_v35 = vsel %vm173_vm2, %v8587_v34, 0.0  ;;  %v4527_v47 = vpop.permute.xlu1 %4526 }
0x2382   :  { %4275 = vadd.xlane.f32.xlu0 %v4274_v35 }
0x2384   :  { %v8589_v36 = vpop.eup %8588 }
0x2385   :  { %v4277_v37 = vsel %vm173_vm2, %v8589_v36, 0.0  ;;  %v4525_v50 = vpop.permute.xlu1 %4524 }
0x2386   :  { %4278 = vadd.xlane.f32.xlu0 %v4277_v37 }
0x239c   :  { %4446 = vrot.lane.b32.xlu0 %v9402_v16, %s10027_s25 }
0x240f   :  { %v4276_v13 = vpop.xlane.xlu0 %4275 }
0x2410   :  { %8590 = vrcp.f32 %v4276_v13 }
0x2413   :  { %v4279_v38 = vpop.xlane.xlu0 %4278 }
0x2414   :  { %8592 = vrcp.f32 %v4279_v38 }
0x2417   :  { %v4447_v49 = vpop.permute.xlu0 %4446 }
0x241a   :  { %v8591_v43 = vpop.eup %8590 }
0x241b   :  { %v4282_v42 = vmul.f32 %v8591_v43, %v8587_v34 }
0x241d   :  { %8195 = vmatmul.mubr.msk.f32.vlgmr.msra.gmra.mrb[40].mxu1 %vm173_vm2, %v4282_v42 }
0x241e   :  { %v8593_v45 = vpop.eup %8592  ;;  %8203 = vmatpush3.xpose.msk.msra.mxu1 %vm173_vm2, %v4449_v41  ;;  %8204 = vmatprep.mubr.msk.f32.mxu1 %vm8691_vm1, %v8690_v9 }
0x241f   :  { %v4283_v48 = vmul.f32 %v8593_v45, %v8589_v36  ;;  %8212 = vmatprep.subr.mxu1 %v8690_v9 }
0x2421   :  { %8200 = vmatmul.mubr.msk.f32.vlgmr.msra.gmra.mrb[72].mxu0 %vm173_vm2, %v4283_v48  ;;  %8205 = vmatmul.mubr.msk.f32.vlgmr.msra.gmra.mrb[42].mxu1 %vm173_vm2, %v4447_v49 }
0x2422   :  { %8208 = vmatpush3.xpose.msk.msra.mxu0 %vm173_vm2, %v4527_v47  ;;  %8209 = vmatprep.mubr.msk.f32.mxu0 %vm8691_vm1, %v8690_v9 }
0x2423   :  { %8217 = vmatprep.subr.mxu0 %v8690_v9  ;;  %8214 = vmatprep.mubr.msk.f32.mxu1 %vm8691_vm1, %v8690_v9 }
0x2425   :  { %8210 = vmatmul.mubr.msk.f32.vlgmr.msra.gmra.mrb[74].mxu0 %vm173_vm2, %v4525_v50 }
0x2426   :  { %8219 = vmatprep.mubr.msk.f32.mxu0 %vm8691_vm1, %v8690_v9 }
0x24f0   :  { %v9492_v30 = vpop.f32.mrb[40].mxu1 }
0x24f1   :  { %v8196_v33 = vpop.f32.mrb[41].mxu1 }
0x24f4   :  { %v9494_v51 = vpop.f32.mrb[72].mxu0  ;;  %v4520_v52 = vpop.f32.mrb[42].mxu1 }
0x24f5   :  { %v4602_v53 = vmul.f32 0.35355338, %v4520_v52  ;;  %v8201_v54 = vpop.f32.mrb[73].mxu0  ;;  %v8206_v55 = vpop.f32.mrb[43].mxu1 }
0x24f7   :  { %v4604_v56 = vsel %vm173_vm2, %v4602_v53, -inf }
0x24f8   :  { %4605 = vmax.xlane.f32.xlu0 %v4604_v56  ;;  %v4598_v57 = vpop.f32.mrb[74].mxu0  ;;  %v8458_v56 = vld [vmem:[%s9968_s4 + $0x20] sm:$0xff]  }
0x24f9   :  { %v4603_v40 = vmul.f32 0.35355338, %v4598_v57  ;;  %v8211_v58 = vpop.f32.mrb[75].mxu0  ;;  %v8459_v57 = vld [vmem:[%s9968_s4 + $0x28] sm:$0xff]  }
0x24fb   :  { %v4607_v60 = vsel %vm173_vm2, %v4603_v40, -inf }
0x24fc   :  { %4608 = vmax.xlane.f32.xlu1 %v4607_v60 }
0x250d   :  { %4702 = vrot.lane.b32.xlu1 %v9406_v39, %s10028_s26 }
0x250e   :  { %4626 = vrot.lane.b32.xlu0 %v9402_v16, %s10028_s26 }
0x2511   :  { %4790 = vrot.lane.b32.xlu1 %v9402_v16, %s10017_s17 }
0x2515   :  { %4868 = vrot.lane.b32.xlu1 %v9406_v39, %s10017_s17 }
0x2519   :  { %4866 = vrot.lane.b32.xlu1 %v9406_v39, %s10018_s18 }
0x2585   :  { %v4606_v61 = vpop.xlane.xlu0 %4605 }
0x2586   :  { %v4610_v63 = vsub.f32 %v4602_v53, %v4606_v61 }
0x2588   :  { %v4612_v2 = vmul.f32 1.442695, %v4610_v63 }
0x2589   :  { %v4627_v3 = vpop.permute.xlu0 %4626  ;;  %v4609_v4 = vpop.xlane.xlu1 %4608 }
0x258a   :  { %8594 = vpow2.f32 %v4612_v2  ;;  %v4611_v44 = vsub.f32 %v4603_v40, %v4609_v4  ;;  %8213 = vmatpush3.msra.mxu1 %v4627_v3 }
0x258b   :  { %8222 = vmatprep.subr.mxu1 %v8690_v9 }
0x258c   :  { %v4614_v46 = vmul.f32 1.442695, %v4611_v44 }
0x258d   :  { %v4703_v5 = vpop.permute.xlu1 %4702 }
0x258e   :  { %8596 = vpow2.f32 %v4614_v46  ;;  %8218 = vmatpush3.msra.mxu0 %v4703_v5  ;;  %v7571_v46 = vld [vmem:[%s9969_s5 + $0x2] ss:$0 sm:$0xff] }
0x258f   :  { %8227 = vmatprep.subr.mxu0 %v8690_v9 }
0x2591   :  { %v4791_v15 = vpop.permute.xlu1 %4790 }
0x2594   :  { %v8595_v6 = vpop.eup %8594 }
0x2595   :  { %v4616_v8 = vsel %vm173_vm2, %v8595_v6, 0.0  ;;  %v4869_v20 = vpop.permute.xlu1 %4868 }
0x2596   :  { %4617 = vadd.xlane.f32.xlu0 %v4616_v8 }
0x2598   :  { %v8597_v11 = vpop.eup %8596 }
0x2599   :  { %v4619_v12 = vsel %vm173_vm2, %v8597_v11, 0.0  ;;  %v4867_v21 = vpop.permute.xlu1 %4866 }
0x259a   :  { %4620 = vadd.xlane.f32.xlu0 %v4619_v12 }
0x25b0   :  { %4788 = vrot.lane.b32.xlu0 %v9402_v16, %s10018_s18 }
0x2623   :  { %v4618_v10 = vpop.xlane.xlu0 %4617 }
0x2624   :  { %8598 = vrcp.f32 %v4618_v10 }
0x2627   :  { %v4621_v14 = vpop.xlane.xlu0 %4620 }
0x2628   :  { %8600 = vrcp.f32 %v4621_v14 }
0x262b   :  { %v4789_v1 = vpop.permute.xlu0 %4788 }
0x262e   :  { %v8599_v17 = vpop.eup %8598 }
0x262f   :  { %v4624_v18 = vmul.f32 %v8599_v17, %v8595_v6 }
0x2631   :  { %8215 = vmatmul.mubr.msk.f32.vlgmr.msra.gmra.mrb[44].mxu1 %vm173_vm2, %v4624_v18 }
0x2632   :  { %v8601_v19 = vpop.eup %8600  ;;  %8223 = vmatpush3.xpose.msk.msra.mxu1 %vm173_vm2, %v4791_v15  ;;  %8224 = vmatprep.mubr.msk.f32.mxu1 %vm8691_vm1, %v8690_v9 }
0x2633   :  { %v4625_v0 = vmul.f32 %v8601_v19, %v8597_v11  ;;  %8232 = vmatprep.subr.mxu1 %v8690_v9 }
0x2635   :  { %8220 = vmatmul.mubr.msk.f32.vlgmr.msra.gmra.mrb[76].mxu0 %vm173_vm2, %v4625_v0  ;;  %8225 = vmatmul.mubr.msk.f32.vlgmr.msra.gmra.mrb[46].mxu1 %vm173_vm2, %v4789_v1  ;;  %v8460_v0 = vld [vmem:[%s9972_s8 + $0x20] sm:$0xff]   ;;  %v8461_v1 = vld [vmem:[%s9972_s8 + $0x28] sm:$0xff]  }
0x2636   :  { %8228 = vmatpush3.xpose.msk.msra.mxu0 %vm173_vm2, %v4869_v20  ;;  %8229 = vmatprep.mubr.msk.f32.mxu0 %vm8691_vm1, %v8690_v9 }
0x2637   :  { %8237 = vmatprep.subr.mxu0 %v8690_v9  ;;  %8234 = vmatprep.mubr.msk.f32.mxu1 %vm8691_vm1, %v8690_v9 }
0x2639   :  { %8230 = vmatmul.mubr.msk.f32.vlgmr.msra.gmra.mrb[78].mxu0 %vm173_vm2, %v4867_v21 }
0x263a   :  { %8239 = vmatprep.mubr.msk.f32.mxu0 %vm8691_vm1, %v8690_v9 }
0x2704   :  { %v4698_v22 = vpop.f32.mrb[44].mxu1 }
0x2705   :  { %v8216_v23 = vpop.f32.mrb[45].mxu1 }
0x2708   :  { %v4774_v24 = vpop.f32.mrb[76].mxu0  ;;  %v4862_v25 = vpop.f32.mrb[46].mxu1 }
0x2709   :  { %v4944_v7 = vmul.f32 0.35355338, %v4862_v25  ;;  %v8221_v26 = vpop.f32.mrb[77].mxu0  ;;  %v8226_v27 = vpop.f32.mrb[47].mxu1 }
0x270b   :  { %v4946_v28 = vsel %vm173_vm2, %v4944_v7, -inf }
0x270c   :  { %4947 = vmax.xlane.f32.xlu0 %v4946_v28  ;;  %v4940_v29 = vpop.f32.mrb[78].mxu0 }
0x270d   :  { %v4945_v31 = vmul.f32 0.35355338, %v4940_v29  ;;  %v8231_v32 = vpop.f32.mrb[79].mxu0 }
0x270f   :  { %v4949_v34 = vsel %vm173_vm2, %v4945_v31, -inf }
0x2710   :  { %4950 = vmax.xlane.f32.xlu1 %v4949_v34 }
0x2721   :  { %5044 = vrot.lane.b32.xlu1 %v9406_v39, %s10019_s28 }
0x2725   :  { %4438 = vrot.lane.b32.xlu1 %v9492_v30, %s10020_s29 }
0x2729   :  { %4440 = vrot.lane.b32.xlu1 %v9494_v51, %s10020_s29 }
0x272d   :  { %4782 = vrot.lane.b32.xlu1 %v4774_v24, %s10021_s30 }
0x2799   :  { %v4948_v35 = vpop.xlane.xlu0 %4947 }
0x279a   :  { %v4952_v36 = vsub.f32 %v4944_v7, %v4948_v35 }
0x279c   :  { %v4954_v37 = vmul.f32 1.442695, %v4952_v36 }
0x279d   :  { %v4951_v13 = vpop.xlane.xlu1 %4950 }
0x279e   :  { %8602 = vpow2.f32 %v4954_v37  ;;  %v4953_v38 = vsub.f32 %v4945_v31, %v4951_v13 }
0x27a0   :  { %v4956_v41 = vmul.f32 1.442695, %v4953_v38 }
0x27a1   :  { %v5045_v43 = vpop.permute.xlu1 %5044 }
0x27a2   :  { %8604 = vpow2.f32 %v4956_v41  ;;  %8238 = vmatpush3.msra.mxu0 %v5045_v43  ;;  %v7577_v43 = vld [vmem:[%s9970_s6 + $0x2] ss:$0 sm:$0xff] }
0x27a3   :  { %8250 = vmatprep.subr.bf16.mxu0 %v8690_v9 }
0x27a5   :  { %v4439_v39 = vpop.permute.xlu1 %4438 }
0x27a6   :  { %4444 = vst.msk [vmem:[#allocation2] sm:$0xff] %vm843_vm3, %v4439_v39 }
0x27a8   :  { %v8603_v42 = vpop.eup %8602 }
0x27a9   :  { %v4441_v45 = vpop.permute.xlu1 %4440  ;;  %v4958_v47 = vsel %vm173_vm2, %v8603_v42, 0.0 }
0x27aa   :  { %4445 = vst.msk [vmem:[#allocation2 + $0x8] sm:$0xff] %vm843_vm3, %v4441_v45  ;;  %4959 = vadd.xlane.f32.xlu0 %v4958_v47 }
0x27ac   :  { %v8605_v48 = vpop.eup %8604 }
0x27ad   :  { %v4783_v49 = vpop.permute.xlu1 %4782  ;;  %v4961_v50 = vsel %vm173_vm2, %v8605_v48, 0.0 }
0x27ae   :  { %4787 = vst.msk [vmem:[#allocation2 + $0x8] sm:$0xff] %vm1186_vm4, %v4783_v49  ;;  %4962 = vadd.xlane.f32.xlu0 %v4961_v50 }
0x27c4   :  { %4968 = vrot.lane.b32.xlu0 %v9402_v16, %s10019_s28 }
0x27c8   :  { %4780 = vrot.lane.b32.xlu0 %v4698_v22, %s10021_s30 }
0x2837   :  { %v4960_v30 = vpop.xlane.xlu0 %4959 }
0x2838   :  { %8606 = vrcp.f32 %v4960_v30 }
0x283b   :  { %v4963_v33 = vpop.xlane.xlu0 %4962 }
0x283c   :  { %8608 = vrcp.f32 %v4963_v33 }
0x283f   :  { %v4969_v51 = vpop.permute.xlu0 %4968 }
0x2840   :  { %8233 = vmatpush3.msra.mxu1 %v4969_v51  ;;  %v8462_v51 = vld [vmem:[%s9974_s10 + $0x80] sm:$0xff]  }
0x2841   :  { %8242 = vmatprep.subr.bf16.mxu1 %v8690_v9 }
0x2842   :  { %v8607_v52 = vpop.eup %8606 }
0x2843   :  { %v4966_v53 = vmul.f32 %v8607_v52, %v8603_v42  ;;  %v4781_v54 = vpop.permute.xlu0 %4780  ;;  %v8463_v52 = vld [vmem:[%s9974_s10 + $0x88] sm:$0xff]  }
0x2844   :  { %4786 = vst.msk [vmem:[#allocation2] sm:$0xff] %vm1186_vm4, %v4781_v54  ;;  %v8465_v54 = vld [vmem:[%s9974_s10 + $0x98] sm:$0xff]  }
0x2845   :  { %8235 = vmatmul.mubr.msk.f32.vlgmr.msra.gmra.mrb[48].mxu1 %vm173_vm2, %v4966_v53  ;;  %v8464_v53 = vld [vmem:[%s9974_s10 + $0x90] sm:$0xff]  }
0x2846   :  { %v8609_v55 = vpop.eup %8608  ;;  %8246 = vmatprep.mubr.msk.bf16.mxu1 %vm8691_vm1, %v8690_v9  ;;  %8243 = vmatpush3.bf16.msra.mxu1 %v8458_v56  ;;  %v8468_v56 = vld [vmem:[%s9974_s10 + $0xb0] sm:$0xff]  }
0x2847   :  { %v4967_v16 = vmul.f32 %v8609_v55, %v8605_v48  ;;  %8244 = vmatprep.subr.bf16.mxu1 %v8690_v9  ;;  %v7578_v48 = vld [vmem:[%s9971_s7 + $0x2] ss:$0 sm:$0xff] }
0x2848   :  { %v8466_v55 = vld [vmem:[%s9974_s10 + $0xa0] sm:$0xff]  }
0x2849   :  { %8240 = vmatmul.mubr.msk.f32.vlgmr.msra.gmra.mrb[80].mxu0 %vm173_vm2, %v4967_v16  ;;  %v8467_v16 = vld [vmem:[%s9974_s10 + $0xa8] sm:$0xff]  }
0x284a   :  { %8254 = vmatprep.mubr.msk.bf16.mxu0 %vm8691_vm1, %v8690_v9  ;;  %8245 = vmatpush3.bf16.msra.mxu1 %v8459_v57  ;;  %v8469_v57 = vld [vmem:[%s9974_s10 + $0xb8] sm:$0xff]  }
0x284b   :  { %8258 = vmatprep.subr.bf16.mxu1 %v8690_v9  ;;  %8251 = vmatpush3.bf16.msra.mxu0 %v8460_v0 }
0x284c   :  { %8252 = vmatprep.subr.bf16.mxu0 %v8690_v9 }
0x284f   :  { %8253 = vmatpush3.bf16.msra.mxu0 %v8461_v1 }
0x2850   :  { %8278 = vmatprep.subr.bf16.mxu0 %v8690_v9 }
0x2918   :  { %v5040_v40 = vpop.f32.mrb[48].mxu1 }
0x2919   :  { %5122 = vrot.lane.b32.xlu0 %v5040_v40, %s10022_s24  ;;  %v8236_v58 = vpop.f32.mrb[49].mxu1  ;;  %v7584_v40 = vld [vmem:[%s9973_s9 + $0x2] ss:$0 sm:$0xff] }
0x291c   :  { %v5116_v60 = vpop.f32.mrb[80].mxu0 }
0x291d   :  { %5124 = vrot.lane.b32.xlu1 %v5116_v60, %s10022_s24  ;;  %v8241_v61 = vpop.f32.mrb[81].mxu0 }
0x298b   :  { %v5123_v63 = vpop.permute.xlu0 %5122 }
0x298c   :  { %5128 = vst.msk [vmem:[#allocation2] sm:$0xff] %vm1529_vm5, %v5123_v63 }
0x298f   :  { %v5125_v2 = vpop.permute.xlu1 %5124 }
0x2990   :  { %5129 = vst.msk [vmem:[#allocation2 + $0x8] sm:$0xff] %vm1529_vm5, %v5125_v2 }
0x2993   :  { %v5130_v3 = vld [vmem:[#allocation2] sm:$0xff] }
0x2997   :  { %v5131_v4 = vld [vmem:[#allocation2 + $0x8] sm:$0xff] }
0x2998   :  { %v5132_v44 = vpack.c.bf16 %v5131_v4, %v5130_v3 }
0x299a   :  { %8247 = vmatmul.mubr.msk.bf16.vlgmr.msra.gmra.mrb[52].mxu1 %vm59_vm0, %v5132_v44 }
0x299b   :  { %8274 = vmatprep.mubr.msk.bf16.mxu1 %vm8691_vm1, %v8690_v9  ;;  %8259 = vmatpush3.bf16.msra.mxu1 %v8462_v51 }
0x299c   :  { %8260 = vmatprep.subr.bf16.mxu1 %v8690_v9 }
0x299f   :  { %8261 = vmatpush3.bf16.msra.mxu1 %v8463_v52 }
0x29a0   :  { %8262 = vmatprep.subr.bf16.mxu1 %v8690_v9 }
0x29a3   :  { %8263 = vmatpush3.bf16.msra.mxu1 %v8464_v53 }
0x29a4   :  { %8264 = vmatprep.subr.bf16.mxu1 %v8690_v9 }
0x29a7   :  { %8265 = vmatpush3.bf16.msra.mxu1 %v8465_v54 }
0x29a8   :  { %8266 = vmatprep.subr.bf16.mxu1 %v8690_v9 }
0x29ab   :  { %8267 = vmatpush3.bf16.msra.mxu1 %v8466_v55 }
0x29ac   :  { %8268 = vmatprep.subr.bf16.mxu1 %v8690_v9 }
0x29af   :  { %8269 = vmatpush3.bf16.msra.mxu1 %v8467_v16 }
0x29b0   :  { %8270 = vmatprep.subr.bf16.mxu1 %v8690_v9 }
0x29b3   :  { %8271 = vmatpush3.bf16.msra.mxu1 %v8468_v56  ;;  %v7616_v56 = vld [vmem:[%s9965_s1 + $0x3] ss:$0 sm:$0xff]  ;;  %s10029_s1 = smov 96  }
0x29b4   :  { %8272 = vmatprep.subr.bf16.mxu1 %v8690_v9 }
0x29b7   :  { %8273 = vmatpush3.bf16.msra.mxu1 %v8469_v57 }
0x29b8   :  { %8316 = vmatprep.subr.mxu1 %v8690_v9 }
0x2a6d   :  { %v5195_v5 = vpop.f32.mrb[52].mxu1 }
0x2a6e   :  { %v5196_v6 = vadd.f32 %v7571_v46, %v5195_v5  ;;  %v8248_v8 = vpop.f32.mrb[53].mxu1 }
0x2a6f   :  { %v5198_v11 = vpop.f32.mrb[54].mxu1 }
0x2a70   :  { %v9575_v12 = vadd.f32 %v5196_v6, %v9368_v59  ;;  %v5199_v10 = vadd.f32 %v7571_v46, %v5198_v11  ;;  %v8249_v14 = vpop.f32.mrb[55].mxu1 }
0x2a72   :  { %v9578_v15 = vadd.f32 %v5199_v10, %v9371_v62  ;;  %v5208_v17 = vsel %vm59_vm0, %v9575_v12, 0.0  ;;  %v5216_v18 = vmul.f32 %v9575_v12, %v9575_v12 }
0x2a73   :  { %5209 = vadd.xlane.f32.xlu0 %v5208_v17 }
0x2a74   :  { %v5211_v19 = vsel %vm59_vm0, %v9578_v15, 0.0  ;;  %v5218_v20 = vsel %vm59_vm0, %v5216_v18, 0.0  ;;  %v5217_v59 = vmul.f32 %v9578_v15, %v9578_v15 }
0x2a75   :  { %5212 = vadd.xlane.f32.xlu1 %v5211_v19 }
0x2a76   :  { %v5221_v62 = vsel %vm59_vm0, %v5217_v59, 0.0 }
0x2a77   :  { %5219 = vadd.xlane.f32.xlu0 %v5218_v20 }
0x2a7b   :  { %5222 = vadd.xlane.f32.xlu0 %v5221_v62 }
0x2b00   :  { %v5210_v21 = vpop.xlane.xlu0 %5209 }
0x2b01   :  { %v5214_v22 = vmul.f32 0.03125, %v5210_v21 }
0x2b02   :  { %v5213_v23 = vpop.xlane.xlu1 %5212 }
0x2b03   :  { %v5226_v25 = vmul.f32 %v5214_v22, %v5214_v22  ;;  %v5215_v7 = vmul.f32 0.03125, %v5213_v23  ;;  %v5232_v13 = vsub.f32 %v9575_v12, %v5214_v22  ;;  %v7605_v23 = vld [vmem:[%s9975_s11 + $0x2] ss:$0 sm:$0xff] }
0x2b04   :  { %v5220_v24 = vpop.xlane.xlu0 %5219 }
0x2b05   :  { %v5224_v26 = vmul.f32 0.03125, %v5220_v24  ;;  %v5227_v29 = vmul.f32 %v5215_v7, %v5215_v7  ;;  %v5233_v39 = vsub.f32 %v9578_v15, %v5215_v7 }
0x2b07   :  { %v5228_v27 = vsub.f32 %v5224_v26, %v5226_v25 }
0x2b08   :  { %v5223_v28 = vpop.xlane.xlu0 %5222 }
0x2b09   :  { %v5230_v31 = vmax.f32 %v5228_v27, 0.0  ;;  %v5225_v32 = vmul.f32 0.03125, %v5223_v28 }
0x2b0b   :  { %v5234_v34 = vadd.f32 1e-05, %v5230_v31  ;;  %v5229_v35 = vsub.f32 %v5225_v32, %v5227_v29 }
0x2b0d   :  { %8610 = vrsqrt.f32 %v5234_v34  ;;  %v5231_v36 = vmax.f32 %v5229_v35, 0.0 }
0x2b0f   :  { %v5235_v37 = vadd.f32 1e-05, %v5231_v36 }
0x2b11   :  { %8612 = vrsqrt.f32 %v5235_v37  ;;  %v8470_v37 = vld [vmem:[%s9967_s3 + $0x30] sm:$0xff]  }
0x2b17   :  { %v8611_v38 = vpop.eup %8610 }
0x2b18   :  { %v5238_v41 = vmul.f32 %v8611_v38, %v5232_v13  ;;  %v8471_v13 = vld [vmem:[%s9967_s3 + $0x38] sm:$0xff]  }
0x2b1a   :  { %v5246_v47 = vmul.f32 %v7577_v43, %v5238_v41 }
0x2b1b   :  { %v8613_v42 = vpop.eup %8612 }
0x2b1c   :  { %v5239_v45 = vmul.f32 %v8613_v42, %v5233_v39  ;;  %v5254_v50 = vadd.f32 %v7578_v48, %v5246_v47 }
0x2b1e   :  { %v5247_v49 = vmul.f32 %v7577_v43, %v5239_v45 }
0x2b20   :  { %v5255_v30 = vadd.f32 %v7578_v48, %v5247_v49 }
0x2b22   :  { %v5256_v33 = vpack.c.bf16 %v5255_v30, %v5254_v50 }
0x2b24   :  { %8255 = vmatmul.mubr.msk.bf16.vlgmr.msra.gmra.mrb[84].mxu0 %vm59_vm0, %v5256_v33 }
0x2b25   :  { %8282 = vmatprep.mubr.msk.bf16.mxu0 %vm8691_vm1, %v8690_v9  ;;  %8279 = vmatpush3.bf16.msra.mxu0 %v8470_v37 }
0x2b26   :  { %8280 = vmatprep.subr.bf16.mxu0 %v8690_v9 }
0x2b29   :  { %8281 = vmatpush3.bf16.msra.mxu0 %v8471_v13 }
0x2b2a   :  { %8286 = vmatprep.subr.mxu0 %v8690_v9 }
0x2bf7   :  { %v5319_v58 = vpop.f32.mrb[84].mxu0 }
0x2bf8   :  { %v5320_v60 = vadd.f32 %v7584_v40, %v5319_v58  ;;  %v8256_v61 = vpop.f32.mrb[85].mxu0 }
0x2bf9   :  { %v5322_v63 = vpop.f32.mrb[86].mxu0 }
0x2bfa   :  { %v5326_v2 = vmul.f32 %v5320_v60, %v5320_v60  ;;  %v5323_v3 = vadd.f32 %v7584_v40, %v5322_v63  ;;  %v8257_v4 = vpop.f32.mrb[87].mxu0  ;;  %v7617_v63 = vld [vmem:[%s9966_s2 + $0x3] ss:$0 sm:$0xff]  ;;  %s10030_s2 = smov 64  }
0x2bfc   :  { %v5328_v44 = vmul.f32 %v5326_v2, %v5320_v60  ;;  %v5327_v46 = vmul.f32 %v5323_v3, %v5323_v3 }
0x2bfe   :  { %v5330_v5 = vmul.f32 0.044715, %v5328_v44  ;;  %v5329_v6 = vmul.f32 %v5327_v46, %v5323_v3 }
0x2c00   :  { %v5332_v8 = vadd.f32 %v5330_v5, %v5320_v60  ;;  %v5331_v11 = vmul.f32 0.044715, %v5329_v6 }
0x2c02   :  { %v5334_v10 = vmul.f32 0.7978846, %v5332_v8  ;;  %v5333_v14 = vadd.f32 %v5331_v11, %v5323_v3 }
0x2c04   :  { %8614 = vtanh.f32 %v5334_v10  ;;  %v5335_v17 = vmul.f32 0.7978846, %v5333_v14 }
0x2c06   :  { %8616 = vtanh.f32 %v5335_v17 }
0x2c0e   :  { %v8615_v18 = vpop.eup %8614 }
0x2c0f   :  { %v5338_v19 = vadd.f32 1.0, %v8615_v18 }
0x2c10   :  { %v8617_v20 = vpop.eup %8616 }
0x2c11   :  { %v5340_v59 = vmul.f32 0.5, %v5338_v19  ;;  %v5339_v62 = vadd.f32 1.0, %v8617_v20 }
0x2c13   :  { %v5341_v0 = vmul.f32 0.5, %v5339_v62  ;;  %v5342_v1 = vmul.f32 %v5340_v59, %v5320_v60 }
0x2c15   :  { %v5343_v21 = vmul.f32 %v5341_v0, %v5323_v3 }
0x2c17   :  { %v5344_v22 = vpack.c.bf16 %v5343_v21, %v5342_v1 }
0x2c19   :  { %8275 = vmatmul.mubr.bf16.vlgmr.msra.gmra.mrb[56].mxu1 %v5344_v22 }
0x2c1a   :  { %8318 = vmatprep.mubr.msk.f32.mxu1 %vm8691_vm1, %v8690_v9 }
0x2cec   :  { %v5452_v24 = vpop.f32.mrb[56].mxu1 }
0x2ced   :  { %v5453_v25 = vadd.f32 %v7605_v23, %v5452_v24  ;;  %v8276_v7 = vpop.f32.mrb[57].mxu1 }
0x2cee   :  { %v5455_v26 = vpop.f32.mrb[58].mxu1 }
0x2cef   :  { %v9650_v27 = vadd.f32 %v5453_v25, %v9575_v12  ;;  %v5456_v28 = vadd.f32 %v7605_v23, %v5455_v26  ;;  %v8277_v29 = vpop.f32.mrb[59].mxu1 }
0x2cf1   :  { %v9653_v31 = vadd.f32 %v5456_v28, %v9578_v15  ;;  %v5465_v32 = vsel %vm59_vm0, %v9650_v27, 0.0  ;;  %v5473_v34 = vmul.f32 %v9650_v27, %v9650_v27 }
0x2cf2   :  { %5466 = vadd.xlane.f32.xlu0 %v5465_v32 }
0x2cf3   :  { %v5468_v35 = vsel %vm59_vm0, %v9653_v31, 0.0  ;;  %v5474_v36 = vmul.f32 %v9653_v31, %v9653_v31  ;;  %v5475_v12 = vsel %vm59_vm0, %v5473_v34, 0.0 }
0x2cf4   :  { %5469 = vadd.xlane.f32.xlu1 %v5468_v35 }
0x2cf5   :  { %v5478_v15 = vsel %vm59_vm0, %v5474_v36, 0.0 }
0x2cf6   :  { %5476 = vadd.xlane.f32.xlu0 %v5475_v12 }
0x2cf8   :  { %5479 = vadd.xlane.f32.xlu1 %v5478_v15 }
0x2d7f   :  { %v5467_v38 = vpop.xlane.xlu0 %5466 }
0x2d80   :  { %v5471_v41 = vmul.f32 0.03125, %v5467_v38 }
0x2d81   :  { %v5470_v43 = vpop.xlane.xlu1 %5469 }
0x2d82   :  { %v5472_v39 = vmul.f32 0.03125, %v5470_v43  ;;  %v5483_v45 = vmul.f32 %v5471_v41, %v5471_v41  ;;  %v5489_v55 = vsub.f32 %v9650_v27, %v5471_v41 }
0x2d83   :  { %v5477_v42 = vpop.xlane.xlu0 %5476 }
0x2d84   :  { %v5481_v47 = vmul.f32 0.03125, %v5477_v42  ;;  %v5484_v49 = vmul.f32 %v5472_v39, %v5472_v39  ;;  %v5490_v57 = vsub.f32 %v9653_v31, %v5472_v39 }
0x2d85   :  { %v5480_v48 = vpop.xlane.xlu1 %5479 }
0x2d86   :  { %v5485_v50 = vsub.f32 %v5481_v47, %v5483_v45  ;;  %v5482_v30 = vmul.f32 0.03125, %v5480_v48 }
0x2d88   :  { %v5487_v33 = vmax.f32 %v5485_v50, 0.0  ;;  %v5486_v51 = vsub.f32 %v5482_v30, %v5484_v49 }
0x2d8a   :  { %v5491_v52 = vadd.f32 1e-05, %v5487_v33  ;;  %v5488_v53 = vmax.f32 %v5486_v51, 0.0 }
0x2d8c   :  { %8618 = vrsqrt.f32 %v5491_v52  ;;  %v5492_v54 = vadd.f32 1e-05, %v5488_v53 }
0x2d8e   :  { %8620 = vrsqrt.f32 %v5492_v54 }
0x2d96   :  { %v8619_v16 = vpop.eup %8618 }
0x2d97   :  { %v5495_v40 = vmul.f32 %v8619_v16, %v5489_v55 }
0x2d98   :  { %v8621_v58 = vpop.eup %8620 }
0x2d99   :  { %v5496_v60 = vmul.f32 %v8621_v58, %v5490_v57  ;;  %v5503_v61 = vmul.f32 %v7616_v56, %v5495_v40 }
0x2d9b   :  { %v5504_v2 = vmul.f32 %v7616_v56, %v5496_v60  ;;  %v5511_v3 = vadd.f32 %v7617_v63, %v5503_v61 }
0x2d9d   :  { %v5512_v4 = vadd.f32 %v7617_v63, %v5504_v2 }
0x2d9f   :  { %v5513_v44 = vpack.c.bf16 %v5512_v4, %v5511_v3 }
0x2da1   :  { %8283 = vmatmul.mubr.msk.bf16.vlgmr.msra.gmra.mrb[88].mxu0 %vm59_vm0, %v5513_v44 }
0x2da2   :  { %8288 = vmatprep.mubr.msk.f32.mxu0 %vm8691_vm1, %v8690_v9 }
0x2e74   :  { %v9684_v46 = vpop.f32.mrb[88].mxu0 }
0x2e75   :  { %5576 = vrot.lane.b32.xlu0 %v9684_v46, %s10029_s1  ;;  %v8284_v5 = vpop.f32.mrb[89].mxu0 }
0x2e76   :  { %v9688_v6 = vpop.f32.mrb[90].mxu0 }
0x2e77   :  { %5653 = vrot.lane.b32.xlu1 %v9688_v6, %s10029_s1  ;;  %v8285_v8 = vpop.f32.mrb[91].mxu0 }
0x2ee7   :  { %v5577_v11 = vpop.permute.xlu0 %5576 }
0x2ee8   :  { %8287 = vmatpush3.xpose.msk.msra.mxu0 %vm173_vm2, %v5577_v11 }
0x2ee9   :  { %8291 = vmatprep.subr.mxu0 %v8690_v9  ;;  %v5654_v10 = vpop.permute.xlu1 %5653 }
0x2eeb   :  { %8289 = vmatmul.mubr.msk.f32.vlgmr.msra.gmra.mrb[82].mxu0 %vm173_vm2, %v9684_v46 }
0x2eec   :  { %8292 = vmatpush3.xpose.msk.msra.mxu0 %vm173_vm2, %v5654_v10  ;;  %8293 = vmatprep.mubr.msk.f32.mxu0 %vm8691_vm1, %v8690_v9 }
0x2eed   :  { %8296 = vmatprep.subr.mxu0 %v8690_v9 }
0x2eef   :  { %8294 = vmatmul.mubr.msk.f32.vlgmr.msra.gmra.mrb[92].mxu0 %vm173_vm2, %v9688_v6 }
0x2ef0   :  { %8298 = vmatprep.mubr.msk.f32.mxu0 %vm8691_vm1, %v8690_v9 }
0x2fbe   :  { %v5648_v14 = vpop.f32.mrb[82].mxu0 }
0x2fbf   :  { %v5729_v17 = vmul.f32 0.35355338, %v5648_v14  ;;  %v8290_v18 = vpop.f32.mrb[83].mxu0 }
0x2fc1   :  { %v5731_v19 = vsel %vm173_vm2, %v5729_v17, -inf }
0x2fc2   :  { %5732 = vmax.xlane.f32.xlu1 %v5731_v19  ;;  %v5725_v20 = vpop.f32.mrb[92].mxu0 }
0x2fc3   :  { %v5730_v59 = vmul.f32 0.35355338, %v5725_v20  ;;  %v8295_v62 = vpop.f32.mrb[93].mxu0 }
0x2fc5   :  { %v5734_v0 = vsel %vm173_vm2, %v5730_v59, -inf }
0x2fc6   :  { %5735 = vmax.xlane.f32.xlu0 %v5734_v0 }
0x2fd3   :  { %5829 = vrot.lane.b32.xlu1 %v9688_v6, %s10030_s2 }
0x2fd7   :  { %5909 = vrot.lane.b32.xlu1 %v9684_v46, %s10023_s0 }
0x2fdb   :  { %5907 = vrot.lane.b32.xlu1 %v9684_v46, %s10024_s27 }
0x304f   :  { %v5733_v1 = vpop.xlane.xlu1 %5732 }
0x3050   :  { %v5737_v21 = vsub.f32 %v5729_v17, %v5733_v1 }
0x3052   :  { %v5739_v22 = vmul.f32 1.442695, %v5737_v21 }
0x3053   :  { %v5736_v23 = vpop.xlane.xlu0 %5735  ;;  %v5830_v32 = vpop.permute.xlu1 %5829 }
0x3054   :  { %8622 = vpow2.f32 %v5739_v22  ;;  %v5738_v24 = vsub.f32 %v5730_v59, %v5736_v23 }
0x3056   :  { %v5741_v25 = vmul.f32 1.442695, %v5738_v24 }
0x3057   :  { %v5910_v34 = vpop.permute.xlu1 %5909 }
0x3058   :  { %8624 = vpow2.f32 %v5741_v25 }
0x305b   :  { %v5908_v35 = vpop.permute.xlu1 %5907 }
0x305e   :  { %v8623_v7 = vpop.eup %8622 }
0x305f   :  { %v5743_v26 = vsel %vm173_vm2, %v8623_v7, 0.0 }
0x3060   :  { %5744 = vadd.xlane.f32.xlu0 %v5743_v26 }
0x3062   :  { %v8625_v28 = vpop.eup %8624 }
0x3063   :  { %v5746_v29 = vsel %vm173_vm2, %v8625_v28, 0.0 }
0x3064   :  { %5747 = vadd.xlane.f32.xlu1 %v5746_v29 }
0x3075   :  { %5985 = vrot.lane.b32.xlu1 %v9688_v6, %s10024_s27 }
0x3076   :  { %5753 = vrot.lane.b32.xlu0 %v9684_v46, %s10030_s2 }
0x307a   :  { %5987 = vrot.lane.b32.xlu0 %v9688_v6, %s10023_s0 }
0x30ed   :  { %v5745_v36 = vpop.xlane.xlu0 %5744 }
0x30ee   :  { %8626 = vrcp.f32 %v5745_v36 }
0x30f1   :  { %v5748_v12 = vpop.xlane.xlu1 %5747  ;;  %v5754_v15 = vpop.permute.xlu0 %5753 }
0x30f2   :  { %8628 = vrcp.f32 %v5748_v12  ;;  %8297 = vmatpush3.msra.mxu0 %v5754_v15 }
0x30f3   :  { %8301 = vmatprep.subr.mxu0 %v8690_v9 }
0x30f5   :  { %v5988_v43 = vpop.permute.xlu0 %5987  ;;  %v5986_v39 = vpop.permute.xlu1 %5985 }
0x30f8   :  { %v8627_v37 = vpop.eup %8626 }
0x30f9   :  { %v5751_v13 = vmul.f32 %v8627_v37, %v8623_v7 }
0x30fb   :  { %8299 = vmatmul.mubr.msk.f32.vlgmr.msra.gmra.mrb[94].mxu0 %vm173_vm2, %v5751_v13 }
0x30fc   :  { %v8629_v38 = vpop.eup %8628  ;;  %8302 = vmatpush3.msra.mxu0 %v5830_v32  ;;  %8303 = vmatprep.mubr.msk.f32.mxu0 %vm8691_vm1, %v8690_v9 }
0x30fd   :  { %v5752_v41 = vmul.f32 %v8629_v38, %v8625_v28  ;;  %8306 = vmatprep.subr.mxu0 %v8690_v9 }
0x30ff   :  { %8304 = vmatmul.mubr.msk.f32.vlgmr.msra.gmra.mrb[96].mxu0 %vm173_vm2, %v5752_v41 }
0x3100   :  { %8308 = vmatprep.mubr.msk.f32.mxu0 %vm8691_vm1, %v8690_v9 }
0x3103   :  { %8307 = vmatpush3.xpose.msk.msra.mxu0 %vm173_vm2, %v5910_v34 }
0x3104   :  { %8311 = vmatprep.subr.mxu0 %v8690_v9 }
0x3106   :  { %8309 = vmatmul.mubr.msk.f32.vlgmr.msra.gmra.mrb[98].mxu0 %vm173_vm2, %v5908_v35 }
0x3107   :  { %8312 = vmatpush3.xpose.msk.msra.mxu0 %vm173_vm2, %v5988_v43  ;;  %8313 = vmatprep.mubr.msk.f32.mxu0 %vm8691_vm1, %v8690_v9 }
0x3108   :  { %8321 = vmatprep.subr.mxu0 %v8690_v9 }
0x310a   :  { %8314 = vmatmul.mubr.msk.f32.vlgmr.msra.gmra.mrb[100].mxu0 %vm173_vm2, %v5986_v39 }
0x310b   :  { %8323 = vmatprep.mubr.msk.f32.mxu0 %vm8691_vm1, %v8690_v9 }
0x31ce   :  { %v5825_v42 = vpop.f32.mrb[94].mxu0 }
0x31cf   :  { %5905 = vst.msk [vmem:[#allocation2] sm:$0xff] %vm173_vm2, %v5825_v42  ;;  %v8300_v45 = vpop.f32.mrb[95].mxu0 }
0x31d2   :  { %v5901_v47 = vpop.f32.mrb[96].mxu0 }
0x31d3   :  { %5906 = vst.msk [vmem:[#allocation2 + $0x8] sm:$0xff] %vm173_vm2, %v5901_v47  ;;  %v8305_v48 = vpop.f32.mrb[97].mxu0 }
0x31d9   :  { %v5981_v49 = vpop.f32.mrb[98].mxu0 }
0x31da   :  { %v6063_v50 = vmul.f32 0.35355338, %v5981_v49  ;;  %v8310_v30 = vpop.f32.mrb[99].mxu0 }
0x31dc   :  { %v6065_v33 = vsel %vm173_vm2, %v6063_v50, -inf }
0x31dd   :  { %6066 = vmax.xlane.f32.xlu0 %v6065_v33  ;;  %v6059_v51 = vpop.f32.mrb[100].mxu0 }
0x31de   :  { %v6064_v52 = vmul.f32 0.35355338, %v6059_v51  ;;  %v8315_v53 = vpop.f32.mrb[101].mxu0 }
0x31e0   :  { %v6068_v54 = vsel %vm173_vm2, %v6064_v52, -inf }
0x31e1   :  { %6069 = vmax.xlane.f32.xlu1 %v6068_v54 }
0x31f2   :  { %6163 = vrot.lane.b32.xlu1 %v9688_v6, %s10025_s22 }
0x31f3   :  { %6087 = vrot.lane.b32.xlu0 %v9684_v46, %s10025_s22 }
0x31f6   :  { %6251 = vrot.lane.b32.xlu1 %v9684_v46, %s10026_s23 }
0x31fa   :  { %6329 = vrot.lane.b32.xlu1 %v9688_v6, %s10026_s23 }
0x31fe   :  { %6327 = vrot.lane.b32.xlu1 %v9688_v6, %s10027_s25 }
0x326a   :  { %v6067_v55 = vpop.xlane.xlu0 %6066 }
0x326b   :  { %v6071_v16 = vsub.f32 %v6063_v50, %v6067_v55 }
0x326d   :  { %v6073_v56 = vmul.f32 1.442695, %v6071_v16 }
0x326e   :  { %v6088_v57 = vpop.permute.xlu0 %6087  ;;  %v6070_v40 = vpop.xlane.xlu1 %6069 }
0x326f   :  { %8630 = vpow2.f32 %v6073_v56  ;;  %v6072_v58 = vsub.f32 %v6064_v52, %v6070_v40  ;;  %8317 = vmatpush3.msra.mxu1 %v6088_v57 }
0x3270   :  { %8326 = vmatprep.subr.mxu1 %v8690_v9 }
0x3271   :  { %v6075_v60 = vmul.f32 1.442695, %v6072_v58 }
0x3272   :  { %v6164_v61 = vpop.permute.xlu1 %6163 }
0x3273   :  { %8632 = vpow2.f32 %v6075_v60  ;;  %8322 = vmatpush3.msra.mxu0 %v6164_v61 }
0x3274   :  { %8331 = vmatprep.subr.mxu0 %v8690_v9 }
0x3276   :  { %v6252_v8 = vpop.permute.xlu1 %6251 }
0x3279   :  { %v8631_v63 = vpop.eup %8630 }
0x327a   :  { %v6077_v2 = vsel %vm173_vm2, %v8631_v63, 0.0  ;;  %v6330_v17 = vpop.permute.xlu1 %6329 }
0x327b   :  { %6078 = vadd.xlane.f32.xlu0 %v6077_v2 }
0x327d   :  { %v8633_v3 = vpop.eup %8632 }
0x327e   :  { %v6080_v4 = vsel %vm173_vm2, %v8633_v3, 0.0  ;;  %v6328_v20 = vpop.permute.xlu1 %6327 }
0x327f   :  { %6081 = vadd.xlane.f32.xlu0 %v6080_v4 }
0x3295   :  { %6249 = vrot.lane.b32.xlu0 %v9684_v46, %s10027_s25 }
0x3308   :  { %v6079_v44 = vpop.xlane.xlu0 %6078 }
0x3309   :  { %8634 = vrcp.f32 %v6079_v44 }
0x330c   :  { %v6082_v5 = vpop.xlane.xlu0 %6081 }
0x330d   :  { %8636 = vrcp.f32 %v6082_v5 }
0x3310   :  { %v6250_v19 = vpop.permute.xlu0 %6249 }
0x3313   :  { %v8635_v11 = vpop.eup %8634 }
0x3314   :  { %v6085_v10 = vmul.f32 %v8635_v11, %v8631_v63 }
0x3316   :  { %8319 = vmatmul.mubr.msk.f32.vlgmr.msra.gmra.mrb[50].mxu1 %vm173_vm2, %v6085_v10 }
0x3317   :  { %v8637_v14 = vpop.eup %8636  ;;  %8327 = vmatpush3.xpose.msk.msra.mxu1 %vm173_vm2, %v6252_v8  ;;  %8328 = vmatprep.mubr.msk.f32.mxu1 %vm8691_vm1, %v8690_v9 }
0x3318   :  { %v6086_v18 = vmul.f32 %v8637_v14, %v8633_v3  ;;  %8336 = vmatprep.subr.mxu1 %v8690_v9 }
0x331a   :  { %8324 = vmatmul.mubr.msk.f32.vlgmr.msra.gmra.mrb[102].mxu0 %vm173_vm2, %v6086_v18  ;;  %8329 = vmatmul.mubr.msk.f32.vlgmr.msra.gmra.mrb[60].mxu1 %vm173_vm2, %v6250_v19 }
0x331b   :  { %8332 = vmatpush3.xpose.msk.msra.mxu0 %vm173_vm2, %v6330_v17  ;;  %8333 = vmatprep.mubr.msk.f32.mxu0 %vm8691_vm1, %v8690_v9 }
0x331c   :  { %8341 = vmatprep.subr.mxu0 %v8690_v9  ;;  %8338 = vmatprep.mubr.msk.f32.mxu1 %vm8691_vm1, %v8690_v9 }
0x331e   :  { %8334 = vmatmul.mubr.msk.f32.vlgmr.msra.gmra.mrb[104].mxu0 %vm173_vm2, %v6328_v20 }
0x331f   :  { %8343 = vmatprep.mubr.msk.f32.mxu0 %vm8691_vm1, %v8690_v9 }
0x33e9   :  { %v9774_v59 = vpop.f32.mrb[50].mxu1 }
0x33ea   :  { %v8320_v62 = vpop.f32.mrb[51].mxu1 }
0x33ed   :  { %v9776_v0 = vpop.f32.mrb[102].mxu0  ;;  %v6323_v1 = vpop.f32.mrb[60].mxu1 }
0x33ee   :  { %v6405_v21 = vmul.f32 0.35355338, %v6323_v1  ;;  %v8325_v22 = vpop.f32.mrb[103].mxu0  ;;  %v8330_v23 = vpop.f32.mrb[61].mxu1 }
0x33f0   :  { %v6407_v24 = vsel %vm173_vm2, %v6405_v21, -inf }
0x33f1   :  { %6408 = vmax.xlane.f32.xlu0 %v6407_v24  ;;  %v6401_v25 = vpop.f32.mrb[104].mxu0  ;;  %v8472_v24 = vld [vmem:[%s9968_s4 + $0x30] sm:$0xff]  }
0x33f2   :  { %v6406_v7 = vmul.f32 0.35355338, %v6401_v25  ;;  %v8335_v26 = vpop.f32.mrb[105].mxu0  ;;  %v8473_v25 = vld [vmem:[%s9968_s4 + $0x38] sm:$0xff]  }
0x33f4   :  { %v6410_v28 = vsel %vm173_vm2, %v6406_v7, -inf }
0x33f5   :  { %6411 = vmax.xlane.f32.xlu1 %v6410_v28 }
0x3406   :  { %6505 = vrot.lane.b32.xlu1 %v9688_v6, %s10028_s26 }
0x3407   :  { %6429 = vrot.lane.b32.xlu0 %v9684_v46, %s10028_s26  ;;  %s10032_s26 = sld [smem:[#allocation8_spill]] }
0x340a   :  { %6593 = vrot.lane.b32.xlu1 %v9684_v46, %s10017_s17 }
0x340e   :  { %6671 = vrot.lane.b32.xlu1 %v9688_v6, %s10017_s17 }
0x3412   :  { %6669 = vrot.lane.b32.xlu1 %v9688_v6, %s10018_s18 }
0x347e   :  { %v6409_v29 = vpop.xlane.xlu0 %6408 }
0x347f   :  { %v6413_v32 = vsub.f32 %v6405_v21, %v6409_v29 }
0x3481   :  { %v6415_v34 = vmul.f32 1.442695, %v6413_v32 }
0x3482   :  { %v6430_v35 = vpop.permute.xlu0 %6429  ;;  %v6412_v36 = vpop.xlane.xlu1 %6411 }
0x3483   :  { %8638 = vpow2.f32 %v6415_v34  ;;  %v6414_v12 = vsub.f32 %v6406_v7, %v6412_v36  ;;  %8337 = vmatpush3.msra.mxu1 %v6430_v35 }
0x3484   :  { %8346 = vmatprep.subr.mxu1 %v8690_v9 }
0x3485   :  { %v6417_v15 = vmul.f32 1.442695, %v6414_v12 }
0x3486   :  { %v6506_v37 = vpop.permute.xlu1 %6505 }
0x3487   :  { %8640 = vpow2.f32 %v6417_v15  ;;  %8342 = vmatpush3.msra.mxu0 %v6506_v37  ;;  %v7654_v15 = vld [vmem:[%s9969_s5 + $0x3] ss:$0 sm:$0xff] }
0x3488   :  { %8351 = vmatprep.subr.mxu0 %v8690_v9 }
0x348a   :  { %v6594_v45 = vpop.permute.xlu1 %6593 }
0x348d   :  { %v8639_v13 = vpop.eup %8638 }
0x348e   :  { %v6419_v38 = vsel %vm173_vm2, %v8639_v13, 0.0  ;;  %v6672_v50 = vpop.permute.xlu1 %6671 }
0x348f   :  { %6420 = vadd.xlane.f32.xlu0 %v6419_v38 }
0x3491   :  { %v8641_v41 = vpop.eup %8640 }
0x3492   :  { %v6422_v43 = vsel %vm173_vm2, %v8641_v41, 0.0  ;;  %v6670_v51 = vpop.permute.xlu1 %6669 }
0x3493   :  { %6423 = vadd.xlane.f32.xlu0 %v6422_v43 }
0x34a9   :  { %6591 = vrot.lane.b32.xlu0 %v9684_v46, %s10018_s18 }
0x351c   :  { %v6421_v39 = vpop.xlane.xlu0 %6420 }
0x351d   :  { %8642 = vrcp.f32 %v6421_v39 }
0x3520   :  { %v6424_v42 = vpop.xlane.xlu0 %6423 }
0x3521   :  { %8644 = vrcp.f32 %v6424_v42 }
0x3524   :  { %v6592_v33 = vpop.permute.xlu0 %6591 }
0x3527   :  { %v8643_v47 = vpop.eup %8642 }
0x3528   :  { %v6427_v48 = vmul.f32 %v8643_v47, %v8639_v13 }
0x352a   :  { %8339 = vmatmul.mubr.msk.f32.vlgmr.msra.gmra.mrb[62].mxu1 %vm173_vm2, %v6427_v48 }
0x352b   :  { %v8645_v49 = vpop.eup %8644  ;;  %8347 = vmatpush3.xpose.msk.msra.mxu1 %vm173_vm2, %v6594_v45  ;;  %8348 = vmatprep.mubr.msk.f32.mxu1 %vm8691_vm1, %v8690_v9 }
0x352c   :  { %v6428_v30 = vmul.f32 %v8645_v49, %v8641_v41  ;;  %8356 = vmatprep.subr.mxu1 %v8690_v9 }
0x352e   :  { %8344 = vmatmul.mubr.msk.f32.vlgmr.msra.gmra.mrb[106].mxu0 %vm173_vm2, %v6428_v30  ;;  %8349 = vmatmul.mubr.msk.f32.vlgmr.msra.gmra.mrb[64].mxu1 %vm173_vm2, %v6592_v33  ;;  %v8474_v30 = vld [vmem:[%s9972_s8 + $0x30] sm:$0xff]   ;;  %v8475_v33 = vld [vmem:[%s9972_s8 + $0x38] sm:$0xff]   ;;  %s10031_s8 = sld [smem:[#allocation7_spill]] }
0x352f   :  { %8352 = vmatpush3.xpose.msk.msra.mxu0 %vm173_vm2, %v6672_v50  ;;  %8353 = vmatprep.mubr.msk.f32.mxu0 %vm8691_vm1, %v8690_v9 }
0x3530   :  { %8361 = vmatprep.subr.mxu0 %v8690_v9  ;;  %8358 = vmatprep.mubr.msk.f32.mxu1 %vm8691_vm1, %v8690_v9 }
0x3532   :  { %8354 = vmatmul.mubr.msk.f32.vlgmr.msra.gmra.mrb[108].mxu0 %vm173_vm2, %v6670_v51 }
0x3533   :  { %8363 = vmatprep.mubr.msk.f32.mxu0 %vm8691_vm1, %v8690_v9 }
0x35fd   :  { %v6501_v52 = vpop.f32.mrb[62].mxu1 }
0x35fe   :  { %v8340_v53 = vpop.f32.mrb[63].mxu1 }
0x3601   :  { %v6577_v54 = vpop.f32.mrb[106].mxu0  ;;  %v6665_v55 = vpop.f32.mrb[64].mxu1 }
0x3602   :  { %v6747_v16 = vmul.f32 0.35355338, %v6665_v55  ;;  %v8345_v56 = vpop.f32.mrb[107].mxu0  ;;  %v8350_v57 = vpop.f32.mrb[65].mxu1 }
0x3604   :  { %v6749_v40 = vsel %vm173_vm2, %v6747_v16, -inf }
0x3605   :  { %6750 = vmax.xlane.f32.xlu0 %v6749_v40  ;;  %v6743_v58 = vpop.f32.mrb[108].mxu0 }
0x3606   :  { %v6748_v60 = vmul.f32 0.35355338, %v6743_v58  ;;  %v8355_v61 = vpop.f32.mrb[109].mxu0 }
0x3608   :  { %v6752_v63 = vsel %vm173_vm2, %v6748_v60, -inf }
0x3609   :  { %6753 = vmax.xlane.f32.xlu1 %v6752_v63 }
0x361a   :  { %6847 = vrot.lane.b32.xlu1 %v9688_v6, %s10019_s28 }
0x361e   :  { %6241 = vrot.lane.b32.xlu1 %v9774_v59, %s10020_s29 }
0x3622   :  { %6243 = vrot.lane.b32.xlu1 %v9776_v0, %s10020_s29 }
0x3626   :  { %6585 = vrot.lane.b32.xlu1 %v6577_v54, %s10021_s30 }
0x3692   :  { %v6751_v2 = vpop.xlane.xlu0 %6750 }
0x3693   :  { %v6755_v3 = vsub.f32 %v6747_v16, %v6751_v2 }
0x3695   :  { %v6757_v4 = vmul.f32 1.442695, %v6755_v3 }
0x3696   :  { %v6754_v44 = vpop.xlane.xlu1 %6753 }
0x3697   :  { %8646 = vpow2.f32 %v6757_v4  ;;  %v6756_v5 = vsub.f32 %v6748_v60, %v6754_v44 }
0x3699   :  { %v6759_v8 = vmul.f32 1.442695, %v6756_v5 }
0x369a   :  { %v6848_v11 = vpop.permute.xlu1 %6847 }
0x369b   :  { %8648 = vpow2.f32 %v6759_v8  ;;  %8362 = vmatpush3.msra.mxu0 %v6848_v11  ;;  %v7660_v11 = vld [vmem:[%s9970_s6 + $0x3] ss:$0 sm:$0xff] }
0x369c   :  { %8374 = vmatprep.subr.bf16.mxu0 %v8690_v9 }
0x369e   :  { %v6242_v6 = vpop.permute.xlu1 %6241 }
0x369f   :  { %6247 = vst.msk [vmem:[#allocation2] sm:$0xff] %vm843_vm3, %v6242_v6 }
0x36a1   :  { %v8647_v10 = vpop.eup %8646 }
0x36a2   :  { %v6244_v14 = vpop.permute.xlu1 %6243  ;;  %v6761_v17 = vsel %vm173_vm2, %v8647_v10, 0.0 }
0x36a3   :  { %6248 = vst.msk [vmem:[#allocation2 + $0x8] sm:$0xff] %vm843_vm3, %v6244_v14  ;;  %6762 = vadd.xlane.f32.xlu0 %v6761_v17 }
0x36a5   :  { %v8649_v18 = vpop.eup %8648 }
0x36a6   :  { %v6586_v19 = vpop.permute.xlu1 %6585  ;;  %v6764_v20 = vsel %vm173_vm2, %v8649_v18, 0.0 }
0x36a7   :  { %6590 = vst.msk [vmem:[#allocation2 + $0x8] sm:$0xff] %vm1186_vm4, %v6586_v19  ;;  %6765 = vadd.xlane.f32.xlu0 %v6764_v20 }
0x36bd   :  { %6771 = vrot.lane.b32.xlu0 %v9684_v46, %s10019_s28 }
0x36c1   :  { %6583 = vrot.lane.b32.xlu0 %v6501_v52, %s10021_s30 }
0x3730   :  { %v6763_v59 = vpop.xlane.xlu0 %6762 }
0x3731   :  { %8650 = vrcp.f32 %v6763_v59 }
0x3734   :  { %v6766_v62 = vpop.xlane.xlu0 %6765 }
0x3735   :  { %8652 = vrcp.f32 %v6766_v62 }
0x3738   :  { %v6772_v0 = vpop.permute.xlu0 %6771 }
0x3739   :  { %8357 = vmatpush3.msra.mxu1 %v6772_v0  ;;  %v8476_v0 = vld [vmem:[%s9974_s10 + $0xc0] sm:$0xff]  }
0x373a   :  { %8366 = vmatprep.subr.bf16.mxu1 %v8690_v9 }
0x373b   :  { %v8651_v1 = vpop.eup %8650 }
0x373c   :  { %v6769_v21 = vmul.f32 %v8651_v1, %v8647_v10  ;;  %v6584_v22 = vpop.permute.xlu0 %6583  ;;  %v8477_v1 = vld [vmem:[%s9974_s10 + $0xc8] sm:$0xff]  }
0x373d   :  { %6589 = vst.msk [vmem:[#allocation2] sm:$0xff] %vm1186_vm4, %v6584_v22  ;;  %v8479_v22 = vld [vmem:[%s9974_s10 + $0xd8] sm:$0xff]  }
0x373e   :  { %8359 = vmatmul.mubr.msk.f32.vlgmr.msra.gmra.mrb[66].mxu1 %vm173_vm2, %v6769_v21  ;;  %v8478_v21 = vld [vmem:[%s9974_s10 + $0xd0] sm:$0xff]  }
0x373f   :  { %v8653_v23 = vpop.eup %8652  ;;  %8370 = vmatprep.mubr.msk.bf16.mxu1 %vm8691_vm1, %v8690_v9  ;;  %8367 = vmatpush3.bf16.msra.mxu1 %v8472_v24  ;;  %v8482_v24 = vld [vmem:[%s9974_s10 + $0xf0] sm:$0xff]  }
0x3740   :  { %v6770_v46 = vmul.f32 %v8653_v23, %v8649_v18  ;;  %8368 = vmatprep.subr.bf16.mxu1 %v8690_v9  ;;  %v7661_v18 = vld [vmem:[%s9971_s7 + $0x3] ss:$0 sm:$0xff]  ;;  %s7389_s7 = sshll.u32 %s8706_s21, 4  ;;  %s7390_s7 = int_to_ptr.vmem [resolvable:$true] %s7389_s7 }
0x3741   :  { %v8480_v23 = vld [vmem:[%s9974_s10 + $0xe0] sm:$0xff]   ;;  %s8666_s13 = scalar_lea.vmem %s7390_s7, 256  ;;  %p8671_p1 = scmp.lt.s32.totalorder %s7390_s7, %s7390_s7 }
0x3742   :  { %8364 = vmatmul.mubr.msk.f32.vlgmr.msra.gmra.mrb[110].mxu0 %vm173_vm2, %v6770_v46  ;;  %v8481_v46 = vld [vmem:[%s9974_s10 + $0xe8] sm:$0xff]   ;;  %p8667_p0 = scmp.ne.s32.totalorder %s7390_s7, %s8666_s13  ;;  %p8672_p2 = scmp.lt.s32.totalorder %s8666_s13, %s8666_s13 }
0x3743   :  { %8378 = vmatprep.mubr.msk.bf16.mxu0 %vm8691_vm1, %v8690_v9  ;;  %8369 = vmatpush3.bf16.msra.mxu1 %v8473_v25  ;;  %v8483_v25 = vld [vmem:[%s9974_s10 + $0xf8] sm:$0xff]  }
0x3744   :  { %8382 = vmatprep.subr.bf16.mxu1 %v8690_v9  ;;  %8375 = vmatpush3.bf16.msra.mxu0 %v8474_v30  ;;  %p8673_p3 = por %p8672_p2, %p8671_p1 }
0x3745   :  { %8376 = vmatprep.subr.bf16.mxu0 %v8690_v9 }
0x3746   :  { %p8674_p4 = pnand %p8673_p3, %p8667_p0 }
0x3748   :  { %8377 = vmatpush3.bf16.msra.mxu0 %v8475_v33 }
0x3749   :  { %8402 = vmatprep.subr.bf16.mxu0 %v8690_v9 }
0x3811   :  { %v6843_v7 = vpop.f32.mrb[66].mxu1 }
0x3812   :  { %6925 = vrot.lane.b32.xlu0 %v6843_v7, %s10022_s24  ;;  %v8360_v26 = vpop.f32.mrb[67].mxu1  ;;  %v7667_v7 = vld [vmem:[%s9973_s9 + $0x3] ss:$0 sm:$0xff] }
0x3815   :  { %v6919_v28 = vpop.f32.mrb[110].mxu0 }
0x3816   :  { %6927 = vrot.lane.b32.xlu1 %v6919_v28, %s10022_s24  ;;  %v8365_v29 = vpop.f32.mrb[111].mxu0 }
0x3884   :  { %v6926_v32 = vpop.permute.xlu0 %6925 }
0x3885   :  { %6931 = vst.msk [vmem:[#allocation2] sm:$0xff] %vm1529_vm5, %v6926_v32 }
0x3888   :  { %v6928_v34 = vpop.permute.xlu1 %6927 }
0x3889   :  { %6932 = vst.msk [vmem:[#allocation2 + $0x8] sm:$0xff] %vm1529_vm5, %v6928_v34 }
0x388c   :  { %v6933_v35 = vld [vmem:[#allocation2] sm:$0xff] }
0x3890   :  { %v6934_v36 = vld [vmem:[#allocation2 + $0x8] sm:$0xff] }
0x3891   :  { %v6935_v12 = vpack.c.bf16 %v6934_v36, %v6933_v35 }
0x3893   :  { %8371 = vmatmul.mubr.msk.bf16.vlgmr.msra.gmra.mrb[68].mxu1 %vm59_vm0, %v6935_v12 }
0x3894   :  { %8398 = vmatprep.mubr.msk.bf16.mxu1 %vm8691_vm1, %v8690_v9  ;;  %8383 = vmatpush3.bf16.msra.mxu1 %v8476_v0 }
0x3895   :  { %8384 = vmatprep.subr.bf16.mxu1 %v8690_v9 }
0x3898   :  { %8385 = vmatpush3.bf16.msra.mxu1 %v8477_v1 }
0x3899   :  { %8386 = vmatprep.subr.bf16.mxu1 %v8690_v9 }
0x389c   :  { %8387 = vmatpush3.bf16.msra.mxu1 %v8478_v21 }
0x389d   :  { %8388 = vmatprep.subr.bf16.mxu1 %v8690_v9 }
0x38a0   :  { %8389 = vmatpush3.bf16.msra.mxu1 %v8479_v22 }
0x38a1   :  { %8390 = vmatprep.subr.bf16.mxu1 %v8690_v9 }
0x38a4   :  { %8391 = vmatpush3.bf16.msra.mxu1 %v8480_v23 }
0x38a5   :  { %8392 = vmatprep.subr.bf16.mxu1 %v8690_v9 }
0x38a8   :  { %8393 = vmatpush3.bf16.msra.mxu1 %v8481_v46  ;;  %v7697_v46 = vld [vmem:[%s10031_s8] ss:$0 sm:$0xff] }
0x38a9   :  { %8394 = vmatprep.subr.bf16.mxu1 %v8690_v9 }
0x38ac   :  { %8395 = vmatpush3.bf16.msra.mxu1 %v8482_v24 }
0x38ad   :  { %8396 = vmatprep.subr.bf16.mxu1 %v8690_v9 }
0x38b0   :  { %8397 = vmatpush3.bf16.msra.mxu1 %v8483_v25 }
0x3966   :  { %v6998_v37 = vpop.f32.mrb[68].mxu1 }
0x3967   :  { %v6999_v13 = vadd.f32 %v7654_v15, %v6998_v37  ;;  %v8372_v38 = vpop.f32.mrb[69].mxu1 }
0x3968   :  { %v7001_v41 = vpop.f32.mrb[70].mxu1 }
0x3969   :  { %v9857_v43 = vadd.f32 %v6999_v13, %v9650_v27  ;;  %v7002_v39 = vadd.f32 %v7654_v15, %v7001_v41  ;;  %v8373_v42 = vpop.f32.mrb[71].mxu1 }
0x396b   :  { %v9860_v45 = vadd.f32 %v7002_v39, %v9653_v31  ;;  %v7011_v47 = vsel %vm59_vm0, %v9857_v43, 0.0  ;;  %v7019_v48 = vmul.f32 %v9857_v43, %v9857_v43 }
0x396c   :  { %7012 = vadd.xlane.f32.xlu0 %v7011_v47 }
0x396d   :  { %v7014_v49 = vsel %vm59_vm0, %v9860_v45, 0.0  ;;  %v7021_v50 = vsel %vm59_vm0, %v7019_v48, 0.0  ;;  %v7020_v27 = vmul.f32 %v9860_v45, %v9860_v45 }
0x396e   :  { %7015 = vadd.xlane.f32.xlu1 %v7014_v49 }
0x396f   :  { %v7024_v31 = vsel %vm59_vm0, %v7020_v27, 0.0 }
0x3970   :  { %7022 = vadd.xlane.f32.xlu0 %v7021_v50 }
0x3974   :  { %7025 = vadd.xlane.f32.xlu0 %v7024_v31 }
0x39f9   :  { %v7013_v51 = vpop.xlane.xlu0 %7012 }
0x39fa   :  { %v7017_v52 = vmul.f32 0.03125, %v7013_v51 }
0x39fb   :  { %v7016_v53 = vpop.xlane.xlu1 %7015 }
0x39fc   :  { %v7029_v55 = vmul.f32 %v7017_v52, %v7017_v52  ;;  %v7018_v16 = vmul.f32 0.03125, %v7016_v53  ;;  %v7035_v44 = vsub.f32 %v9857_v43, %v7017_v52  ;;  %v7688_v53 = vld [vmem:[%s9975_s11 + $0x3] ss:$0 sm:$0xff] }
0x39fd   :  { %v7023_v54 = vpop.xlane.xlu0 %7022 }
0x39fe   :  { %v7027_v56 = vmul.f32 0.03125, %v7023_v54  ;;  %v7030_v58 = vmul.f32 %v7018_v16, %v7018_v16  ;;  %v7036_v6 = vsub.f32 %v9860_v45, %v7018_v16 }
0x3a00   :  { %v7031_v57 = vsub.f32 %v7027_v56, %v7029_v55 }
0x3a01   :  { %v7026_v40 = vpop.xlane.xlu0 %7025 }
0x3a02   :  { %v7033_v60 = vmax.f32 %v7031_v57, 0.0  ;;  %v7028_v61 = vmul.f32 0.03125, %v7026_v40 }
0x3a04   :  { %v7037_v63 = vadd.f32 1e-05, %v7033_v60  ;;  %v7032_v2 = vsub.f32 %v7028_v61, %v7030_v58 }
0x3a06   :  { %8654 = vrsqrt.f32 %v7037_v63  ;;  %v7034_v3 = vmax.f32 %v7032_v2, 0.0 }
0x3a08   :  { %v7038_v4 = vadd.f32 1e-05, %v7034_v3 }
0x3a0a   :  { %8656 = vrsqrt.f32 %v7038_v4 }
0x3a10   :  { %v8655_v5 = vpop.eup %8654 }
0x3a11   :  { %v7041_v8 = vmul.f32 %v8655_v5, %v7035_v44 }
0x3a13   :  { %v7049_v17 = vmul.f32 %v7660_v11, %v7041_v8 }
0x3a14   :  { %v8657_v10 = vpop.eup %8656 }
0x3a15   :  { %v7042_v14 = vmul.f32 %v8657_v10, %v7036_v6  ;;  %v7057_v20 = vadd.f32 %v7661_v18, %v7049_v17 }
0x3a17   :  { %v7050_v19 = vmul.f32 %v7660_v11, %v7042_v14 }
0x3a19   :  { %v7058_v59 = vadd.f32 %v7661_v18, %v7050_v19 }
0x3a1b   :  { %v7059_v62 = vpack.c.bf16 %v7058_v59, %v7057_v20 }
0x3a1d   :  { %8379 = vmatmul.mubr.msk.bf16.vlgmr.msra.gmra.mrb[112].mxu0 %vm59_vm0, %v7059_v62 }
0x3a1e   :  { %8406 = vmatprep.mubr.msk.bf16.mxu0 %vm8691_vm1, %v8690_v9 }
0x3af0   :  { %v7122_v26 = vpop.f32.mrb[112].mxu0 }
0x3af1   :  { %v7123_v28 = vadd.f32 %v7667_v7, %v7122_v26  ;;  %v8380_v29 = vpop.f32.mrb[113].mxu0 }
0x3af2   :  { %v7125_v32 = vpop.f32.mrb[114].mxu0  ;;  %v7698_v29 = vld [vmem:[%s10032_s26] ss:$0 sm:$0xff] }
0x3af3   :  { %v7129_v34 = vmul.f32 %v7123_v28, %v7123_v28  ;;  %v7126_v35 = vadd.f32 %v7667_v7, %v7125_v32  ;;  %v8381_v36 = vpop.f32.mrb[115].mxu0 }
0x3af5   :  { %v7131_v12 = vmul.f32 %v7129_v34, %v7123_v28  ;;  %v7130_v15 = vmul.f32 %v7126_v35, %v7126_v35 }
0x3af7   :  { %v7133_v37 = vmul.f32 0.044715, %v7131_v12  ;;  %v7132_v13 = vmul.f32 %v7130_v15, %v7126_v35  ;;  %v7699_v12 = vld [vmem:[%s10033_s20] ss:$0 sm:$0xff] }
0x3af9   :  { %v7135_v38 = vadd.f32 %v7133_v37, %v7123_v28  ;;  %v7134_v41 = vmul.f32 0.044715, %v7132_v13 }
0x3afb   :  { %v7137_v39 = vmul.f32 0.7978846, %v7135_v38  ;;  %v7136_v42 = vadd.f32 %v7134_v41, %v7126_v35 }
0x3afd   :  { %8658 = vtanh.f32 %v7137_v39  ;;  %v7138_v47 = vmul.f32 0.7978846, %v7136_v42 }
0x3aff   :  { %8660 = vtanh.f32 %v7138_v47 }
0x3b07   :  { %v8659_v48 = vpop.eup %8658 }
0x3b08   :  { %v7141_v49 = vadd.f32 1.0, %v8659_v48 }
0x3b09   :  { %v8661_v50 = vpop.eup %8660 }
0x3b0a   :  { %v7143_v27 = vmul.f32 0.5, %v7141_v49  ;;  %v7142_v31 = vadd.f32 1.0, %v8661_v50 }
0x3b0c   :  { %v7144_v30 = vmul.f32 0.5, %v7142_v31  ;;  %v7145_v33 = vmul.f32 %v7143_v27, %v7123_v28 }
0x3b0e   :  { %v7146_v51 = vmul.f32 %v7144_v30, %v7126_v35 }
0x3b10   :  { %v7147_v52 = vpack.c.bf16 %v7146_v51, %v7145_v33 }
0x3b12   :  { %8399 = vmatmul.mubr.bf16.vlgmr.msra.gmra.mrb[72].mxu1 %v7147_v52 }
0x3be5   :  { %v7255_v54 = vpop.f32.mrb[72].mxu1 }
0x3be6   :  { %v7256_v55 = vadd.f32 %v7688_v53, %v7255_v54  ;;  %v8400_v16 = vpop.f32.mrb[73].mxu1 }
0x3be7   :  { %v7258_v56 = vpop.f32.mrb[74].mxu1 }
0x3be8   :  { %v7262_v57 = vadd.f32 %v7256_v55, %v9857_v43  ;;  %v7259_v40 = vadd.f32 %v7688_v53, %v7258_v56  ;;  %v8401_v58 = vpop.f32.mrb[75].mxu1  ;;  %v8484_v43 = vld [vmem:[%s9978_s14] sm:$0xff]  }
0x3be9   :  { %8403 = vmatpush3.bf16.msra.mxu0 %v8484_v43 }
0x3bea   :  { %v7263_v60 = vadd.f32 %v7259_v40, %v9860_v45  ;;  %v7266_v61 = vsel %vm59_vm0, %v7262_v57, 0.0  ;;  %v7274_v63 = vmul.f32 %v7262_v57, %v7262_v57  ;;  %v8485_v45 = vld [vmem:[%s9978_s14 + $0x8] sm:$0xff]   ;;  %8404 = vmatprep.subr.bf16.mxu0 %v8690_v9 }
0x3beb   :  { %7267 = vadd.xlane.f32.xlu0 %v7266_v61 }
0x3bec   :  { %v7269_v2 = vsel %vm59_vm0, %v7263_v60, 0.0  ;;  %v7275_v3 = vmul.f32 %v7263_v60, %v7263_v60  ;;  %v7276_v4 = vsel %vm59_vm0, %v7274_v63, 0.0 }
0x3bed   :  { %7270 = vadd.xlane.f32.xlu1 %v7269_v2  ;;  %8405 = vmatpush3.bf16.msra.mxu0 %v8485_v45 }
0x3bee   :  { %v7279_v44 = vsel %vm59_vm0, %v7275_v3, 0.0 }
0x3bef   :  { %7277 = vadd.xlane.f32.xlu0 %v7276_v4 }
0x3bf1   :  { %7280 = vadd.xlane.f32.xlu1 %v7279_v44 }
0x3c78   :  { %v7268_v5 = vpop.xlane.xlu0 %7267 }
0x3c79   :  { %v7272_v8 = vmul.f32 0.03125, %v7268_v5 }
0x3c7a   :  { %v7271_v11 = vpop.xlane.xlu1 %7270 }
0x3c7b   :  { %v7273_v6 = vmul.f32 0.03125, %v7271_v11  ;;  %v7284_v14 = vmul.f32 %v7272_v8, %v7272_v8  ;;  %v7290_v9 = vsub.f32 %v7262_v57, %v7272_v8 }
0x3c7c   :  { %v7278_v10 = vpop.xlane.xlu0 %7277 }
0x3c7d   :  { %v7282_v17 = vmul.f32 0.03125, %v7278_v10  ;;  %v7285_v19 = vmul.f32 %v7273_v6, %v7273_v6  ;;  %v7291_v24 = vsub.f32 %v7263_v60, %v7273_v6 }
0x3c7e   :  { %v7281_v18 = vpop.xlane.xlu1 %7280 }
0x3c7f   :  { %v7286_v20 = vsub.f32 %v7282_v17, %v7284_v14  ;;  %v7283_v59 = vmul.f32 0.03125, %v7281_v18 }
0x3c81   :  { %v7288_v62 = vmax.f32 %v7286_v20, 0.0  ;;  %v7287_v0 = vsub.f32 %v7283_v59, %v7285_v19 }
0x3c83   :  { %v7292_v1 = vadd.f32 1e-05, %v7288_v62  ;;  %v7289_v21 = vmax.f32 %v7287_v0, 0.0 }
0x3c85   :  { %8662 = vrsqrt.f32 %v7292_v1  ;;  %v7293_v22 = vadd.f32 1e-05, %v7289_v21 }
0x3c87   :  { %8664 = vrsqrt.f32 %v7293_v22 }
0x3c8f   :  { %v8663_v23 = vpop.eup %8662 }
0x3c90   :  { %v7296_v25 = vmul.f32 %v8663_v23, %v7290_v9 }
0x3c91   :  { %v8665_v7 = vpop.eup %8664 }
0x3c92   :  { %v7297_v26 = vmul.f32 %v8665_v7, %v7291_v24  ;;  %v7304_v28 = vmul.f32 %v7697_v46, %v7296_v25 }
0x3c94   :  { %v7305_v32 = vmul.f32 %v7697_v46, %v7297_v26  ;;  %v7312_v34 = vadd.f32 %v7698_v29, %v7304_v28 }
0x3c96   :  { %v7313_v35 = vadd.f32 %v7698_v29, %v7305_v32 }
0x3c98   :  { %v7314_v36 = vpack.c.bf16 %v7313_v35, %v7312_v34 }
0x3c9a   :  { %8407 = vmatmul.mubr.msk.bf16.vlgmr.msra.gmra.mrb[116].mxu0 %vm59_vm0, %v7314_v36 }
0x3d6d   :  { %v7375_v15 = vpop.f32.mrb[116].mxu0 }
0x3d6e   :  { %v7376_v37 = vadd.f32 %v7699_v12, %v7375_v15  ;;  %v8408_v13 = vpop.f32.mrb[117].mxu0 }
0x3d6f   :  { %v7378_v38 = vpop.f32.mrb[118].mxu0 }
0x3d70   :  { %7382 = vst [vmem:[#allocation3] sm:$0xff] %v7376_v37  ;;  %v7379_v41 = vadd.f32 %v7699_v12, %v7378_v38  ;;  %v8409_v39 = vpop.f32.mrb[119].mxu0 }
0x3d72   :  { %7383 = vst [vmem:[#allocation3 + $0x8] sm:$0xff] %v7379_v41 }
0x3d73   :  { %8677 = shalt.err (!%p8674_p4)
}
0x3d74   :  { %s10034_s16 = sld [smem:[#allocation10_spill]] }
0x3d7a   :  { %s8678_s19 = scalar_lea.hbm %s10034_s16, 256 }
0x3d7b   :  { %p8679_p5 = scmp.ne.s32.totalorder %s10034_s16, %s8678_s19  ;;  %p8682_p6 = scmp.lt.u32.totalorder %s8678_s19, %s10034_s16 }
0x3d7d   :  { %p8684_p7 = pnand %p8682_p6, %p8679_p5 }
0x3d7f   :  { %8687 = shalt.err (!%p8684_p7)
}
0x3d80   :  { %s8707_s28 = smov 128  }
0x3d81   :  { %7395 = dma.vmem_to_hbm [thread:$0]  %s7390_s7, 256, %s10034_s16, [#allocation4], %s8707_s28, %s8707_s28, %s10020_s29  }
0x3d82   :  { %8688 = dma.done.wait [#allocation4], 256  }
0x3d83   :  { %8689 = vsyncadd [#allocation4], 4294967040 }
0x3d84   :  { %7399 = vsyncpa [#allocation4], 1 }

</bundles_post_ra>
